<compile_context>
chip_gen: v7x
topology: tpu7x:2x2x1
jax: 0.10.0
libtpu: 0.0.40
codegen_flags: <defaults>
</compile_context>

<pallas_src>
import math

import jax
import jax.numpy as jnp
from jax.experimental import pallas as pl
from jax.experimental.pallas import tpu as pltpu


# ------------------------------ fused kernel --------------------------------

def make_kernel(*, L, BT, H, channels, has_sc, vidx):
    """Builds the whole-network kernel for one (BT, L, 112) batch tile."""
    M = BT * L
    CMAX = 3 * H           # widest ResNet conv input (96 for hidden=32)
    CIN0 = 16 * 7          # im2col'd input channels of the merged conv

    def kernel(*refs):
        xim_ref, vec_ref = refs[0], refs[1]
        o_ref, pad_ref = refs[-2], refs[-1]
        w_refs = list(refs[2:-2])

        def vec(idx, width):                         # (1, width) f32 bias/scale row
            return vec_ref[idx:idx + 1, :width]

        def mm(a_bf, w):                             # MXU matmul, f32 accumulation
            return jnp.dot(a_bf, w, preferred_element_type=jnp.float32)

        # Zero the conv scratch once per grid step; all later writes only touch
        # rows [1:L+1], so the halo rows (0 and L+1) stay zero for every block.
        pad_ref[...] = jnp.zeros((BT, L + 2, CMAX), jnp.bfloat16)

        def conv3(a_bf, w_ref, cin, cout, scale, shift, residual=None):
            """kernel=3 / pad=1 / stride=1 conv + folded bias/BN (+residual) + ReLU.

            a_bf: (M, cin) bf16.  Row shifts come from static slices of the
            zero-padded scratch (no roll / iota / where); one bf16 cast per layer.
            """
            pad_ref[:, 1:L + 1, :cin] = a_bf.reshape(BT, L, cin)
            ap = pad_ref[:, :, :cin]                           # (BT, L+2, cin) bf16
            y = mm(ap[:, 0:L, :].reshape(M, cin), w_ref[0])
            y = y + mm(ap[:, 1:L + 1, :].reshape(M, cin), w_ref[1])
            y = y + mm(ap[:, 2:L + 2, :].reshape(M, cin), w_ref[2])
            y = y * scale + shift                              # conv bias + BN folded
            if residual is not None:
                y = y + residual
            return jnp.maximum(y, 0.0)

        # ---- merged multi-scale conv: single (M,112)@(112,3H) MXU contraction ----
        msw_ref = w_refs.pop(0)
        x = xim_ref[...].reshape(M, CIN0)                      # bf16, im2col'd on host
        out = jnp.maximum(mm(x, msw_ref[...]) + vec(vidx["ms_b"], CMAX), 0.0)

        # ---- 4 ResNet1D blocks (kernel=3, pad=1, stride=1) ----
        for bi, (cin, cout) in enumerate(channels):
            c1_ref = w_refs.pop(0)
            c2_ref = w_refs.pop(0)
            sc_ref = w_refs.pop(0) if has_sc[bi] else None
            vb = vidx["blocks"][bi]
            a_bf = out.astype(jnp.bfloat16)                    # one cast per block input
            h = conv3(a_bf, c1_ref, cin, cout,
                      vec(vb["c1_s"], cout), vec(vb["c1_b"], cout))
            if sc_ref is not None:                             # 1x1 conv + BN shortcut
                res = (mm(a_bf, sc_ref[...]) * vec(vb["sc_s"], cout)
                       + vec(vb["sc_b"], cout))
            else:                                              # identity shortcut (f32)
                res = out
            out = conv3(h.astype(jnp.bfloat16), c2_ref, cout, cout,
                        vec(vb["c2_s"], cout), vec(vb["c2_b"], cout),
                        residual=res)

        # ---- BPA gating (1x1 -> ReLU -> 1x1 -> sigmoid) + global avg pool ----
        bpa_w1_ref = w_refs.pop(0)
        bpa_w2_ref = w_refs.pop(0)
        out_bf = out.astype(jnp.bfloat16)
        a1 = jnp.maximum(mm(out_bf, bpa_w1_ref[...]) + vec(vidx["bpa_b1"], H // 2), 0.0)
        att = jax.nn.sigmoid(mm(a1.astype(jnp.bfloat16), bpa_w2_ref[...])
                             + vec(vidx["bpa_b2"], H))
        gated = out * att                                      # (M, H) f32
        o_ref[...] = jnp.mean(gated.reshape(BT, L, H), axis=1).astype(o_ref.dtype)

    return kernel


# ------------------------------ parameters ----------------------------------

def init_params(key, hidden=32):
    H = hidden
    eps = 1e-5
    keys = iter(jax.random.split(key, 40))

    def wconv(k, cin, cout):
        return jax.random.normal(next(keys), (k, cin, cout), jnp.float32) / math.sqrt(k * cin)

    def bias(c):
        return jax.random.normal(next(keys), (c,), jnp.float32) * 0.05

    vec_rows = []

    def add_vec(v):
        i = len(vec_rows)
        vec_rows.append(jnp.pad(v.astype(jnp.float32), (0, 128 - v.shape[0])))
        return i

    def bn_fold(conv_bias):
        # eval-mode BN with default-init running stats (gamma=1, beta=0, mean=0, var=1)
        # TODO(synk): training-mode BatchNorm (per-batch statistics) not implemented.
        c = conv_bias.shape[0]
        gamma = jnp.ones((c,), jnp.float32)
        beta = jnp.zeros((c,), jnp.float32)
        mean = jnp.zeros((c,), jnp.float32)
        var = jnp.ones((c,), jnp.float32)
        scale = gamma / jnp.sqrt(var + eps)
        shift = scale * (conv_bias - mean) + beta
        return add_vec(scale), add_vec(shift)

    # Merged multi-scale conv: zero-pad K=3/K=5 taps to K=7, stack along Cout,
    # then reshape to the (7*16, 3H) im2col weight used by the kernel.
    w3, b3 = wconv(3, 16, H), bias(H)
    w5, b5 = wconv(5, 16, H), bias(H)
    w7, b7 = wconv(7, 16, H), bias(H)
    w_ms = jnp.concatenate([jnp.pad(w3, ((2, 2), (0, 0), (0, 0))),
                            jnp.pad(w5, ((1, 1), (0, 0), (0, 0))),
                            w7], axis=2)                       # (7, 16, 3H)
    msw = w_ms.reshape(7 * 16, 3 * H).astype(jnp.bfloat16)
    ms_b = add_vec(jnp.concatenate([b3, b5, b7]))              # branch biases (no BN)

    # ResNet1D blocks: (3H->2H), (2H->2H), (2H->H), (H->H), stride=1.
    channels = [(3 * H, 2 * H), (2 * H, 2 * H), (2 * H, H), (H, H)]
    blocks, vblocks = [], []
    for cin, cout in channels:
        c1 = wconv(3, cin, cout).astype(jnp.bfloat16)
        c1_s, c1_b = bn_fold(bias(cout))
        c2 = wconv(3, cout, cout).astype(jnp.bfloat16)
        c2_s, c2_b = bn_fold(bias(cout))
        blk = {"c1": c1, "c2": c2, "sc": None}
        vblk = {"c1_s": c1_s, "c1_b": c1_b, "c2_s": c2_s, "c2_b": c2_b}
        if cin != cout:                                        # 1x1 conv + BN shortcut
            blk["sc"] = wconv(1, cin, cout)[0].astype(jnp.bfloat16)
            vblk["sc_s"], vblk["sc_b"] = bn_fold(bias(cout))
        blocks.append(blk)
        vblocks.append(vblk)

    bpa_w1 = wconv(1, H, H // 2)[0].astype(jnp.bfloat16)
    bpa_b1 = add_vec(bias(H // 2))
    bpa_w2 = wconv(1, H // 2, H)[0].astype(jnp.bfloat16)
    bpa_b2 = add_vec(bias(H))

    pad_rows = (-len(vec_rows)) % 8                            # sublane-align the table
    vecs = jnp.stack(vec_rows + [jnp.zeros((128,), jnp.float32)] * pad_rows)

    return {
        "hidden": H,
        "channels": channels,
        "msw": msw,
        "blocks": blocks,
        "bpa_w1": bpa_w1,
        "bpa_w2": bpa_w2,
        "vecs": vecs,                                          # (R, 128) f32 table
        "vidx": {"ms_b": ms_b, "blocks": vblocks,
                 "bpa_b1": bpa_b1, "bpa_b2": bpa_b2},
    }


# -------------------------------- forward -----------------------------------

def local_feature_forward(params, x_ncl, *, block_batch=None):
    """LocalFeatureModule.forward as one fused Pallas kernel.

    x_ncl: (B, 16, L) float, PyTorch NCL layout.  Returns (B, hidden) f32.
    """
    B, cin, L = x_ncl.shape
    assert cin == 16, "LocalFeatureModule hardcodes 16 input channels"
    H = params["hidden"]
    K, PAD = 7, 3

    # Batch tile: BT*L matmul rows per grid step; multiple of 8 keeps blocks
    # sublane-aligned.  Real batch sizes yield >= 2 grid steps so v7x's two
    # TensorCores both get work; VMEM footprint (<1 MiB) fits every generation.
    if B <= 8:
        BT = B
    else:
        BT = 8 * max(1, min((block_batch or 32) // 8, B // 8))
    Bp = -(-B // BT) * BT

    # Host prep (tiny): NCL -> NLC, bf16, im2col the 7 merged-conv taps so the
    # multi-scale stage is a single (BT*L,112)@(112,96) MXU contraction.
    x = jnp.transpose(x_ncl, (0, 2, 1)).astype(jnp.bfloat16)           # (B, L, 16)
    if Bp != B:
        x = jnp.pad(x, ((0, Bp - B), (0, 0), (0, 0)))
    xpad = jnp.pad(x, ((0, 0), (PAD, PAD), (0, 0)))                     # (Bp, L+6, 16)
    xim = jnp.concatenate([xpad[:, t:t + L, :] for t in range(K)], axis=-1)  # (Bp, L, 112)

    # Ordered weight list (must match the kernel's pop order).
    wlist = [params["msw"]]
    has_sc = []
    for blk in params["blocks"]:
        wlist += [blk["c1"], blk["c2"]]
        has_sc.append(blk["sc"] is not None)
        if blk["sc"] is not None:
            wlist.append(blk["sc"])
    wlist += [params["bpa_w1"], params["bpa_w2"]]

    def const_spec(a):
        nd = a.ndim
        return pl.BlockSpec(a.shape, lambda b, _nd=nd: (0,) * _nd)

    kernel = make_kernel(L=L, BT=BT, H=H, channels=params["channels"],
                         has_sc=has_sc, vidx=params["vidx"])

    out = pl.pallas_call(
        kernel,
        out_shape=jax.ShapeDtypeStruct((Bp, H), jnp.float32),
        grid=(Bp // BT,),
        in_specs=[pl.BlockSpec((BT, L, 16 * K), lambda b: (b, 0, 0)),
                  const_spec(params["vecs"])] + [const_spec(w) for w in wlist],
        out_specs=pl.BlockSpec((BT, H), lambda b: (b, 0)),
        scratch_shapes=[pltpu.VMEM((BT, L + 2, 3 * H), jnp.bfloat16)],  # padded conv scratch
        compiler_params=pltpu.CompilerParams(
            dimension_semantics=("parallel",)),   # batch tiles split across TCs (v7x)
    )(xim, params["vecs"], *wlist)
    return out[:B]                                # (B, hidden_dim)


# --------------------------------- main --------------------------------------

if __name__ == "__main__":
    key = jax.random.PRNGKey(0)
    pkey, xkey = jax.random.split(key)

    hidden = 32
    B, Cin, L = 2, 16, 16                          # module hardcodes 16 in-channels
    params = init_params(pkey, hidden=hidden)
    x = jax.random.normal(xkey, (B, Cin, L), jnp.float32)   # NCL like PyTorch

    out = local_feature_forward(params, x)
    out = jax.block_until_ready(out)
    assert out.shape == (B, hidden), out.shape
    assert bool(jnp.all(jnp.isfinite(out)))
    print("KERNEL_OK")
</pallas_src>

<mosaic_0001>
module attributes {stable_mosaic.version = 11 : i64} {
  func.func @kernel(%arg0: i32, %arg1: memref<2x16x112xbf16, #tpu.memory_space<vmem>>, %arg2: memref<24x128xf32, #tpu.memory_space<vmem>>, %arg3: memref<112x96xbf16, #tpu.memory_space<vmem>>, %arg4: memref<3x96x64xbf16, #tpu.memory_space<vmem>>, %arg5: memref<3x64x64xbf16, #tpu.memory_space<vmem>>, %arg6: memref<96x64xbf16, #tpu.memory_space<vmem>>, %arg7: memref<3x64x64xbf16, #tpu.memory_space<vmem>>, %arg8: memref<3x64x64xbf16, #tpu.memory_space<vmem>>, %arg9: memref<3x64x32xbf16, #tpu.memory_space<vmem>>, %arg10: memref<3x32x32xbf16, #tpu.memory_space<vmem>>, %arg11: memref<64x32xbf16, #tpu.memory_space<vmem>>, %arg12: memref<3x32x32xbf16, #tpu.memory_space<vmem>>, %arg13: memref<3x32x32xbf16, #tpu.memory_space<vmem>>, %arg14: memref<32x16xbf16, #tpu.memory_space<vmem>>, %arg15: memref<16x32xbf16, #tpu.memory_space<vmem>>, %arg16: memref<2x32xf32, #tpu.memory_space<vmem>>, %arg17: memref<2x18x96xbf16, #tpu.memory_space<vmem>>) attributes {dimension_semantics = [#tpu.dimension_semantics<parallel>], iteration_bounds = array<i64: 1>, scalar_prefetch = 0 : i64, scratch_operands = 1 : i64, tpu.core_type = #tpu.core_type<tc>, window_params = [{transform_indices = @transform_0, window_bounds = array<i64: 2, 16, 112>}, {pipeline_mode = #tpu.pipeline_mode<synchronous>, transform_indices = @transform_1, window_bounds = array<i64: 24, 128>}, {pipeline_mode = #tpu.pipeline_mode<synchronous>, transform_indices = @transform_2, window_bounds = array<i64: 112, 96>}, {pipeline_mode = #tpu.pipeline_mode<synchronous>, transform_indices = @transform_3, window_bounds = array<i64: 3, 96, 64>}, {pipeline_mode = #tpu.pipeline_mode<synchronous>, transform_indices = @transform_4, window_bounds = array<i64: 3, 64, 64>}, {pipeline_mode = #tpu.pipeline_mode<synchronous>, transform_indices = @transform_5, window_bounds = array<i64: 96, 64>}, {pipeline_mode = #tpu.pipeline_mode<synchronous>, transform_indices = @transform_6, window_bounds = array<i64: 3, 64, 64>}, {pipeline_mode = #tpu.pipeline_mode<synchronous>, transform_indices = @transform_7, window_bounds = array<i64: 3, 64, 64>}, {pipeline_mode = #tpu.pipeline_mode<synchronous>, transform_indices = @transform_8, window_bounds = array<i64: 3, 64, 32>}, {pipeline_mode = #tpu.pipeline_mode<synchronous>, transform_indices = @transform_9, window_bounds = array<i64: 3, 32, 32>}, {pipeline_mode = #tpu.pipeline_mode<synchronous>, transform_indices = @transform_10, window_bounds = array<i64: 64, 32>}, {pipeline_mode = #tpu.pipeline_mode<synchronous>, transform_indices = @transform_11, window_bounds = array<i64: 3, 32, 32>}, {pipeline_mode = #tpu.pipeline_mode<synchronous>, transform_indices = @transform_12, window_bounds = array<i64: 3, 32, 32>}, {pipeline_mode = #tpu.pipeline_mode<synchronous>, transform_indices = @transform_13, window_bounds = array<i64: 32, 16>}, {pipeline_mode = #tpu.pipeline_mode<synchronous>, transform_indices = @transform_14, window_bounds = array<i64: 16, 32>}, {transform_indices = @transform_15, window_bounds = array<i64: 2, 32>}]} {
    %cst = arith.constant 0.000000e+00 : bf16
    %0 = vector.broadcast %cst : bf16 to vector<2x18x96xbf16>
    %c0 = arith.constant 0 : index
    %c0_0 = arith.constant 0 : index
    %c0_1 = arith.constant 0 : index
    %1 = vector.load %arg17[%c0, %c0_0, %c0_1] : memref<2x18x96xbf16, #tpu.memory_space<vmem>>, vector<2x18x96xbf16>
    tpu.vector_store %arg17[%c0, %c0_0, %c0_1], %0 {strides = array<i32>} : memref<2x18x96xbf16, #tpu.memory_space<vmem>>, vector<2x18x96xbf16>,
    %c0_2 = arith.constant 0 : index
    %c0_3 = arith.constant 0 : index
    %c0_4 = arith.constant 0 : index
    %2 = vector.load %arg1[%c0_2, %c0_3, %c0_4] : memref<2x16x112xbf16, #tpu.memory_space<vmem>>, vector<2x16x112xbf16>
    %3 = vector.shape_cast %2 : vector<2x16x112xbf16> to vector<32x112xbf16>
    %c0_5 = arith.constant 0 : index
    %c0_6 = arith.constant 0 : index
    %4 = vector.load %arg3[%c0_5, %c0_6] : memref<112x96xbf16, #tpu.memory_space<vmem>>, vector<112x96xbf16>
    %cst_7 = arith.constant dense<0.000000e+00> : vector<32x96xf32>
    %5 = tpu.matmul %3, %4, %cst_7 {dimension_numbers = #tpu.dot_dimension_numbers<[1], [0], [0], [1], [0, 0, 1, 1], [], []>} : vector<32x112xbf16>, vector<112x96xbf16>, vector<32x96xf32> -> vector<32x96xf32>
    %c0_8 = arith.constant 0 : index
    %c0_9 = arith.constant 0 : index
    %6 = vector.load %arg2[%c0_8, %c0_9] : memref<24x128xf32, #tpu.memory_space<vmem>>, vector<1x96xf32>
    %7 = vector.broadcast %6 : vector<1x96xf32> to vector<32x96xf32>
    %8 = arith.addf %5, %7 : vector<32x96xf32>
    %cst_10 = arith.constant 0.000000e+00 : f32
    %9 = vector.broadcast %cst_10 : f32 to vector<32x96xf32>
    %10 = arith.maximumf %8, %9 : vector<32x96xf32>
    %11 = arith.truncf %10 : vector<32x96xf32> to vector<32x96xbf16>
    %c1 = arith.constant 1 : index
    %c0_11 = arith.constant 0 : index
    %12 = vector.load %arg2[%c1, %c0_11] : memref<24x128xf32, #tpu.memory_space<vmem>>, vector<1x64xf32>
    %c2 = arith.constant 2 : index
    %c0_12 = arith.constant 0 : index
    %13 = vector.load %arg2[%c2, %c0_12] : memref<24x128xf32, #tpu.memory_space<vmem>>, vector<1x64xf32>
    %14 = vector.shape_cast %11 : vector<32x96xbf16> to vector<2x16x96xbf16>
    %c0_13 = arith.constant 0 : index
    %c1_14 = arith.constant 1 : index
    %c0_15 = arith.constant 0 : index
    %15 = vector.load %arg17[%c0_13, %c1_14, %c0_15] : memref<2x18x96xbf16, #tpu.memory_space<vmem>>, vector<2x16x96xbf16>
    tpu.vector_store %arg17[%c0_13, %c1_14, %c0_15], %14 {strides = array<i32>} : memref<2x18x96xbf16, #tpu.memory_space<vmem>>, vector<2x16x96xbf16>,
    %c0_16 = arith.constant 0 : index
    %c0_17 = arith.constant 0 : index
    %c0_18 = arith.constant 0 : index
    %16 = vector.load %arg17[%c0_16, %c0_17, %c0_18] : memref<2x18x96xbf16, #tpu.memory_space<vmem>>, vector<2x18x96xbf16>
    %17 = vector.extract_strided_slice %16 {offsets = [0, 0, 0], sizes = [2, 16, 96], strides = [1, 1, 1]} : vector<2x18x96xbf16> to vector<2x16x96xbf16>
    %18 = vector.shape_cast %17 : vector<2x16x96xbf16> to vector<32x96xbf16>
    %c0_19 = arith.constant 0 : index
    %c0_20 = arith.constant 0 : index
    %c0_21 = arith.constant 0 : index
    %19 = vector.load %arg4[%c0_19, %c0_20, %c0_21] : memref<3x96x64xbf16, #tpu.memory_space<vmem>>, vector<1x96x64xbf16>
    %20 = vector.shape_cast %19 : vector<1x96x64xbf16> to vector<96x64xbf16>
    %cst_22 = arith.constant dense<0.000000e+00> : vector<32x64xf32>
    %21 = tpu.matmul %18, %20, %cst_22 {dimension_numbers = #tpu.dot_dimension_numbers<[1], [0], [0], [1], [0, 0, 1, 1], [], []>} : vector<32x96xbf16>, vector<96x64xbf16>, vector<32x64xf32> -> vector<32x64xf32>
    %22 = vector.extract_strided_slice %16 {offsets = [0, 1, 0], sizes = [2, 16, 96], strides = [1, 1, 1]} : vector<2x18x96xbf16> to vector<2x16x96xbf16>
    %23 = vector.shape_cast %22 : vector<2x16x96xbf16> to vector<32x96xbf16>
    %c1_23 = arith.constant 1 : index
    %c0_24 = arith.constant 0 : index
    %c0_25 = arith.constant 0 : index
    %24 = vector.load %arg4[%c1_23, %c0_24, %c0_25] : memref<3x96x64xbf16, #tpu.memory_space<vmem>>, vector<1x96x64xbf16>
    %25 = vector.shape_cast %24 : vector<1x96x64xbf16> to vector<96x64xbf16>
    %cst_26 = arith.constant dense<0.000000e+00> : vector<32x64xf32>
    %26 = tpu.matmul %23, %25, %cst_26 {dimension_numbers = #tpu.dot_dimension_numbers<[1], [0], [0], [1], [0, 0, 1, 1], [], []>} : vector<32x96xbf16>, vector<96x64xbf16>, vector<32x64xf32> -> vector<32x64xf32>
    %27 = arith.addf %21, %26 : vector<32x64xf32>
    %28 = vector.extract_strided_slice %16 {offsets = [0, 2, 0], sizes = [2, 16, 96], strides = [1, 1, 1]} : vector<2x18x96xbf16> to vector<2x16x96xbf16>
    %29 = vector.shape_cast %28 : vector<2x16x96xbf16> to vector<32x96xbf16>
    %c2_27 = arith.constant 2 : index
    %c0_28 = arith.constant 0 : index
    %c0_29 = arith.constant 0 : index
    %30 = vector.load %arg4[%c2_27, %c0_28, %c0_29] : memref<3x96x64xbf16, #tpu.memory_space<vmem>>, vector<1x96x64xbf16>
    %31 = vector.shape_cast %30 : vector<1x96x64xbf16> to vector<96x64xbf16>
    %cst_30 = arith.constant dense<0.000000e+00> : vector<32x64xf32>
    %32 = tpu.matmul %29, %31, %cst_30 {dimension_numbers = #tpu.dot_dimension_numbers<[1], [0], [0], [1], [0, 0, 1, 1], [], []>} : vector<32x96xbf16>, vector<96x64xbf16>, vector<32x64xf32> -> vector<32x64xf32>
    %33 = arith.addf %27, %32 : vector<32x64xf32>
    %34 = vector.broadcast %12 : vector<1x64xf32> to vector<32x64xf32>
    %35 = arith.mulf %33, %34 : vector<32x64xf32>
    %36 = vector.broadcast %13 : vector<1x64xf32> to vector<32x64xf32>
    %37 = arith.addf %35, %36 : vector<32x64xf32>
    %cst_31 = arith.constant 0.000000e+00 : f32
    %38 = vector.broadcast %cst_31 : f32 to vector<32x64xf32>
    %39 = arith.maximumf %37, %38 : vector<32x64xf32>
    %c0_32 = arith.constant 0 : index
    %c0_33 = arith.constant 0 : index
    %40 = vector.load %arg6[%c0_32, %c0_33] : memref<96x64xbf16, #tpu.memory_space<vmem>>, vector<96x64xbf16>
    %cst_34 = arith.constant dense<0.000000e+00> : vector<32x64xf32>
    %41 = tpu.matmul %11, %40, %cst_34 {dimension_numbers = #tpu.dot_dimension_numbers<[1], [0], [0], [1], [0, 0, 1, 1], [], []>} : vector<32x96xbf16>, vector<96x64xbf16>, vector<32x64xf32> -> vector<32x64xf32>
    %c5 = arith.constant 5 : index
    %c0_35 = arith.constant 0 : index
    %42 = vector.load %arg2[%c5, %c0_35] : memref<24x128xf32, #tpu.memory_space<vmem>>, vector<1x64xf32>
    %43 = vector.broadcast %42 : vector<1x64xf32> to vector<32x64xf32>
    %44 = arith.mulf %41, %43 : vector<32x64xf32>
    %c6 = arith.constant 6 : index
    %c0_36 = arith.constant 0 : index
    %45 = vector.load %arg2[%c6, %c0_36] : memref<24x128xf32, #tpu.memory_space<vmem>>, vector<1x64xf32>
    %46 = vector.broadcast %45 : vector<1x64xf32> to vector<32x64xf32>
    %47 = arith.addf %44, %46 : vector<32x64xf32>
    %48 = arith.truncf %39 : vector<32x64xf32> to vector<32x64xbf16>
    %c3 = arith.constant 3 : index
    %c0_37 = arith.constant 0 : index
    %49 = vector.load %arg2[%c3, %c0_37] : memref<24x128xf32, #tpu.memory_space<vmem>>, vector<1x64xf32>
    %c4 = arith.constant 4 : index
    %c0_38 = arith.constant 0 : index
    %50 = vector.load %arg2[%c4, %c0_38] : memref<24x128xf32, #tpu.memory_space<vmem>>, vector<1x64xf32>
    %51 = vector.shape_cast %48 : vector<32x64xbf16> to vector<2x16x64xbf16>
    %c0_39 = arith.constant 0 : index
    %c1_40 = arith.constant 1 : index
    %c0_41 = arith.constant 0 : index
    %52 = vector.load %arg17[%c0_39, %c1_40, %c0_41] : memref<2x18x96xbf16, #tpu.memory_space<vmem>>, vector<2x16x64xbf16>
    tpu.vector_store %arg17[%c0_39, %c1_40, %c0_41], %51 {strides = array<i32>} : memref<2x18x96xbf16, #tpu.memory_space<vmem>>, vector<2x16x64xbf16>,
    %c0_42 = arith.constant 0 : index
    %c0_43 = arith.constant 0 : index
    %c0_44 = arith.constant 0 : index
    %53 = vector.load %arg17[%c0_42, %c0_43, %c0_44] : memref<2x18x96xbf16, #tpu.memory_space<vmem>>, vector<2x18x64xbf16>
    %54 = vector.extract_strided_slice %53 {offsets = [0, 0, 0], sizes = [2, 16, 64], strides = [1, 1, 1]} : vector<2x18x64xbf16> to vector<2x16x64xbf16>
    %55 = vector.shape_cast %54 : vector<2x16x64xbf16> to vector<32x64xbf16>
    %c0_45 = arith.constant 0 : index
    %c0_46 = arith.constant 0 : index
    %c0_47 = arith.constant 0 : index
    %56 = vector.load %arg5[%c0_45, %c0_46, %c0_47] : memref<3x64x64xbf16, #tpu.memory_space<vmem>>, vector<1x64x64xbf16>
    %57 = vector.shape_cast %56 : vector<1x64x64xbf16> to vector<64x64xbf16>
    %cst_48 = arith.constant dense<0.000000e+00> : vector<32x64xf32>
    %58 = tpu.matmul %55, %57, %cst_48 {dimension_numbers = #tpu.dot_dimension_numbers<[1], [0], [0], [1], [0, 0, 1, 1], [], []>} : vector<32x64xbf16>, vector<64x64xbf16>, vector<32x64xf32> -> vector<32x64xf32>
    %59 = vector.extract_strided_slice %53 {offsets = [0, 1, 0], sizes = [2, 16, 64], strides = [1, 1, 1]} : vector<2x18x64xbf16> to vector<2x16x64xbf16>
    %60 = vector.shape_cast %59 : vector<2x16x64xbf16> to vector<32x64xbf16>
    %c1_49 = arith.constant 1 : index
    %c0_50 = arith.constant 0 : index
    %c0_51 = arith.constant 0 : index
    %61 = vector.load %arg5[%c1_49, %c0_50, %c0_51] : memref<3x64x64xbf16, #tpu.memory_space<vmem>>, vector<1x64x64xbf16>
    %62 = vector.shape_cast %61 : vector<1x64x64xbf16> to vector<64x64xbf16>
    %cst_52 = arith.constant dense<0.000000e+00> : vector<32x64xf32>
    %63 = tpu.matmul %60, %62, %cst_52 {dimension_numbers = #tpu.dot_dimension_numbers<[1], [0], [0], [1], [0, 0, 1, 1], [], []>} : vector<32x64xbf16>, vector<64x64xbf16>, vector<32x64xf32> -> vector<32x64xf32>
    %64 = arith.addf %58, %63 : vector<32x64xf32>
    %65 = vector.extract_strided_slice %53 {offsets = [0, 2, 0], sizes = [2, 16, 64], strides = [1, 1, 1]} : vector<2x18x64xbf16> to vector<2x16x64xbf16>
    %66 = vector.shape_cast %65 : vector<2x16x64xbf16> to vector<32x64xbf16>
    %c2_53 = arith.constant 2 : index
    %c0_54 = arith.constant 0 : index
    %c0_55 = arith.constant 0 : index
    %67 = vector.load %arg5[%c2_53, %c0_54, %c0_55] : memref<3x64x64xbf16, #tpu.memory_space<vmem>>, vector<1x64x64xbf16>
    %68 = vector.shape_cast %67 : vector<1x64x64xbf16> to vector<64x64xbf16>
    %cst_56 = arith.constant dense<0.000000e+00> : vector<32x64xf32>
    %69 = tpu.matmul %66, %68, %cst_56 {dimension_numbers = #tpu.dot_dimension_numbers<[1], [0], [0], [1], [0, 0, 1, 1], [], []>} : vector<32x64xbf16>, vector<64x64xbf16>, vector<32x64xf32> -> vector<32x64xf32>
    %70 = arith.addf %64, %69 : vector<32x64xf32>
    %71 = vector.broadcast %49 : vector<1x64xf32> to vector<32x64xf32>
    %72 = arith.mulf %70, %71 : vector<32x64xf32>
    %73 = vector.broadcast %50 : vector<1x64xf32> to vector<32x64xf32>
    %74 = arith.addf %72, %73 : vector<32x64xf32>
    %75 = arith.addf %74, %47 : vector<32x64xf32>
    %cst_57 = arith.constant 0.000000e+00 : f32
    %76 = vector.broadcast %cst_57 : f32 to vector<32x64xf32>
    %77 = arith.maximumf %75, %76 : vector<32x64xf32>
    %78 = arith.truncf %77 : vector<32x64xf32> to vector<32x64xbf16>
    %c7 = arith.constant 7 : index
    %c0_58 = arith.constant 0 : index
    %79 = vector.load %arg2[%c7, %c0_58] : memref<24x128xf32, #tpu.memory_space<vmem>>, vector<1x64xf32>
    %c8 = arith.constant 8 : index
    %c0_59 = arith.constant 0 : index
    %80 = vector.load %arg2[%c8, %c0_59] : memref<24x128xf32, #tpu.memory_space<vmem>>, vector<1x64xf32>
    %81 = vector.shape_cast %78 : vector<32x64xbf16> to vector<2x16x64xbf16>
    %c0_60 = arith.constant 0 : index
    %c1_61 = arith.constant 1 : index
    %c0_62 = arith.constant 0 : index
    %82 = vector.load %arg17[%c0_60, %c1_61, %c0_62] : memref<2x18x96xbf16, #tpu.memory_space<vmem>>, vector<2x16x64xbf16>
    tpu.vector_store %arg17[%c0_60, %c1_61, %c0_62], %81 {strides = array<i32>} : memref<2x18x96xbf16, #tpu.memory_space<vmem>>, vector<2x16x64xbf16>,
    %c0_63 = arith.constant 0 : index
    %c0_64 = arith.constant 0 : index
    %c0_65 = arith.constant 0 : index
    %83 = vector.load %arg17[%c0_63, %c0_64, %c0_65] : memref<2x18x96xbf16, #tpu.memory_space<vmem>>, vector<2x18x64xbf16>
    %84 = vector.extract_strided_slice %83 {offsets = [0, 0, 0], sizes = [2, 16, 64], strides = [1, 1, 1]} : vector<2x18x64xbf16> to vector<2x16x64xbf16>
    %85 = vector.shape_cast %84 : vector<2x16x64xbf16> to vector<32x64xbf16>
    %c0_66 = arith.constant 0 : index
    %c0_67 = arith.constant 0 : index
    %c0_68 = arith.constant 0 : index
    %86 = vector.load %arg7[%c0_66, %c0_67, %c0_68] : memref<3x64x64xbf16, #tpu.memory_space<vmem>>, vector<1x64x64xbf16>
    %87 = vector.shape_cast %86 : vector<1x64x64xbf16> to vector<64x64xbf16>
    %cst_69 = arith.constant dense<0.000000e+00> : vector<32x64xf32>
    %88 = tpu.matmul %85, %87, %cst_69 {dimension_numbers = #tpu.dot_dimension_numbers<[1], [0], [0], [1], [0, 0, 1, 1], [], []>} : vector<32x64xbf16>, vector<64x64xbf16>, vector<32x64xf32> -> vector<32x64xf32>
    %89 = vector.extract_strided_slice %83 {offsets = [0, 1, 0], sizes = [2, 16, 64], strides = [1, 1, 1]} : vector<2x18x64xbf16> to vector<2x16x64xbf16>
    %90 = vector.shape_cast %89 : vector<2x16x64xbf16> to vector<32x64xbf16>
    %c1_70 = arith.constant 1 : index
    %c0_71 = arith.constant 0 : index
    %c0_72 = arith.constant 0 : index
    %91 = vector.load %arg7[%c1_70, %c0_71, %c0_72] : memref<3x64x64xbf16, #tpu.memory_space<vmem>>, vector<1x64x64xbf16>
    %92 = vector.shape_cast %91 : vector<1x64x64xbf16> to vector<64x64xbf16>
    %cst_73 = arith.constant dense<0.000000e+00> : vector<32x64xf32>
    %93 = tpu.matmul %90, %92, %cst_73 {dimension_numbers = #tpu.dot_dimension_numbers<[1], [0], [0], [1], [0, 0, 1, 1], [], []>} : vector<32x64xbf16>, vector<64x64xbf16>, vector<32x64xf32> -> vector<32x64xf32>
    %94 = arith.addf %88, %93 : vector<32x64xf32>
    %95 = vector.extract_strided_slice %83 {offsets = [0, 2, 0], sizes = [2, 16, 64], strides = [1, 1, 1]} : vector<2x18x64xbf16> to vector<2x16x64xbf16>
    %96 = vector.shape_cast %95 : vector<2x16x64xbf16> to vector<32x64xbf16>
    %c2_74 = arith.constant 2 : index
    %c0_75 = arith.constant 0 : index
    %c0_76 = arith.constant 0 : index
    %97 = vector.load %arg7[%c2_74, %c0_75, %c0_76] : memref<3x64x64xbf16, #tpu.memory_space<vmem>>, vector<1x64x64xbf16>
    %98 = vector.shape_cast %97 : vector<1x64x64xbf16> to vector<64x64xbf16>
    %cst_77 = arith.constant dense<0.000000e+00> : vector<32x64xf32>
    %99 = tpu.matmul %96, %98, %cst_77 {dimension_numbers = #tpu.dot_dimension_numbers<[1], [0], [0], [1], [0, 0, 1, 1], [], []>} : vector<32x64xbf16>, vector<64x64xbf16>, vector<32x64xf32> -> vector<32x64xf32>
    %100 = arith.addf %94, %99 : vector<32x64xf32>
    %101 = vector.broadcast %79 : vector<1x64xf32> to vector<32x64xf32>
    %102 = arith.mulf %100, %101 : vector<32x64xf32>
    %103 = vector.broadcast %80 : vector<1x64xf32> to vector<32x64xf32>
    %104 = arith.addf %102, %103 : vector<32x64xf32>
    %cst_78 = arith.constant 0.000000e+00 : f32
    %105 = vector.broadcast %cst_78 : f32 to vector<32x64xf32>
    %106 = arith.maximumf %104, %105 : vector<32x64xf32>
    %107 = arith.truncf %106 : vector<32x64xf32> to vector<32x64xbf16>
    %c9 = arith.constant 9 : index
    %c0_79 = arith.constant 0 : index
    %108 = vector.load %arg2[%c9, %c0_79] : memref<24x128xf32, #tpu.memory_space<vmem>>, vector<1x64xf32>
    %c10 = arith.constant 10 : index
    %c0_80 = arith.constant 0 : index
    %109 = vector.load %arg2[%c10, %c0_80] : memref<24x128xf32, #tpu.memory_space<vmem>>, vector<1x64xf32>
    %110 = vector.shape_cast %107 : vector<32x64xbf16> to vector<2x16x64xbf16>
    %c0_81 = arith.constant 0 : index
    %c1_82 = arith.constant 1 : index
    %c0_83 = arith.constant 0 : index
    %111 = vector.load %arg17[%c0_81, %c1_82, %c0_83] : memref<2x18x96xbf16, #tpu.memory_space<vmem>>, vector<2x16x64xbf16>
    tpu.vector_store %arg17[%c0_81, %c1_82, %c0_83], %110 {strides = array<i32>} : memref<2x18x96xbf16, #tpu.memory_space<vmem>>, vector<2x16x64xbf16>,
    %c0_84 = arith.constant 0 : index
    %c0_85 = arith.constant 0 : index
    %c0_86 = arith.constant 0 : index
    %112 = vector.load %arg17[%c0_84, %c0_85, %c0_86] : memref<2x18x96xbf16, #tpu.memory_space<vmem>>, vector<2x18x64xbf16>
    %113 = vector.extract_strided_slice %112 {offsets = [0, 0, 0], sizes = [2, 16, 64], strides = [1, 1, 1]} : vector<2x18x64xbf16> to vector<2x16x64xbf16>
    %114 = vector.shape_cast %113 : vector<2x16x64xbf16> to vector<32x64xbf16>
    %c0_87 = arith.constant 0 : index
    %c0_88 = arith.constant 0 : index
    %c0_89 = arith.constant 0 : index
    %115 = vector.load %arg8[%c0_87, %c0_88, %c0_89] : memref<3x64x64xbf16, #tpu.memory_space<vmem>>, vector<1x64x64xbf16>
    %116 = vector.shape_cast %115 : vector<1x64x64xbf16> to vector<64x64xbf16>
    %cst_90 = arith.constant dense<0.000000e+00> : vector<32x64xf32>
    %117 = tpu.matmul %114, %116, %cst_90 {dimension_numbers = #tpu.dot_dimension_numbers<[1], [0], [0], [1], [0, 0, 1, 1], [], []>} : vector<32x64xbf16>, vector<64x64xbf16>, vector<32x64xf32> -> vector<32x64xf32>
    %118 = vector.extract_strided_slice %112 {offsets = [0, 1, 0], sizes = [2, 16, 64], strides = [1, 1, 1]} : vector<2x18x64xbf16> to vector<2x16x64xbf16>
    %119 = vector.shape_cast %118 : vector<2x16x64xbf16> to vector<32x64xbf16>
    %c1_91 = arith.constant 1 : index
    %c0_92 = arith.constant 0 : index
    %c0_93 = arith.constant 0 : index
    %120 = vector.load %arg8[%c1_91, %c0_92, %c0_93] : memref<3x64x64xbf16, #tpu.memory_space<vmem>>, vector<1x64x64xbf16>
    %121 = vector.shape_cast %120 : vector<1x64x64xbf16> to vector<64x64xbf16>
    %cst_94 = arith.constant dense<0.000000e+00> : vector<32x64xf32>
    %122 = tpu.matmul %119, %121, %cst_94 {dimension_numbers = #tpu.dot_dimension_numbers<[1], [0], [0], [1], [0, 0, 1, 1], [], []>} : vector<32x64xbf16>, vector<64x64xbf16>, vector<32x64xf32> -> vector<32x64xf32>
    %123 = arith.addf %117, %122 : vector<32x64xf32>
    %124 = vector.extract_strided_slice %112 {offsets = [0, 2, 0], sizes = [2, 16, 64], strides = [1, 1, 1]} : vector<2x18x64xbf16> to vector<2x16x64xbf16>
    %125 = vector.shape_cast %124 : vector<2x16x64xbf16> to vector<32x64xbf16>
    %c2_95 = arith.constant 2 : index
    %c0_96 = arith.constant 0 : index
    %c0_97 = arith.constant 0 : index
    %126 = vector.load %arg8[%c2_95, %c0_96, %c0_97] : memref<3x64x64xbf16, #tpu.memory_space<vmem>>, vector<1x64x64xbf16>
    %127 = vector.shape_cast %126 : vector<1x64x64xbf16> to vector<64x64xbf16>
    %cst_98 = arith.constant dense<0.000000e+00> : vector<32x64xf32>
    %128 = tpu.matmul %125, %127, %cst_98 {dimension_numbers = #tpu.dot_dimension_numbers<[1], [0], [0], [1], [0, 0, 1, 1], [], []>} : vector<32x64xbf16>, vector<64x64xbf16>, vector<32x64xf32> -> vector<32x64xf32>
    %129 = arith.addf %123, %128 : vector<32x64xf32>
    %130 = vector.broadcast %108 : vector<1x64xf32> to vector<32x64xf32>
    %131 = arith.mulf %129, %130 : vector<32x64xf32>
    %132 = vector.broadcast %109 : vector<1x64xf32> to vector<32x64xf32>
    %133 = arith.addf %131, %132 : vector<32x64xf32>
    %134 = arith.addf %133, %77 : vector<32x64xf32>
    %cst_99 = arith.constant 0.000000e+00 : f32
    %135 = vector.broadcast %cst_99 : f32 to vector<32x64xf32>
    %136 = arith.maximumf %134, %135 : vector<32x64xf32>
    %137 = arith.truncf %136 : vector<32x64xf32> to vector<32x64xbf16>
    %c11 = arith.constant 11 : index
    %c0_100 = arith.constant 0 : index
    %138 = vector.load %arg2[%c11, %c0_100] : memref<24x128xf32, #tpu.memory_space<vmem>>, vector<1x32xf32>
    %c12 = arith.constant 12 : index
    %c0_101 = arith.constant 0 : index
    %139 = vector.load %arg2[%c12, %c0_101] : memref<24x128xf32, #tpu.memory_space<vmem>>, vector<1x32xf32>
    %140 = vector.shape_cast %137 : vector<32x64xbf16> to vector<2x16x64xbf16>
    %c0_102 = arith.constant 0 : index
    %c1_103 = arith.constant 1 : index
    %c0_104 = arith.constant 0 : index
    %141 = vector.load %arg17[%c0_102, %c1_103, %c0_104] : memref<2x18x96xbf16, #tpu.memory_space<vmem>>, vector<2x16x64xbf16>
    tpu.vector_store %arg17[%c0_102, %c1_103, %c0_104], %140 {strides = array<i32>} : memref<2x18x96xbf16, #tpu.memory_space<vmem>>, vector<2x16x64xbf16>,
    %c0_105 = arith.constant 0 : index
    %c0_106 = arith.constant 0 : index
    %c0_107 = arith.constant 0 : index
    %142 = vector.load %arg17[%c0_105, %c0_106, %c0_107] : memref<2x18x96xbf16, #tpu.memory_space<vmem>>, vector<2x18x64xbf16>
    %143 = vector.extract_strided_slice %142 {offsets = [0, 0, 0], sizes = [2, 16, 64], strides = [1, 1, 1]} : vector<2x18x64xbf16> to vector<2x16x64xbf16>
    %144 = vector.shape_cast %143 : vector<2x16x64xbf16> to vector<32x64xbf16>
    %c0_108 = arith.constant 0 : index
    %c0_109 = arith.constant 0 : index
    %c0_110 = arith.constant 0 : index
    %145 = vector.load %arg9[%c0_108, %c0_109, %c0_110] : memref<3x64x32xbf16, #tpu.memory_space<vmem>>, vector<1x64x32xbf16>
    %146 = vector.shape_cast %145 : vector<1x64x32xbf16> to vector<64x32xbf16>
    %cst_111 = arith.constant dense<0.000000e+00> : vector<32x32xf32>
    %147 = tpu.matmul %144, %146, %cst_111 {dimension_numbers = #tpu.dot_dimension_numbers<[1], [0], [0], [1], [0, 0, 1, 1], [], []>} : vector<32x64xbf16>, vector<64x32xbf16>, vector<32x32xf32> -> vector<32x32xf32>
    %148 = vector.extract_strided_slice %142 {offsets = [0, 1, 0], sizes = [2, 16, 64], strides = [1, 1, 1]} : vector<2x18x64xbf16> to vector<2x16x64xbf16>
    %149 = vector.shape_cast %148 : vector<2x16x64xbf16> to vector<32x64xbf16>
    %c1_112 = arith.constant 1 : index
    %c0_113 = arith.constant 0 : index
    %c0_114 = arith.constant 0 : index
    %150 = vector.load %arg9[%c1_112, %c0_113, %c0_114] : memref<3x64x32xbf16, #tpu.memory_space<vmem>>, vector<1x64x32xbf16>
    %151 = vector.shape_cast %150 : vector<1x64x32xbf16> to vector<64x32xbf16>
    %cst_115 = arith.constant dense<0.000000e+00> : vector<32x32xf32>
    %152 = tpu.matmul %149, %151, %cst_115 {dimension_numbers = #tpu.dot_dimension_numbers<[1], [0], [0], [1], [0, 0, 1, 1], [], []>} : vector<32x64xbf16>, vector<64x32xbf16>, vector<32x32xf32> -> vector<32x32xf32>
    %153 = arith.addf %147, %152 : vector<32x32xf32>
    %154 = vector.extract_strided_slice %142 {offsets = [0, 2, 0], sizes = [2, 16, 64], strides = [1, 1, 1]} : vector<2x18x64xbf16> to vector<2x16x64xbf16>
    %155 = vector.shape_cast %154 : vector<2x16x64xbf16> to vector<32x64xbf16>
    %c2_116 = arith.constant 2 : index
    %c0_117 = arith.constant 0 : index
    %c0_118 = arith.constant 0 : index
    %156 = vector.load %arg9[%c2_116, %c0_117, %c0_118] : memref<3x64x32xbf16, #tpu.memory_space<vmem>>, vector<1x64x32xbf16>
    %157 = vector.shape_cast %156 : vector<1x64x32xbf16> to vector<64x32xbf16>
    %cst_119 = arith.constant dense<0.000000e+00> : vector<32x32xf32>
    %158 = tpu.matmul %155, %157, %cst_119 {dimension_numbers = #tpu.dot_dimension_numbers<[1], [0], [0], [1], [0, 0, 1, 1], [], []>} : vector<32x64xbf16>, vector<64x32xbf16>, vector<32x32xf32> -> vector<32x32xf32>
    %159 = arith.addf %153, %158 : vector<32x32xf32>
    %160 = vector.broadcast %138 : vector<1x32xf32> to vector<32x32xf32>
    %161 = arith.mulf %159, %160 : vector<32x32xf32>
    %162 = vector.broadcast %139 : vector<1x32xf32> to vector<32x32xf32>
    %163 = arith.addf %161, %162 : vector<32x32xf32>
    %cst_120 = arith.constant 0.000000e+00 : f32
    %164 = vector.broadcast %cst_120 : f32 to vector<32x32xf32>
    %165 = arith.maximumf %163, %164 : vector<32x32xf32>
    %c0_121 = arith.constant 0 : index
    %c0_122 = arith.constant 0 : index
    %166 = vector.load %arg11[%c0_121, %c0_122] : memref<64x32xbf16, #tpu.memory_space<vmem>>, vector<64x32xbf16>
    %cst_123 = arith.constant dense<0.000000e+00> : vector<32x32xf32>
    %167 = tpu.matmul %137, %166, %cst_123 {dimension_numbers = #tpu.dot_dimension_numbers<[1], [0], [0], [1], [0, 0, 1, 1], [], []>} : vector<32x64xbf16>, vector<64x32xbf16>, vector<32x32xf32> -> vector<32x32xf32>
    %c15 = arith.constant 15 : index
    %c0_124 = arith.constant 0 : index
    %168 = vector.load %arg2[%c15, %c0_124] : memref<24x128xf32, #tpu.memory_space<vmem>>, vector<1x32xf32>
    %169 = vector.broadcast %168 : vector<1x32xf32> to vector<32x32xf32>
    %170 = arith.mulf %167, %169 : vector<32x32xf32>
    %c16 = arith.constant 16 : index
    %c0_125 = arith.constant 0 : index
    %171 = vector.load %arg2[%c16, %c0_125] : memref<24x128xf32, #tpu.memory_space<vmem>>, vector<1x32xf32>
    %172 = vector.broadcast %171 : vector<1x32xf32> to vector<32x32xf32>
    %173 = arith.addf %170, %172 : vector<32x32xf32>
    %174 = arith.truncf %165 : vector<32x32xf32> to vector<32x32xbf16>
    %c13 = arith.constant 13 : index
    %c0_126 = arith.constant 0 : index
    %175 = vector.load %arg2[%c13, %c0_126] : memref<24x128xf32, #tpu.memory_space<vmem>>, vector<1x32xf32>
    %c14 = arith.constant 14 : index
    %c0_127 = arith.constant 0 : index
    %176 = vector.load %arg2[%c14, %c0_127] : memref<24x128xf32, #tpu.memory_space<vmem>>, vector<1x32xf32>
    %177 = vector.shape_cast %174 : vector<32x32xbf16> to vector<2x16x32xbf16>
    %c0_128 = arith.constant 0 : index
    %c1_129 = arith.constant 1 : index
    %c0_130 = arith.constant 0 : index
    %178 = vector.load %arg17[%c0_128, %c1_129, %c0_130] : memref<2x18x96xbf16, #tpu.memory_space<vmem>>, vector<2x16x32xbf16>
    tpu.vector_store %arg17[%c0_128, %c1_129, %c0_130], %177 {strides = array<i32>} : memref<2x18x96xbf16, #tpu.memory_space<vmem>>, vector<2x16x32xbf16>,
    %c0_131 = arith.constant 0 : index
    %c0_132 = arith.constant 0 : index
    %c0_133 = arith.constant 0 : index
    %179 = vector.load %arg17[%c0_131, %c0_132, %c0_133] : memref<2x18x96xbf16, #tpu.memory_space<vmem>>, vector<2x18x32xbf16>
    %180 = vector.extract_strided_slice %179 {offsets = [0, 0, 0], sizes = [2, 16, 32], strides = [1, 1, 1]} : vector<2x18x32xbf16> to vector<2x16x32xbf16>
    %181 = vector.shape_cast %180 : vector<2x16x32xbf16> to vector<32x32xbf16>
    %c0_134 = arith.constant 0 : index
    %c0_135 = arith.constant 0 : index
    %c0_136 = arith.constant 0 : index
    %182 = vector.load %arg10[%c0_134, %c0_135, %c0_136] : memref<3x32x32xbf16, #tpu.memory_space<vmem>>, vector<1x32x32xbf16>
    %183 = vector.shape_cast %182 : vector<1x32x32xbf16> to vector<32x32xbf16>
    %cst_137 = arith.constant dense<0.000000e+00> : vector<32x32xf32>
    %184 = tpu.matmul %181, %183, %cst_137 {dimension_numbers = #tpu.dot_dimension_numbers<[1], [0], [0], [1], [0, 0, 1, 1], [], []>} : vector<32x32xbf16>, vector<32x32xbf16>, vector<32x32xf32> -> vector<32x32xf32>
    %185 = vector.extract_strided_slice %179 {offsets = [0, 1, 0], sizes = [2, 16, 32], strides = [1, 1, 1]} : vector<2x18x32xbf16> to vector<2x16x32xbf16>
    %186 = vector.shape_cast %185 : vector<2x16x32xbf16> to vector<32x32xbf16>
    %c1_138 = arith.constant 1 : index
    %c0_139 = arith.constant 0 : index
    %c0_140 = arith.constant 0 : index
    %187 = vector.load %arg10[%c1_138, %c0_139, %c0_140] : memref<3x32x32xbf16, #tpu.memory_space<vmem>>, vector<1x32x32xbf16>
    %188 = vector.shape_cast %187 : vector<1x32x32xbf16> to vector<32x32xbf16>
    %cst_141 = arith.constant dense<0.000000e+00> : vector<32x32xf32>
    %189 = tpu.matmul %186, %188, %cst_141 {dimension_numbers = #tpu.dot_dimension_numbers<[1], [0], [0], [1], [0, 0, 1, 1], [], []>} : vector<32x32xbf16>, vector<32x32xbf16>, vector<32x32xf32> -> vector<32x32xf32>
    %190 = arith.addf %184, %189 : vector<32x32xf32>
    %191 = vector.extract_strided_slice %179 {offsets = [0, 2, 0], sizes = [2, 16, 32], strides = [1, 1, 1]} : vector<2x18x32xbf16> to vector<2x16x32xbf16>
    %192 = vector.shape_cast %191 : vector<2x16x32xbf16> to vector<32x32xbf16>
    %c2_142 = arith.constant 2 : index
    %c0_143 = arith.constant 0 : index
    %c0_144 = arith.constant 0 : index
    %193 = vector.load %arg10[%c2_142, %c0_143, %c0_144] : memref<3x32x32xbf16, #tpu.memory_space<vmem>>, vector<1x32x32xbf16>
    %194 = vector.shape_cast %193 : vector<1x32x32xbf16> to vector<32x32xbf16>
    %cst_145 = arith.constant dense<0.000000e+00> : vector<32x32xf32>
    %195 = tpu.matmul %192, %194, %cst_145 {dimension_numbers = #tpu.dot_dimension_numbers<[1], [0], [0], [1], [0, 0, 1, 1], [], []>} : vector<32x32xbf16>, vector<32x32xbf16>, vector<32x32xf32> -> vector<32x32xf32>
    %196 = arith.addf %190, %195 : vector<32x32xf32>
    %197 = vector.broadcast %175 : vector<1x32xf32> to vector<32x32xf32>
    %198 = arith.mulf %196, %197 : vector<32x32xf32>
    %199 = vector.broadcast %176 : vector<1x32xf32> to vector<32x32xf32>
    %200 = arith.addf %198, %199 : vector<32x32xf32>
    %201 = arith.addf %200, %173 : vector<32x32xf32>
    %cst_146 = arith.constant 0.000000e+00 : f32
    %202 = vector.broadcast %cst_146 : f32 to vector<32x32xf32>
    %203 = arith.maximumf %201, %202 : vector<32x32xf32>
    %204 = arith.truncf %203 : vector<32x32xf32> to vector<32x32xbf16>
    %c17 = arith.constant 17 : index
    %c0_147 = arith.constant 0 : index
    %205 = vector.load %arg2[%c17, %c0_147] : memref<24x128xf32, #tpu.memory_space<vmem>>, vector<1x32xf32>
    %c18 = arith.constant 18 : index
    %c0_148 = arith.constant 0 : index
    %206 = vector.load %arg2[%c18, %c0_148] : memref<24x128xf32, #tpu.memory_space<vmem>>, vector<1x32xf32>
    %207 = vector.shape_cast %204 : vector<32x32xbf16> to vector<2x16x32xbf16>
    %c0_149 = arith.constant 0 : index
    %c1_150 = arith.constant 1 : index
    %c0_151 = arith.constant 0 : index
    %208 = vector.load %arg17[%c0_149, %c1_150, %c0_151] : memref<2x18x96xbf16, #tpu.memory_space<vmem>>, vector<2x16x32xbf16>
    tpu.vector_store %arg17[%c0_149, %c1_150, %c0_151], %207 {strides = array<i32>} : memref<2x18x96xbf16, #tpu.memory_space<vmem>>, vector<2x16x32xbf16>,
    %c0_152 = arith.constant 0 : index
    %c0_153 = arith.constant 0 : index
    %c0_154 = arith.constant 0 : index
    %209 = vector.load %arg17[%c0_152, %c0_153, %c0_154] : memref<2x18x96xbf16, #tpu.memory_space<vmem>>, vector<2x18x32xbf16>
    %210 = vector.extract_strided_slice %209 {offsets = [0, 0, 0], sizes = [2, 16, 32], strides = [1, 1, 1]} : vector<2x18x32xbf16> to vector<2x16x32xbf16>
    %211 = vector.shape_cast %210 : vector<2x16x32xbf16> to vector<32x32xbf16>
    %c0_155 = arith.constant 0 : index
    %c0_156 = arith.constant 0 : index
    %c0_157 = arith.constant 0 : index
    %212 = vector.load %arg12[%c0_155, %c0_156, %c0_157] : memref<3x32x32xbf16, #tpu.memory_space<vmem>>, vector<1x32x32xbf16>
    %213 = vector.shape_cast %212 : vector<1x32x32xbf16> to vector<32x32xbf16>
    %cst_158 = arith.constant dense<0.000000e+00> : vector<32x32xf32>
    %214 = tpu.matmul %211, %213, %cst_158 {dimension_numbers = #tpu.dot_dimension_numbers<[1], [0], [0], [1], [0, 0, 1, 1], [], []>} : vector<32x32xbf16>, vector<32x32xbf16>, vector<32x32xf32> -> vector<32x32xf32>
    %215 = vector.extract_strided_slice %209 {offsets = [0, 1, 0], sizes = [2, 16, 32], strides = [1, 1, 1]} : vector<2x18x32xbf16> to vector<2x16x32xbf16>
    %216 = vector.shape_cast %215 : vector<2x16x32xbf16> to vector<32x32xbf16>
    %c1_159 = arith.constant 1 : index
    %c0_160 = arith.constant 0 : index
    %c0_161 = arith.constant 0 : index
    %217 = vector.load %arg12[%c1_159, %c0_160, %c0_161] : memref<3x32x32xbf16, #tpu.memory_space<vmem>>, vector<1x32x32xbf16>
    %218 = vector.shape_cast %217 : vector<1x32x32xbf16> to vector<32x32xbf16>
    %cst_162 = arith.constant dense<0.000000e+00> : vector<32x32xf32>
    %219 = tpu.matmul %216, %218, %cst_162 {dimension_numbers = #tpu.dot_dimension_numbers<[1], [0], [0], [1], [0, 0, 1, 1], [], []>} : vector<32x32xbf16>, vector<32x32xbf16>, vector<32x32xf32> -> vector<32x32xf32>
    %220 = arith.addf %214, %219 : vector<32x32xf32>
    %221 = vector.extract_strided_slice %209 {offsets = [0, 2, 0], sizes = [2, 16, 32], strides = [1, 1, 1]} : vector<2x18x32xbf16> to vector<2x16x32xbf16>
    %222 = vector.shape_cast %221 : vector<2x16x32xbf16> to vector<32x32xbf16>
    %c2_163 = arith.constant 2 : index
    %c0_164 = arith.constant 0 : index
    %c0_165 = arith.constant 0 : index
    %223 = vector.load %arg12[%c2_163, %c0_164, %c0_165] : memref<3x32x32xbf16, #tpu.memory_space<vmem>>, vector<1x32x32xbf16>
    %224 = vector.shape_cast %223 : vector<1x32x32xbf16> to vector<32x32xbf16>
    %cst_166 = arith.constant dense<0.000000e+00> : vector<32x32xf32>
    %225 = tpu.matmul %222, %224, %cst_166 {dimension_numbers = #tpu.dot_dimension_numbers<[1], [0], [0], [1], [0, 0, 1, 1], [], []>} : vector<32x32xbf16>, vector<32x32xbf16>, vector<32x32xf32> -> vector<32x32xf32>
    %226 = arith.addf %220, %225 : vector<32x32xf32>
    %227 = vector.broadcast %205 : vector<1x32xf32> to vector<32x32xf32>
    %228 = arith.mulf %226, %227 : vector<32x32xf32>
    %229 = vector.broadcast %206 : vector<1x32xf32> to vector<32x32xf32>
    %230 = arith.addf %228, %229 : vector<32x32xf32>
    %cst_167 = arith.constant 0.000000e+00 : f32
    %231 = vector.broadcast %cst_167 : f32 to vector<32x32xf32>
    %232 = arith.maximumf %230, %231 : vector<32x32xf32>
    %233 = arith.truncf %232 : vector<32x32xf32> to vector<32x32xbf16>
    %c19 = arith.constant 19 : index
    %c0_168 = arith.constant 0 : index
    %234 = vector.load %arg2[%c19, %c0_168] : memref<24x128xf32, #tpu.memory_space<vmem>>, vector<1x32xf32>
    %c20 = arith.constant 20 : index
    %c0_169 = arith.constant 0 : index
    %235 = vector.load %arg2[%c20, %c0_169] : memref<24x128xf32, #tpu.memory_space<vmem>>, vector<1x32xf32>
    %236 = vector.shape_cast %233 : vector<32x32xbf16> to vector<2x16x32xbf16>
    %c0_170 = arith.constant 0 : index
    %c1_171 = arith.constant 1 : index
    %c0_172 = arith.constant 0 : index
    %237 = vector.load %arg17[%c0_170, %c1_171, %c0_172] : memref<2x18x96xbf16, #tpu.memory_space<vmem>>, vector<2x16x32xbf16>
    tpu.vector_store %arg17[%c0_170, %c1_171, %c0_172], %236 {strides = array<i32>} : memref<2x18x96xbf16, #tpu.memory_space<vmem>>, vector<2x16x32xbf16>,
    %c0_173 = arith.constant 0 : index
    %c0_174 = arith.constant 0 : index
    %c0_175 = arith.constant 0 : index
    %238 = vector.load %arg17[%c0_173, %c0_174, %c0_175] : memref<2x18x96xbf16, #tpu.memory_space<vmem>>, vector<2x18x32xbf16>
    %239 = vector.extract_strided_slice %238 {offsets = [0, 0, 0], sizes = [2, 16, 32], strides = [1, 1, 1]} : vector<2x18x32xbf16> to vector<2x16x32xbf16>
    %240 = vector.shape_cast %239 : vector<2x16x32xbf16> to vector<32x32xbf16>
    %c0_176 = arith.constant 0 : index
    %c0_177 = arith.constant 0 : index
    %c0_178 = arith.constant 0 : index
    %241 = vector.load %arg13[%c0_176, %c0_177, %c0_178] : memref<3x32x32xbf16, #tpu.memory_space<vmem>>, vector<1x32x32xbf16>
    %242 = vector.shape_cast %241 : vector<1x32x32xbf16> to vector<32x32xbf16>
    %cst_179 = arith.constant dense<0.000000e+00> : vector<32x32xf32>
    %243 = tpu.matmul %240, %242, %cst_179 {dimension_numbers = #tpu.dot_dimension_numbers<[1], [0], [0], [1], [0, 0, 1, 1], [], []>} : vector<32x32xbf16>, vector<32x32xbf16>, vector<32x32xf32> -> vector<32x32xf32>
    %244 = vector.extract_strided_slice %238 {offsets = [0, 1, 0], sizes = [2, 16, 32], strides = [1, 1, 1]} : vector<2x18x32xbf16> to vector<2x16x32xbf16>
    %245 = vector.shape_cast %244 : vector<2x16x32xbf16> to vector<32x32xbf16>
    %c1_180 = arith.constant 1 : index
    %c0_181 = arith.constant 0 : index
    %c0_182 = arith.constant 0 : index
    %246 = vector.load %arg13[%c1_180, %c0_181, %c0_182] : memref<3x32x32xbf16, #tpu.memory_space<vmem>>, vector<1x32x32xbf16>
    %247 = vector.shape_cast %246 : vector<1x32x32xbf16> to vector<32x32xbf16>
    %cst_183 = arith.constant dense<0.000000e+00> : vector<32x32xf32>
    %248 = tpu.matmul %245, %247, %cst_183 {dimension_numbers = #tpu.dot_dimension_numbers<[1], [0], [0], [1], [0, 0, 1, 1], [], []>} : vector<32x32xbf16>, vector<32x32xbf16>, vector<32x32xf32> -> vector<32x32xf32>
    %249 = arith.addf %243, %248 : vector<32x32xf32>
    %250 = vector.extract_strided_slice %238 {offsets = [0, 2, 0], sizes = [2, 16, 32], strides = [1, 1, 1]} : vector<2x18x32xbf16> to vector<2x16x32xbf16>
    %251 = vector.shape_cast %250 : vector<2x16x32xbf16> to vector<32x32xbf16>
    %c2_184 = arith.constant 2 : index
    %c0_185 = arith.constant 0 : index
    %c0_186 = arith.constant 0 : index
    %252 = vector.load %arg13[%c2_184, %c0_185, %c0_186] : memref<3x32x32xbf16, #tpu.memory_space<vmem>>, vector<1x32x32xbf16>
    %253 = vector.shape_cast %252 : vector<1x32x32xbf16> to vector<32x32xbf16>
    %cst_187 = arith.constant dense<0.000000e+00> : vector<32x32xf32>
    %254 = tpu.matmul %251, %253, %cst_187 {dimension_numbers = #tpu.dot_dimension_numbers<[1], [0], [0], [1], [0, 0, 1, 1], [], []>} : vector<32x32xbf16>, vector<32x32xbf16>, vector<32x32xf32> -> vector<32x32xf32>
    %255 = arith.addf %249, %254 : vector<32x32xf32>
    %256 = vector.broadcast %234 : vector<1x32xf32> to vector<32x32xf32>
    %257 = arith.mulf %255, %256 : vector<32x32xf32>
    %258 = vector.broadcast %235 : vector<1x32xf32> to vector<32x32xf32>
    %259 = arith.addf %257, %258 : vector<32x32xf32>
    %260 = arith.addf %259, %203 : vector<32x32xf32>
    %cst_188 = arith.constant 0.000000e+00 : f32
    %261 = vector.broadcast %cst_188 : f32 to vector<32x32xf32>
    %262 = arith.maximumf %260, %261 : vector<32x32xf32>
    %263 = arith.truncf %262 : vector<32x32xf32> to vector<32x32xbf16>
    %c0_189 = arith.constant 0 : index
    %c0_190 = arith.constant 0 : index
    %264 = vector.load %arg14[%c0_189, %c0_190] : memref<32x16xbf16, #tpu.memory_space<vmem>>, vector<32x16xbf16>
    %cst_191 = arith.constant dense<0.000000e+00> : vector<32x16xf32>
    %265 = tpu.matmul %263, %264, %cst_191 {dimension_numbers = #tpu.dot_dimension_numbers<[1], [0], [0], [1], [0, 0, 1, 1], [], []>} : vector<32x32xbf16>, vector<32x16xbf16>, vector<32x16xf32> -> vector<32x16xf32>
    %c21 = arith.constant 21 : index
    %c0_192 = arith.constant 0 : index
    %266 = vector.load %arg2[%c21, %c0_192] : memref<24x128xf32, #tpu.memory_space<vmem>>, vector<1x16xf32>
    %267 = vector.broadcast %266 : vector<1x16xf32> to vector<32x16xf32>
    %268 = arith.addf %265, %267 : vector<32x16xf32>
    %cst_193 = arith.constant 0.000000e+00 : f32
    %269 = vector.broadcast %cst_193 : f32 to vector<32x16xf32>
    %270 = arith.maximumf %268, %269 : vector<32x16xf32>
    %271 = arith.truncf %270 : vector<32x16xf32> to vector<32x16xbf16>
    %c0_194 = arith.constant 0 : index
    %c0_195 = arith.constant 0 : index
    %272 = vector.load %arg15[%c0_194, %c0_195] : memref<16x32xbf16, #tpu.memory_space<vmem>>, vector<16x32xbf16>
    %cst_196 = arith.constant dense<0.000000e+00> : vector<32x32xf32>
    %273 = tpu.matmul %271, %272, %cst_196 {dimension_numbers = #tpu.dot_dimension_numbers<[1], [0], [0], [1], [0, 0, 1, 1], [], []>} : vector<32x16xbf16>, vector<16x32xbf16>, vector<32x32xf32> -> vector<32x32xf32>
    %c22 = arith.constant 22 : index
    %c0_197 = arith.constant 0 : index
    %274 = vector.load %arg2[%c22, %c0_197] : memref<24x128xf32, #tpu.memory_space<vmem>>, vector<1x32xf32>
    %275 = vector.broadcast %274 : vector<1x32xf32> to vector<32x32xf32>
    %276 = arith.addf %273, %275 : vector<32x32xf32>
    %277 = arith.negf %276 : vector<32x32xf32>
    %278 = math.exp %277 : vector<32x32xf32>
    %cst_198 = arith.constant 1.000000e+00 : f32
    %279 = vector.broadcast %cst_198 : f32 to vector<32x32xf32>
    %280 = arith.addf %279, %278 : vector<32x32xf32>
    %281 = arith.divf %279, %280 : vector<32x32xf32>
    %282 = arith.mulf %262, %281 : vector<32x32xf32>
    %283 = vector.shape_cast %282 : vector<32x32xf32> to vector<2x16x32xf32>
    %cst_199 = arith.constant dense<0.000000e+00> : vector<2x32xf32>
    %284 = vector.multi_reduction <add>, %283, %cst_199 [1] : vector<2x16x32xf32> to vector<2x32xf32>
    %cst_200 = arith.constant 1.600000e+01 : f32
    %285 = vector.broadcast %cst_200 : f32 to vector<2x32xf32>
    %286 = arith.divf %284, %285 : vector<2x32xf32>
    %c0_201 = arith.constant 0 : index
    %c0_202 = arith.constant 0 : index
    %287 = vector.load %arg16[%c0_201, %c0_202] : memref<2x32xf32, #tpu.memory_space<vmem>>, vector<2x32xf32>
    tpu.vector_store %arg16[%c0_201, %c0_202], %286 {strides = array<i32>} : memref<2x32xf32, #tpu.memory_space<vmem>>, vector<2x32xf32>,
    return
  }
  func.func @transform_0(%arg0: i32) -> (i32, i32, i32) {
    %c0_i32 = arith.constant 0 : i32
    %c0_i32_0 = arith.constant 0 : i32
    %c0_i32_1 = arith.constant 0 : i32
    return %arg0, %c0_i32, %c0_i32_0 : i32, i32, i32
  }
  func.func @transform_1(%arg0: i32) -> (i32, i32) {
    %c0_i32 = arith.constant 0 : i32
    %c0_i32_0 = arith.constant 0 : i32
    %c0_i32_1 = arith.constant 0 : i32
    return %c0_i32, %c0_i32_0 : i32, i32
  }
  func.func @transform_2(%arg0: i32) -> (i32, i32) {
    %c0_i32 = arith.constant 0 : i32
    %c0_i32_0 = arith.constant 0 : i32
    %c0_i32_1 = arith.constant 0 : i32
    return %c0_i32, %c0_i32_0 : i32, i32
  }
  func.func @transform_3(%arg0: i32) -> (i32, i32, i32) {
    %c0_i32 = arith.constant 0 : i32
    %c0_i32_0 = arith.constant 0 : i32
    %c0_i32_1 = arith.constant 0 : i32
    %c0_i32_2 = arith.constant 0 : i32
    return %c0_i32, %c0_i32_0, %c0_i32_1 : i32, i32, i32
  }
  func.func @transform_4(%arg0: i32) -> (i32, i32, i32) {
    %c0_i32 = arith.constant 0 : i32
    %c0_i32_0 = arith.constant 0 : i32
    %c0_i32_1 = arith.constant 0 : i32
    %c0_i32_2 = arith.constant 0 : i32
    return %c0_i32, %c0_i32_0, %c0_i32_1 : i32, i32, i32
  }
  func.func @transform_5(%arg0: i32) -> (i32, i32) {
    %c0_i32 = arith.constant 0 : i32
    %c0_i32_0 = arith.constant 0 : i32
    %c0_i32_1 = arith.constant 0 : i32
    return %c0_i32, %c0_i32_0 : i32, i32
  }
  func.func @transform_6(%arg0: i32) -> (i32, i32, i32) {
    %c0_i32 = arith.constant 0 : i32
    %c0_i32_0 = arith.constant 0 : i32
    %c0_i32_1 = arith.constant 0 : i32
    %c0_i32_2 = arith.constant 0 : i32
    return %c0_i32, %c0_i32_0, %c0_i32_1 : i32, i32, i32
  }
  func.func @transform_7(%arg0: i32) -> (i32, i32, i32) {
    %c0_i32 = arith.constant 0 : i32
    %c0_i32_0 = arith.constant 0 : i32
    %c0_i32_1 = arith.constant 0 : i32
    %c0_i32_2 = arith.constant 0 : i32
    return %c0_i32, %c0_i32_0, %c0_i32_1 : i32, i32, i32
  }
  func.func @transform_8(%arg0: i32) -> (i32, i32, i32) {
    %c0_i32 = arith.constant 0 : i32
    %c0_i32_0 = arith.constant 0 : i32
    %c0_i32_1 = arith.constant 0 : i32
    %c0_i32_2 = arith.constant 0 : i32
    return %c0_i32, %c0_i32_0, %c0_i32_1 : i32, i32, i32
  }
  func.func @transform_9(%arg0: i32) -> (i32, i32, i32) {
    %c0_i32 = arith.constant 0 : i32
    %c0_i32_0 = arith.constant 0 : i32
    %c0_i32_1 = arith.constant 0 : i32
    %c0_i32_2 = arith.constant 0 : i32
    return %c0_i32, %c0_i32_0, %c0_i32_1 : i32, i32, i32
  }
  func.func @transform_10(%arg0: i32) -> (i32, i32) {
    %c0_i32 = arith.constant 0 : i32
    %c0_i32_0 = arith.constant 0 : i32
    %c0_i32_1 = arith.constant 0 : i32
    return %c0_i32, %c0_i32_0 : i32, i32
  }
  func.func @transform_11(%arg0: i32) -> (i32, i32, i32) {
    %c0_i32 = arith.constant 0 : i32
    %c0_i32_0 = arith.constant 0 : i32
    %c0_i32_1 = arith.constant 0 : i32
    %c0_i32_2 = arith.constant 0 : i32
    return %c0_i32, %c0_i32_0, %c0_i32_1 : i32, i32, i32
  }
  func.func @transform_12(%arg0: i32) -> (i32, i32, i32) {
    %c0_i32 = arith.constant 0 : i32
    %c0_i32_0 = arith.constant 0 : i32
    %c0_i32_1 = arith.constant 0 : i32
    %c0_i32_2 = arith.constant 0 : i32
    return %c0_i32, %c0_i32_0, %c0_i32_1 : i32, i32, i32
  }
  func.func @transform_13(%arg0: i32) -> (i32, i32) {
    %c0_i32 = arith.constant 0 : i32
    %c0_i32_0 = arith.constant 0 : i32
    %c0_i32_1 = arith.constant 0 : i32
    return %c0_i32, %c0_i32_0 : i32, i32
  }
  func.func @transform_14(%arg0: i32) -> (i32, i32) {
    %c0_i32 = arith.constant 0 : i32
    %c0_i32_0 = arith.constant 0 : i32
    %c0_i32_1 = arith.constant 0 : i32
    return %c0_i32, %c0_i32_0 : i32, i32
  }
  func.func @transform_15(%arg0: i32) -> (i32, i32) {
    %c0_i32 = arith.constant 0 : i32
    %c0_i32_0 = arith.constant 0 : i32
    return %arg0, %c0_i32 : i32, i32
  }
}

</mosaic_0001>

<bundles_post_ra>
// kernel: tpu_custom_call.1
= control target key start
LH: loop header
LB: loop body
LE: loop exit
PB: predicated region body
PF: predicated region fallthrough
CT: control target
= control target key end

     0   :  { %20 = vsyncpa [#allocation4], 0  ;;  %s6470_s0 = inlined_call_operand.hbm [shape: bf16[2,16,112], index: 0, kind: input, shape index: {}]   ;;  %s6471_s1 = inlined_call_operand.hbm [shape: f32[24,128], index: 1, kind: input, shape index: {}]   ;;  %s6472_s2 = inlined_call_operand.vmem [shape: bf16[112,96], index: 2, kind: input, shape index: {}]   ;;  %s6473_s3 = inlined_call_operand.vmem [shape: bf16[3,96,64], index: 3, kind: input, shape index: {}]   ;;  %s6474_s4 = inlined_call_operand.vmem [shape: bf16[3,64,64], index: 4, kind: input, shape index: {}]   ;;  %s6475_s5 = inlined_call_operand.vmem [shape: bf16[96,64], index: 5, kind: input, shape index: {}]   ;;  %s6476_s6 = inlined_call_operand.vmem [shape: bf16[3,64,64], index: 6, kind: input, shape index: {}]   ;;  %s6477_s7 = inlined_call_operand.vmem [shape: bf16[3,64,64], index: 7, kind: input, shape index: {}]   ;;  %s6478_s8 = inlined_call_operand.vmem [shape: bf16[3,64,32], index: 8, kind: input, shape index: {}]   ;;  %s6479_s9 = inlined_call_operand.vmem [shape: bf16[3,32,32], index: 9, kind: input, shape index: {}]   ;;  %s6480_s10 = inlined_call_operand.vmem [shape: bf16[64,32], index: 10, kind: input, shape index: {}]   ;;  %s6481_s11 = inlined_call_operand.vmem [shape: bf16[3,32,32], index: 11, kind: input, shape index: {}]   ;;  %s6482_s12 = inlined_call_operand.vmem [shape: bf16[3,32,32], index: 12, kind: input, shape index: {}]   ;;  %s6483_s13 = inlined_call_operand.vmem [shape: bf16[32,16], index: 13, kind: input, shape index: {}]   ;;  %s6484_s14 = inlined_call_operand.vmem [shape: bf16[16,32], index: 14, kind: input, shape index: {}]   ;;  %s6485_s15 = inlined_call_operand.hbm [shape: f32[2,32], index: 15, kind: output, shape index: {}]  }
   0x1   :  { %21 = vsyncpa [#allocation7], 0 }
   0x2   :  { %22 = vsyncpa [#allocation5], 0  ;;  %s5389_s18 = smov [#allocation3]   ;;  %s5317_s22 = scalar_lea.hbm %s6470_s0, 256 }
   0x3   :  { %s28_s19 = sshll.u32 %s5389_s18, 4  ;;  %p5318_p0 = scmp.ne.s32.totalorder %s6470_s0, %s5317_s22  ;;  %s29_s19 = int_to_ptr.vmem [resolvable:$true] %s28_s19 }
   0x4   :  { %p5321_p1 = scmp.lt.u32.totalorder %s5317_s22, %s6470_s0 }
   0x6   :  { %p5323_p2 = pnand %p5321_p1, %p5318_p0 }
   0x8   :  { %5326 = shalt.err (!%p5323_p2)
}
   0x9   :  { %s5327_s27 = scalar_lea.vmem %s29_s19, 256  ;;  %p5332_p4 = scmp.lt.s32.totalorder %s29_s19, %s29_s19 }
   0xa   :  { %p5328_p3 = scmp.ne.s32.totalorder %s29_s19, %s5327_s27  ;;  %p5333_p5 = scmp.lt.s32.totalorder %s5327_s27, %s5327_s27 }
   0xc   :  { %p5334_p6 = por %p5333_p5, %p5332_p4 }
   0xe   :  { %p5335_p7 = pnand %p5334_p6, %p5328_p3 }
  0x10   :  { %5338 = shalt.err (!%p5335_p7)
}
  0x11   :  { %s5390_s28 = smov 64   ;;  %s5391_s29 = smov 4  }
  0x12   :  { %34 = dma.hbm_to_vmem [thread:$0]  %s6470_s0, 256, %s29_s19, [#allocation4], %s5390_s28, %s5390_s28, %s5391_s29  }
  0x13   :  { %s5392_s17 = smov [#allocation6]   ;;  %s5339_s22 = scalar_lea.hbm %s6471_s1, 384 }
  0x14   :  { %s40_s18 = sshll.u32 %s5392_s17, 4  ;;  %p5340_p8 = scmp.ne.s32.totalorder %s6471_s1, %s5339_s22  ;;  %s41_s18 = int_to_ptr.vmem [resolvable:$true] %s40_s18 }
  0x15   :  { %p5343_p9 = scmp.lt.u32.totalorder %s5339_s22, %s6471_s1 }
  0x17   :  { %p5345_p10 = pnand %p5343_p9, %p5340_p8 }
  0x19   :  { %5348 = shalt.err (!%p5345_p10)
}
  0x1a   :  { %s5349_s27 = scalar_lea.vmem %s41_s18, 384  ;;  %p5354_p12 = scmp.lt.s32.totalorder %s41_s18, %s41_s18 }
  0x1b   :  { %p5350_p11 = scmp.ne.s32.totalorder %s41_s18, %s5349_s27  ;;  %p5355_p13 = scmp.lt.s32.totalorder %s5349_s27, %s5349_s27 }
  0x1d   :  { %p5356_p0 = por %p5355_p13, %p5354_p12 }
  0x1f   :  { %p5357_p1 = pnand %p5356_p0, %p5350_p11 }
  0x21   :  { %5360 = shalt.err (!%p5357_p1)
}
  0x22   :  { %s5393_s0 = smov 128   ;;  %s5394_s19 = smov 8  }
  0x23   :  { %46 = dma.hbm_to_vmem [thread:$0]  %s6471_s1, 384, %s41_s18, [#allocation7], %s5393_s0, %s5393_s0, %s5394_s19  }
  0x24   :  { %5383 = dma.done.wait [#allocation4], 256  }
  0x25   :  { %5384 = vsyncadd [#allocation4], 4294967040 }
  0x26   :  { %5385 = dma.done.wait [#allocation7], 384  }
  0x27   :  { %5386 = vsyncadd [#allocation7], 4294966912  ;;  %vm80_vm0 = vcmask 781312   ;;  %v5395_v0 = vmov 0   ;;  %v5179_v1 = vld [vmem:[%s6472_s2] sm:$0xff]   ;;  %v5180_v2 = vld [vmem:[%s6472_s2 + $0x8] sm:$0xff]  }
  0x28   :  { %85 = vst.msk [vmem:[#allocation2 + $0xc] sm:$0xf] %vm80_vm0, %v5395_v0  ;;  %81 = vst.msk [vmem:[#allocation2] sm:$0xf] %vm80_vm0, %v5395_v0  ;;  %4783 = vmatprep.subr.bf16.mxu0 %v5179_v1  ;;  %v5181_v3 = vld [vmem:[%s6472_s2 + $0x10] sm:$0xff]   ;;  %vm163_vm1 = vcmask 916480  }
  0x29   :  { %82 = vst.msk [vmem:[#allocation2 + $0x4] sm:$0xf] %vm80_vm0, %v5395_v0  ;;  %86 = vst.msk [vmem:[#allocation2 + $0x10] sm:$0xf] %vm80_vm0, %v5395_v0  ;;  %4784 = vmatpush3.bf16.msra.mxu0 %v5179_v1  ;;  %v5186_v4 = vld [vmem:[#allocation3] sm:$0xff]   ;;  %v5183_v6 = vld [vmem:[%s6472_s2 + $0x20] sm:$0xff]  }
  0x2a   :  { %4785 = vmatprep.subr.bf16.mxu0 %v5180_v2  ;;  %v5182_v5 = vld [vmem:[%s6472_s2 + $0x18] sm:$0xff]   ;;  %4797 = vmatprep.mubr.msk.bf16.mxu0 %vm163_vm1, %v5186_v4  ;;  %v5184_v7 = vld [vmem:[%s6472_s2 + $0x28] sm:$0xff]   ;;  %v5185_v8 = vld [vmem:[%s6472_s2 + $0x30] sm:$0xff]   ;;  %vm83_vm2 = vcmask 778240   ;;  %vm281_vm3 = vsmask.f32 7938 }
  0x2b   :  { %v5188_v9 = vld [vmem:[%s6475_s5] sm:$0xff]   ;;  %v5189_v11 = vld [vmem:[%s6475_s5 + $0x8] sm:$0xff]   ;;  %v5190_v12 = vld [vmem:[%s6475_s5 + $0x10] sm:$0xff]   ;;  %84 = vst.msk [vmem:[#allocation2 + $0x8] sm:$0x1] %vm83_vm2, %v5395_v0  ;;  %vm423_vm4 = vcmask 785408  }
  0x2c   :  { %v5187_v10 = vld [vmem:[#allocation3 + $0x8] sm:$0xff]   ;;  %v5191_v13 = vld [vmem:[%s6475_s5 + $0x18] sm:$0xff]   ;;  %v5193_v15 = vld [vmem:[%s6475_s5 + $0x28] sm:$0xff]   ;;  %87 = vst.msk [vmem:[#allocation2 + $0x14] sm:$0x1] %vm83_vm2, %v5395_v0  ;;  %vm582_vm13 = vcmask 1042432  }
  0x2d   :  { %4786 = vmatpush3.bf16.msra.mxu0 %v5180_v2  ;;  %v5192_v14 = vld [vmem:[%s6475_s5 + $0x20] sm:$0xff]   ;;  %v5194_v16 = vld [vmem:[%s6473_s3 + $0x30] sm:$0xff]   ;;  %v5195_v17 = vld [vmem:[%s6473_s3 + $0x38] sm:$0xff]   ;;  %vm237_vm5 = vsmask.f32 256  ;;  %vm583_vm14 = vcmask 1046532  }
  0x2e   :  { %4787 = vmatprep.subr.bf16.mxu0 %v5181_v3  ;;  %4801 = vmatprep.subr.bf16.mxu1 %v5194_v16  ;;  %v5196_v18 = vld [vmem:[%s6473_s3 + $0x40] sm:$0xff]   ;;  %v5197_v19 = vld [vmem:[%s6473_s3 + $0x48] sm:$0xff]   ;;  %v5198_v20 = vld [vmem:[%s6473_s3 + $0x50] sm:$0xff]   ;;  %vm238_vm6 = vsmask.f32 4368 }
  0x2f   :  { %4802 = vmatpush3.bf16.msra.mxu1 %v5194_v16  ;;  %v5199_v21 = vld [vmem:[%s6473_s3 + $0x58] sm:$0xff]   ;;  %v5569_v22 = vld [vmem:[%s6473_s3] sm:$0xff]   ;;  %v4190_v23 = vld [vmem:[#allocation6] ss:$0 sm:$0xff]  ;;  %vm317_vm10 = vsmask.f32 3328 }
  0x30   :  { %4803 = vmatprep.subr.bf16.mxu1 %v5195_v17  ;;  %vm5574_vm7 = vmand %vm80_vm0, %vm281_vm3  ;;  %v292_v48 = vld [vmem:[#allocation2 + $0xc] sm:$0xf]  ;;  %v283_v53 = vld [vmem:[#allocation2] sm:$0xf]  ;;  %vm318_vm11 = vsmask.f32 7440 }
  0x31   :  { %4788 = vmatpush3.bf16.msra.mxu0 %v5181_v3  ;;  %vm5580_vm8 = vmor %vm237_vm5, %vm238_vm6  ;;  %v5205_v58 = vld [vmem:[%s6473_s3 + $0x20] sm:$0xff]   ;;  %vm1027_vm6 = vcmask 523264  }
  0x32   :  { %4789 = vmatprep.subr.bf16.mxu0 %v5182_v5  ;;  %vm5587_vm9 = vmand %vm83_vm2, %vm237_vm5  ;;  %v289_v2 = vld [vmem:[#allocation2 + $0x8] sm:$0x1] }
  0x33   :  { %4804 = vmatpush3.bf16.msra.mxu1 %v5195_v17  ;;  %v296_v59 = vld [vmem:[#allocation2 + $0x14] sm:$0x1]  ;;  %vm5628_vm12 = vmor %vm317_vm10, %vm318_vm11 }
  0x34   :  { %4805 = vmatprep.subr.bf16.mxu1 %v5196_v18  ;;  %vm5666_vm15 = vmor %vm582_vm13, %vm583_vm14 }
  0x35   :  { %4790 = vmatpush3.bf16.msra.mxu0 %v5182_v5 }
  0x36   :  { %4791 = vmatprep.subr.bf16.mxu0 %v5183_v6 }
  0x37   :  { %4806 = vmatpush3.bf16.msra.mxu1 %v5196_v18 }
  0x38   :  { %4807 = vmatprep.subr.bf16.mxu1 %v5197_v19 }
  0x39   :  { %4792 = vmatpush3.bf16.msra.mxu0 %v5183_v6 }
  0x3a   :  { %4793 = vmatprep.subr.bf16.mxu0 %v5184_v7 }
  0x3b   :  { %4808 = vmatpush3.bf16.msra.mxu1 %v5197_v19 }
  0x3c   :  { %4809 = vmatprep.subr.bf16.mxu1 %v5198_v20 }
  0x3d   :  { %4794 = vmatpush3.bf16.msra.mxu0 %v5184_v7 }
  0x3e   :  { %4795 = vmatprep.subr.bf16.mxu0 %v5185_v8 }
  0x3f   :  { %4810 = vmatpush3.bf16.msra.mxu1 %v5198_v20 }
  0x40   :  { %4811 = vmatprep.subr.bf16.mxu1 %v5199_v21 }
  0x41   :  { %4796 = vmatpush3.bf16.msra.mxu0 %v5185_v8 }
  0x42   :  { %4849 = vmatprep.subr.bf16.mxu0 %v5188_v9 }
  0x43   :  { %4812 = vmatpush3.bf16.msra.mxu1 %v5199_v21 }
  0x44   :  { %4798 = vmatmul.mubr.msk.bf16.vlgmr.msra.gmra.mrb[0].mxu0 %vm163_vm1, %v5187_v10  ;;  %4817 = vmatprep.subr.bf16.mxu1 %v5569_v22  ;;  %vm914_vm1 = vcmask 516096  }
  0x45   :  { %4850 = vmatpush3.bf16.msra.mxu0 %v5188_v9 }
  0x46   :  { %4851 = vmatprep.subr.bf16.mxu0 %v5189_v11 }
  0x49   :  { %4852 = vmatpush3.bf16.msra.mxu0 %v5189_v11 }
  0x4a   :  { %4853 = vmatprep.subr.bf16.mxu0 %v5190_v12 }
  0x4d   :  { %4854 = vmatpush3.bf16.msra.mxu0 %v5190_v12 }
  0x4e   :  { %4855 = vmatprep.subr.bf16.mxu0 %v5191_v13 }
  0x51   :  { %4856 = vmatpush3.bf16.msra.mxu0 %v5191_v13 }
  0x52   :  { %4857 = vmatprep.subr.bf16.mxu0 %v5192_v14 }
  0x55   :  { %4858 = vmatpush3.bf16.msra.mxu0 %v5192_v14 }
  0x56   :  { %4859 = vmatprep.subr.bf16.mxu0 %v5193_v15 }
  0x59   :  { %4860 = vmatpush3.bf16.msra.mxu0 %v5193_v15 }
 0x117   :  { %v4799_v24 = vpop.f32.mrb[0].mxu0 }
 0x118   :  { %v213_v25 = vadd.f32 %v4799_v24, %v4190_v23  ;;  %v204_v26 = vpop.f32.mrb[1].mxu0 }
 0x119   :  { %v205_v27 = vadd.f32 %v4190_v23, %v204_v26  ;;  %v4800_v28 = vpop.f32.mrb[2].mxu0 }
 0x11a   :  { %v221_v29 = vmax.f32 %v213_v25, 0.0  ;;  %v216_v30 = vadd.f32 %v4800_v28, %v4190_v23  ;;  %v207_v31 = vpop.f32.mrb[3].mxu0 }
 0x11b   :  { %v219_v32 = vmax.f32 %v205_v27, 0.0  ;;  %v208_v33 = vadd.f32 %v4190_v23, %v207_v31 }
 0x11c   :  { %v4591_v34 = vpack.c.bf16 %v221_v29, %v221_v29  ;;  %v222_v35 = vmax.f32 %v216_v30, 0.0 }
 0x11d   :  { %v4589_v36 = vpack.c.bf16 %v219_v32, %v219_v32  ;;  %v220_v37 = vmax.f32 %v208_v33, 0.0 }
 0x11e   :  { %v258_v38 = vshrl.u32 %v4591_v34, 16  ;;  %v224_v39 = vpack.c.bf16 %v222_v35, %v221_v29  ;;  %v4592_v40 = vpack.c.bf16 %v222_v35, %v222_v35  ;;  %v261_v45 = vshll.u32 %v4591_v34, 16 }
 0x11f   :  { %v241_v41 = vshrl.u32 %v4589_v36, 16  ;;  %v223_v42 = vpack.c.bf16 %v220_v37, %v219_v32  ;;  %v4590_v43 = vpack.c.bf16 %v220_v37, %v220_v37  ;;  %v244_v50 = vshll.u32 %v4589_v36, 16 }
 0x120   :  { %v260_v44 = vrot.slane %v258_v38, 7  ;;  %v266_v46 = vshrl.u32 %v4592_v40, 16  ;;  %v269_v56 = vshll.u32 %v4592_v40, 16  ;;  %v5295_v40 = vld [vmem:[%s6482_s12 + $0x20] sm:$0xff]  }
 0x121   :  { %v243_v49 = vrot.slane %v241_v41, 7  ;;  %v249_v51 = vshrl.u32 %v4590_v43, 16  ;;  %4861 = vmatprep.mubr.msk.bf16.mxu0 %vm423_vm4, %v223_v42  ;;  %v252_v61 = vshll.u32 %v4590_v43, 16 }
 0x122   :  { %v263_v52 = vor.u32 %v261_v45, %v260_v44  ;;  %v268_v55 = vrot.slane %v266_v46, 7  ;;  %4862 = vmatmul.mubr.msk.bf16.vlgmr.msra.gmra.mrb[4].mxu0 %vm423_vm4, %v224_v39  ;;  %v264_v62 = vrot.slane %v260_v44, 4 }
 0x123   :  { %v246_v57 = vor.u32 %v244_v50, %v243_v49  ;;  %v251_v60 = vrot.slane %v249_v51, 7  ;;  %v247_v3 = vrot.slane %v243_v49, 4 }
 0x124   :  { %v293_v63 = vsel %vm5574_vm7, %v263_v52, %v292_v48  ;;  %v271_v0 = vor.u32 %v269_v56, %v268_v55  ;;  %v273_v1 = vrot.slane %v268_v55, 4  ;;  %v5203_v56 = vld [vmem:[%s6473_s3 + $0x10] sm:$0xff]  }
 0x125   :  { %294 = vst [vmem:[#allocation2 + $0xc] sm:$0xf] %v293_v63  ;;  %v284_v4 = vsel %vm5574_vm7, %v246_v57, %v283_v53  ;;  %v254_v5 = vor.u32 %v252_v61, %v251_v60  ;;  %v256_v6 = vrot.slane %v251_v60, 4  ;;  %v5202_v53 = vld [vmem:[%s6473_s3 + $0x8] sm:$0xff]   ;;  %v5204_v57 = vld [vmem:[%s6473_s3 + $0x18] sm:$0xff]   ;;  %v5208_v61 = vld [vmem:[%s6473_s3 + $0x60] sm:$0xff]  }
 0x126   :  { %285 = vst [vmem:[#allocation2] sm:$0xf] %v284_v4  ;;  %v272_v7 = vsel %vm5580_vm8, %v264_v62, %v271_v0  ;;  %v297_v8 = vsel %vm5587_vm9, %v273_v1, %v296_v59  ;;  %v5206_v59 = vld [vmem:[%s6473_s3 + $0x28] sm:$0xff]   ;;  %vm2811_vm7 = vcmask 257024  }
 0x127   :  { %295 = vst.msk [vmem:[#allocation2 + $0x10] sm:$0xf] %vm80_vm0, %v272_v7  ;;  %298 = vst [vmem:[#allocation2 + $0x14] sm:$0x1] %v297_v8  ;;  %v255_v9 = vsel %vm5580_vm8, %v247_v3, %v254_v5  ;;  %v290_v10 = vsel %vm5587_vm9, %v256_v6, %v289_v2  ;;  %v5209_v4 = vld [vmem:[%s6473_s3 + $0x68] sm:$0xff]   ;;  %v5210_v6 = vld [vmem:[%s6473_s3 + $0x70] sm:$0xff]  }
 0x128   :  { %286 = vst.msk [vmem:[#allocation2 + $0x4] sm:$0xf] %vm80_vm0, %v255_v9  ;;  %291 = vst [vmem:[#allocation2 + $0x8] sm:$0x1] %v290_v10  ;;  %v5211_v7 = vld [vmem:[%s6473_s3 + $0x78] sm:$0xff]   ;;  %v5212_v8 = vld [vmem:[%s6473_s3 + $0x80] sm:$0xff]  }
 0x129   :  { %v5213_v10 = vld [vmem:[%s6473_s3 + $0x88] sm:$0xff]   ;;  %vm908_vm0 = vcmask 519168   ;;  %vm2817_vm9 = vcmask 253952   ;;  %vm6177_vm10 = vmand %vm2811_vm7, %vm281_vm3 }
 0x12a   :  { %vm5730_vm2 = vmand %vm908_vm0, %vm281_vm3  ;;  %vm2910_vm3 = vcmask 261120  }
 0x12b   :  { %vm6182_vm11 = vmand %vm2817_vm9, %vm237_vm5 }
 0x12c   :  { %v5605_v11 = vld [vmem:[#allocation2 + $0xc] sm:$0xf] }
 0x12d   :  { %v5607_v12 = vld [vmem:[#allocation2] sm:$0xf]  ;;  %v345_v13 = vshrl.u32 %v5605_v11, 16  ;;  %v348_v14 = vshll.u32 %v5605_v11, 16 }
 0x12e   :  { %v321_v15 = vshrl.u32 %v5607_v12, 16  ;;  %v324_v16 = vshll.u32 %v5607_v12, 16  ;;  %v5613_v17 = vld [vmem:[#allocation2 + $0x10] sm:$0xf]  ;;  %v5621_v27 = vld [vmem:[#allocation2 + $0x14] sm:$0x1] }
 0x12f   :  { %v5615_v18 = vld [vmem:[#allocation2 + $0x4] sm:$0xf]  ;;  %v5617_v19 = vld [vmem:[#allocation2 + $0x8] sm:$0x1]  ;;  %v347_v20 = vrot.slane %v345_v13, 4  ;;  %v350_v21 = vrot.slane %v348_v14, 5  ;;  %v4229_v2 = vcombine.low %v5605_v11, %v5613_v17 }
 0x130   :  { %v323_v23 = vrot.slane %v321_v15, 4  ;;  %v326_v24 = vrot.slane %v324_v16, 5  ;;  %v330_v25 = vshll.u32 %v5615_v18, 16  ;;  %v334_v26 = vshrl.u32 %v5615_v18, 16 }
 0x131   :  { %v351_v28 = vor.u32 %v350_v21, %v347_v20  ;;  %v354_v29 = vshll.u32 %v5613_v17, 16  ;;  %v358_v30 = vshrl.u32 %v5613_v17, 16  ;;  %v340_v34 = vshll.u32 %v5617_v19, 16  ;;  %v5215_v20 = vld [vmem:[%s6474_s4 + $0x28] sm:$0xff]   ;;  %v5217_v21 = vld [vmem:[%s6474_s4 + $0x38] sm:$0xff]  }
 0x132   :  { %v327_v31 = vor.u32 %v326_v24, %v323_v23  ;;  %v332_v32 = vrot.slane %v330_v25, 5  ;;  %v336_v33 = vrot.slane %v334_v26, 4  ;;  %v364_v37 = vshll.u32 %v5621_v27, 16  ;;  %v5717_v23 = vld [vmem:[%s6474_s4] sm:$0xff]  }
 0x133   :  { %v356_v35 = vrot.slane %v354_v29, 5  ;;  %v360_v36 = vrot.slane %v358_v30, 4  ;;  %v352_v41 = vrot.slane %v351_v28, 4  ;;  %v342_v44 = vrot.slane %v340_v34, 5  ;;  %v4262_v28 = vld [vmem:[#allocation6 + $0x1] ss:$0 sm:$0xff] }
 0x134   :  { %v328_v38 = vrot.slane %v327_v31, 4  ;;  %v337_v39 = vor.u32 %v336_v33, %v332_v32  ;;  %v366_v46 = vrot.slane %v364_v37, 5  ;;  %v4228_v55 = vcombine.low %v5607_v12, %v5615_v18  ;;  %v4263_v29 = vld [vmem:[#allocation6 + $0x2] ss:$0 sm:$0xff] }
 0x135   :  { %v361_v42 = vor.u32 %v360_v36, %v356_v35  ;;  %v357_v50 = vsel %vm5628_vm12, %v352_v41, %v356_v35  ;;  %v590_v62 = vrot.slane %v5617_v19, 5  ;;  %v4238_v0 = vrot.slane %v5607_v12, 9  ;;  %v5214_v19 = vld [vmem:[%s6474_s4 + $0x20] sm:$0xff]  }
 0x136   :  { %v338_v43 = vrot.slane %v337_v39, 4  ;;  %v333_v47 = vsel %vm5628_vm12, %v328_v38, %v332_v32  ;;  %v594_v9 = vrot.slane %v5613_v17, 5  ;;  %v597_v14 = vrot.slane %v5621_v27, 5  ;;  %4865 = vmatprep.subr.bf16.mxu0 %v5214_v19 }
 0x137   :  { %v362_v45 = vrot.slane %v361_v42, 4  ;;  %v4239_v15 = vrot.slane %v5605_v11, 9  ;;  %4866 = vmatpush3.bf16.msra.mxu0 %v5214_v19  ;;  %v5216_v11 = vld [vmem:[%s6474_s4 + $0x30] sm:$0xff]  }
 0x138   :  { %v343_v48 = vsel %vm5628_vm12, %v338_v43, %v342_v44  ;;  %v596_v13 = vrot.slane %v594_v9, 4  ;;  %4867 = vmatprep.subr.bf16.mxu0 %v5215_v20 }
 0x139   :  { %v4218_v49 = vcombine.low %v333_v47, %v343_v48  ;;  %v367_v51 = vsel %vm5628_vm12, %v362_v45, %v366_v46  ;;  %v595_v17 = vsel %vm5666_vm15, %v4239_v15, %v594_v9 }
 0x13a   :  { %v4219_v52 = vcombine.low %v357_v50, %v367_v51  ;;  %v598_v16 = vsel %vm5666_vm15, %v596_v13, %v597_v14  ;;  %v923_v13 = vld [vmem:[#allocation2 + $0x14] sm:$0x1] }
 0x13b   :  { %4813 = vmatprep.mubr.msk.bf16.mxu1 %vm423_vm4, %v4218_v49  ;;  %4868 = vmatpush3.bf16.msra.mxu0 %v5215_v20 }
 0x13c   :  { %4814 = vmatmul.mubr.msk.bf16.vlgmr.msra.gmra.mrb[0].mxu1 %vm423_vm4, %v4219_v52  ;;  %4869 = vmatprep.subr.bf16.mxu0 %v5216_v11 }
 0x13d   :  { %4818 = vmatpush3.bf16.msra.mxu1 %v5569_v22  ;;  %4829 = vmatprep.mubr.msk.bf16.mxu1 %vm423_vm4, %v4228_v55  ;;  %v587_v22 = vrot.slane %v5615_v18, 5  ;;  %v4253_v18 = vcombine.low %v595_v17, %v598_v16 }
 0x13e   :  { %4819 = vmatprep.subr.bf16.mxu1 %v5202_v53 }
 0x13f   :  { %v589_v60 = vrot.slane %v587_v22, 4  ;;  %v588_v3 = vsel %vm5666_vm15, %v4238_v0, %v587_v22  ;;  %4870 = vmatpush3.bf16.msra.mxu0 %v5216_v11 }
 0x140   :  { %4871 = vmatprep.subr.bf16.mxu0 %v5217_v21 }
 0x141   :  { %4820 = vmatpush3.bf16.msra.mxu1 %v5202_v53  ;;  %v591_v1 = vsel %vm5666_vm15, %v589_v60, %v590_v62 }
 0x142   :  { %4821 = vmatprep.subr.bf16.mxu1 %v5203_v56  ;;  %v4252_v5 = vcombine.low %v588_v3, %v591_v1  ;;  %v919_v1 = vld [vmem:[#allocation2 + $0xc] sm:$0xf] }
 0x143   :  { %4872 = vmatpush3.bf16.msra.mxu0 %v5217_v21 }
 0x144   :  { %4877 = vmatprep.subr.bf16.mxu0 %v5717_v23 }
 0x145   :  { %4822 = vmatpush3.bf16.msra.mxu1 %v5203_v56 }
 0x146   :  { %4823 = vmatprep.subr.bf16.mxu1 %v5204_v57 }
 0x149   :  { %4824 = vmatpush3.bf16.msra.mxu1 %v5204_v57 }
 0x14a   :  { %4825 = vmatprep.subr.bf16.mxu1 %v5205_v58 }
 0x14d   :  { %4826 = vmatpush3.bf16.msra.mxu1 %v5205_v58 }
 0x14e   :  { %4827 = vmatprep.subr.bf16.mxu1 %v5206_v59 }
 0x151   :  { %4828 = vmatpush3.bf16.msra.mxu1 %v5206_v59 }
 0x152   :  { %4833 = vmatprep.subr.bf16.mxu1 %v5208_v61 }
 0x154   :  { %4830 = vmatmul.mubr.msk.bf16.vlgmr.msra.gmra.mrb[0].mxu1 %vm423_vm4, %v4229_v2 }
 0x155   :  { %4834 = vmatpush3.bf16.msra.mxu1 %v5208_v61  ;;  %4845 = vmatprep.mubr.msk.bf16.mxu1 %vm423_vm4, %v4252_v5 }
 0x156   :  { %4835 = vmatprep.subr.bf16.mxu1 %v5209_v4 }
 0x159   :  { %4836 = vmatpush3.bf16.msra.mxu1 %v5209_v4 }
 0x15a   :  { %4837 = vmatprep.subr.bf16.mxu1 %v5210_v6 }
 0x15d   :  { %4838 = vmatpush3.bf16.msra.mxu1 %v5210_v6 }
 0x15e   :  { %4839 = vmatprep.subr.bf16.mxu1 %v5211_v7 }
 0x161   :  { %4840 = vmatpush3.bf16.msra.mxu1 %v5211_v7 }
 0x162   :  { %4841 = vmatprep.subr.bf16.mxu1 %v5212_v8 }
 0x165   :  { %4842 = vmatpush3.bf16.msra.mxu1 %v5212_v8 }
 0x166   :  { %4843 = vmatprep.subr.bf16.mxu1 %v5213_v10 }
 0x169   :  { %4844 = vmatpush3.bf16.msra.mxu1 %v5213_v10 }
 0x16c   :  { %4846 = vmatmul.mubr.msk.bf16.vlgmr.msra.gmra.mrb[0].mxu1 %vm423_vm4, %v4253_v18  ;;  %vm5735_vm4 = vmand %vm914_vm1, %vm237_vm5  ;;  %v916_v18 = vld [vmem:[#allocation2 + $0x8] sm:$0x1]  ;;  %vm4062_vm5 = vcmask 130048  }
 0x1f5   :  { %v5720_v24 = vpop.f32.mrb[4].mxu0 }
 0x1f6   :  { %v5722_v25 = vpop.f32.mrb[5].mxu0 }
 0x1f7   :  { %v5724_v26 = vpop.f32.mrb[6].mxu0 }
 0x1f8   :  { %v5726_v27 = vpop.f32.mrb[7].mxu0 }
 0x23f   :  { %v4847_v30 = vpop.f32.mrb[0].mxu1 }
 0x240   :  { %v719_v31 = vmul.f32 %v4847_v30, %v4262_v28  ;;  %v694_v32 = vpop.f32.mrb[1].mxu1 }
 0x241   :  { %v717_v33 = vmul.f32 %v4262_v28, %v694_v32  ;;  %v4848_v34 = vpop.f32.mrb[2].mxu1 }
 0x242   :  { %v727_v35 = vadd.f32 %v4263_v29, %v719_v31  ;;  %v720_v36 = vmul.f32 %v4848_v34, %v4262_v28  ;;  %v697_v37 = vpop.f32.mrb[3].mxu1 }
 0x243   :  { %v725_v38 = vadd.f32 %v4263_v29, %v717_v33  ;;  %v718_v39 = vmul.f32 %v4262_v28, %v697_v37 }
 0x244   :  { %v731_v41 = vmax.f32 %v727_v35, 0.0  ;;  %v728_v42 = vadd.f32 %v4263_v29, %v720_v36 }
 0x245   :  { %v729_v43 = vmax.f32 %v725_v38, 0.0  ;;  %v726_v44 = vadd.f32 %v4263_v29, %v718_v39 }
 0x246   :  { %v4595_v45 = vpack.c.bf16 %v731_v41, %v731_v41  ;;  %v732_v46 = vmax.f32 %v728_v42, 0.0 }
 0x247   :  { %v4593_v47 = vpack.c.bf16 %v729_v43, %v729_v43  ;;  %v730_v48 = vmax.f32 %v726_v44, 0.0 }
 0x248   :  { %v886_v49 = vshrl.u32 %v4595_v45, 16  ;;  %v4596_v50 = vpack.c.bf16 %v732_v46, %v732_v46  ;;  %v889_v55 = vshll.u32 %v4595_v45, 16 }
 0x249   :  { %v869_v51 = vshrl.u32 %v4593_v47, 16  ;;  %v4594_v52 = vpack.c.bf16 %v730_v48, %v730_v48  ;;  %v872_v22 = vshll.u32 %v4593_v47, 16 }
 0x24a   :  { %v888_v53 = vrot.slane %v886_v49, 7  ;;  %v894_v56 = vshrl.u32 %v4596_v50, 16  ;;  %v897_v62 = vshll.u32 %v4596_v50, 16 }
 0x24b   :  { %v871_v58 = vrot.slane %v869_v51, 7  ;;  %v877_v59 = vshrl.u32 %v4594_v52, 16  ;;  %v880_v4 = vshll.u32 %v4594_v52, 16 }
 0x24c   :  { %v891_v60 = vor.u32 %v889_v55, %v888_v53  ;;  %v896_v61 = vrot.slane %v894_v56, 7  ;;  %v892_v5 = vrot.slane %v888_v53, 4 }
 0x24d   :  { %v874_v2 = vor.u32 %v872_v22, %v871_v58  ;;  %v879_v3 = vrot.slane %v877_v59, 7  ;;  %v875_v9 = vrot.slane %v871_v58, 4 }
 0x24e   :  { %v920_v6 = vsel %vm5730_vm2, %v891_v60, %v919_v1  ;;  %v899_v7 = vor.u32 %v897_v62, %v896_v61  ;;  %v901_v8 = vrot.slane %v896_v61, 4 }
 0x24f   :  { %921 = vst [vmem:[#allocation2 + $0xc] sm:$0xf] %v920_v6  ;;  %v910_v10 = vsel %vm5730_vm2, %v874_v2, %v5607_v12  ;;  %v882_v14 = vor.u32 %v880_v4, %v879_v3  ;;  %v884_v15 = vrot.slane %v879_v3, 4 }
 0x250   :  { %911 = vst [vmem:[#allocation2] sm:$0xf] %v910_v10  ;;  %v900_v16 = vsel %vm5580_vm8, %v892_v5, %v899_v7  ;;  %v924_v17 = vsel %vm5735_vm4, %v901_v8, %v923_v13  ;;  %v5220_v5 = vld [vmem:[%s6474_s4 + $0x8] sm:$0xff]   ;;  %v5221_v7 = vld [vmem:[%s6474_s4 + $0x10] sm:$0xff]  }
 0x251   :  { %922 = vst.msk [vmem:[#allocation2 + $0x10] sm:$0xf] %vm908_vm0, %v900_v16  ;;  %925 = vst [vmem:[#allocation2 + $0x14] sm:$0x1] %v924_v17  ;;  %v883_v19 = vsel %vm5580_vm8, %v875_v9, %v882_v14  ;;  %v917_v12 = vsel %vm5735_vm4, %v884_v15, %v916_v18  ;;  %v5222_v9 = vld [vmem:[%s6474_s4 + $0x18] sm:$0xff]   ;;  %v5225_v18 = vld [vmem:[%s6474_s4 + $0x48] sm:$0xff]  }
 0x252   :  { %913 = vst.msk [vmem:[#allocation2 + $0x4] sm:$0xf] %vm908_vm0, %v883_v19  ;;  %918 = vst [vmem:[#allocation2 + $0x8] sm:$0x1] %v917_v12  ;;  %v5226_v12 = vld [vmem:[%s6474_s4 + $0x50] sm:$0xff]  }
 0x256   :  { %v5754_v20 = vld [vmem:[#allocation2 + $0xc] sm:$0xf] }
 0x257   :  { %v5756_v11 = vld [vmem:[#allocation2] sm:$0xf]  ;;  %v965_v21 = vshrl.u32 %v5754_v20, 16  ;;  %v968_v28 = vshll.u32 %v5754_v20, 16 }
 0x258   :  { %v941_v29 = vshrl.u32 %v5756_v11, 16  ;;  %v944_v30 = vshll.u32 %v5756_v11, 16  ;;  %v5762_v31 = vld [vmem:[#allocation2 + $0x10] sm:$0xf]  ;;  %v5764_v41 = vld [vmem:[#allocation2 + $0x14] sm:$0x1] }
 0x259   :  { %v927_v32 = vld [vmem:[#allocation2 + $0x4] sm:$0xf]  ;;  %v928_v33 = vld [vmem:[#allocation2 + $0x8] sm:$0x1]  ;;  %v967_v34 = vrot.slane %v965_v21, 4  ;;  %v970_v35 = vrot.slane %v968_v28, 5  ;;  %v4295_v16 = vcombine.low %v5754_v20, %v5762_v31 }
 0x25a   :  { %v943_v36 = vrot.slane %v941_v29, 4  ;;  %v946_v37 = vrot.slane %v944_v30, 5  ;;  %v950_v38 = vshll.u32 %v927_v32, 16  ;;  %v954_v39 = vshrl.u32 %v927_v32, 16  ;;  %v5227_v28 = vld [vmem:[%s6474_s4 + $0x58] sm:$0xff]  }
 0x25b   :  { %v971_v42 = vor.u32 %v970_v35, %v967_v34  ;;  %v974_v43 = vshll.u32 %v5762_v31, 16  ;;  %v978_v44 = vshrl.u32 %v5762_v31, 16  ;;  %v960_v48 = vshll.u32 %v928_v33, 16  ;;  %v5228_v35 = vld [vmem:[%s6476_s6 + $0x20] sm:$0xff]  }
 0x25c   :  { %v947_v45 = vor.u32 %v946_v37, %v943_v36  ;;  %v952_v46 = vrot.slane %v950_v38, 5  ;;  %v956_v47 = vrot.slane %v954_v39, 4  ;;  %v984_v51 = vshll.u32 %v5764_v41, 16  ;;  %v5229_v36 = vld [vmem:[%s6476_s6 + $0x28] sm:$0xff]   ;;  %4901 = vmatprep.subr.bf16.mxu1 %v5228_v35  ;;  %v5231_v37 = vld [vmem:[%s6476_s6 + $0x38] sm:$0xff]   ;;  %v5835_v38 = vld [vmem:[%s6476_s6] sm:$0xff]  }
 0x25d   :  { %v976_v49 = vrot.slane %v974_v43, 5  ;;  %v980_v50 = vrot.slane %v978_v44, 4  ;;  %v972_v55 = vrot.slane %v971_v42, 4  ;;  %v962_v22 = vrot.slane %v960_v48, 5  ;;  %4902 = vmatpush3.bf16.msra.mxu1 %v5228_v35  ;;  %v4272_v39 = vld [vmem:[#allocation6 + $0x5] ss:$0 sm:$0xff] }
 0x25e   :  { %v948_v52 = vrot.slane %v947_v45, 4  ;;  %v957_v53 = vor.u32 %v956_v47, %v952_v46  ;;  %v986_v60 = vrot.slane %v984_v51, 5  ;;  %v4294_v6 = vcombine.low %v5756_v11, %v927_v32  ;;  %4903 = vmatprep.subr.bf16.mxu1 %v5229_v36  ;;  %v4273_v43 = vld [vmem:[#allocation6 + $0x6] ss:$0 sm:$0xff]  ;;  %v4321_v45 = vld [vmem:[#allocation6 + $0x4] ss:$0 sm:$0xff] }
 0x25f   :  { %v981_v56 = vor.u32 %v980_v50, %v976_v49  ;;  %v977_v2 = vsel %vm5628_vm12, %v972_v55, %v976_v49  ;;  %v1176_v8 = vrot.slane %v927_v32, 5  ;;  %v1179_v13 = vrot.slane %v928_v33, 5 }
 0x260   :  { %v958_v58 = vrot.slane %v957_v53, 4  ;;  %v953_v61 = vsel %vm5628_vm12, %v948_v52, %v952_v46  ;;  %v4302_v14 = vrot.slane %v5756_v11, 9  ;;  %v1183_v21 = vrot.slane %v5762_v31, 5 }
 0x261   :  { %v982_v59 = vrot.slane %v981_v56, 4  ;;  %v1178_v10 = vrot.slane %v1176_v8, 4  ;;  %v1186_v30 = vrot.slane %v5764_v41, 5  ;;  %v4303_v32 = vrot.slane %v5754_v20, 9  ;;  %v5230_v20 = vld [vmem:[%s6476_s6 + $0x30] sm:$0xff]   ;;  %4904 = vmatpush3.bf16.msra.mxu1 %v5229_v36 }
 0x262   :  { %v963_v62 = vsel %vm5628_vm12, %v958_v58, %v962_v22  ;;  %v1177_v17 = vsel %vm5666_vm15, %v4302_v14, %v1176_v8  ;;  %v1185_v29 = vrot.slane %v1183_v21, 4  ;;  %4905 = vmatprep.subr.bf16.mxu1 %v5230_v20  ;;  %v4320_v41 = vld [vmem:[#allocation6 + $0x3] ss:$0 sm:$0xff]  ;;  %v843_v42 = vmul.f32 %v5720_v24, %v4272_v39 }
 0x263   :  { %v4286_v1 = vcombine.low %v953_v61, %v963_v62  ;;  %v987_v3 = vsel %vm5628_vm12, %v982_v59, %v986_v60  ;;  %v1180_v15 = vsel %vm5666_vm15, %v1178_v10, %v1179_v13  ;;  %v1184_v31 = vsel %vm5666_vm15, %v4303_v32, %v1183_v21 }
 0x264   :  { %v4287_v4 = vcombine.low %v977_v2, %v987_v3  ;;  %v4312_v19 = vcombine.low %v1177_v17, %v1180_v15  ;;  %v1187_v33 = vsel %vm5666_vm15, %v1185_v29, %v1186_v30  ;;  %v841_v44 = vmul.f32 %v4272_v39, %v5722_v25  ;;  %v1370_v29 = vld [vmem:[#allocation2 + $0xc] sm:$0xf] }
 0x265   :  { %4873 = vmatprep.mubr.msk.bf16.mxu0 %vm1027_vm6, %v4286_v1  ;;  %v4313_v34 = vcombine.low %v1184_v31, %v1187_v33  ;;  %4906 = vmatpush3.bf16.msra.mxu1 %v5230_v20  ;;  %v844_v47 = vmul.f32 %v5724_v26, %v4272_v39  ;;  %v842_v50 = vmul.f32 %v4272_v39, %v5726_v27  ;;  %v1374_v39 = vld [vmem:[#allocation2 + $0x14] sm:$0x1] }
 0x266   :  { %4874 = vmatmul.mubr.msk.bf16.vlgmr.msra.gmra.mrb[8].mxu0 %vm1027_vm6, %v4287_v4  ;;  %4907 = vmatprep.subr.bf16.mxu1 %v5231_v37  ;;  %v852_v53 = vadd.f32 %v4273_v43, %v843_v42  ;;  %v850_v22 = vadd.f32 %v4273_v43, %v841_v44 }
 0x267   :  { %4878 = vmatpush3.bf16.msra.mxu0 %v5717_v23  ;;  %4885 = vmatprep.mubr.msk.bf16.mxu0 %vm1027_vm6, %v4294_v6  ;;  %v5224_v23 = vld [vmem:[%s6474_s4 + $0x40] sm:$0xff]   ;;  %v853_v60 = vadd.f32 %v4273_v43, %v844_v47  ;;  %v851_v62 = vadd.f32 %v4273_v43, %v842_v50 }
 0x268   :  { %4879 = vmatprep.subr.bf16.mxu0 %v5220_v5 }
 0x269   :  { %4908 = vmatpush3.bf16.msra.mxu1 %v5231_v37 }
 0x26a   :  { %4913 = vmatprep.subr.bf16.mxu1 %v5835_v38 }
 0x26b   :  { %4880 = vmatpush3.bf16.msra.mxu0 %v5220_v5 }
 0x26c   :  { %4881 = vmatprep.subr.bf16.mxu0 %v5221_v7 }
 0x26f   :  { %4882 = vmatpush3.bf16.msra.mxu0 %v5221_v7 }
 0x270   :  { %4883 = vmatprep.subr.bf16.mxu0 %v5222_v9 }
 0x273   :  { %4884 = vmatpush3.bf16.msra.mxu0 %v5222_v9 }
 0x274   :  { %4889 = vmatprep.subr.bf16.mxu0 %v5224_v23 }
 0x276   :  { %4886 = vmatmul.mubr.msk.bf16.vlgmr.msra.gmra.mrb[8].mxu0 %vm1027_vm6, %v4295_v16 }
 0x277   :  { %4890 = vmatpush3.bf16.msra.mxu0 %v5224_v23  ;;  %4897 = vmatprep.mubr.msk.bf16.mxu0 %vm1027_vm6, %v4312_v19 }
 0x278   :  { %4891 = vmatprep.subr.bf16.mxu0 %v5225_v18 }
 0x27b   :  { %4892 = vmatpush3.bf16.msra.mxu0 %v5225_v18 }
 0x27c   :  { %4893 = vmatprep.subr.bf16.mxu0 %v5226_v12 }
 0x27f   :  { %4894 = vmatpush3.bf16.msra.mxu0 %v5226_v12 }
 0x280   :  { %4895 = vmatprep.subr.bf16.mxu0 %v5227_v28 }
 0x283   :  { %4896 = vmatpush3.bf16.msra.mxu0 %v5227_v28 }
 0x286   :  { %4898 = vmatmul.mubr.msk.bf16.vlgmr.msra.gmra.mrb[8].mxu0 %vm1027_vm6, %v4313_v34 }
 0x359   :  { %v4899_v46 = vpop.f32.mrb[8].mxu0 }
 0x35a   :  { %v1292_v48 = vmul.f32 %v4899_v46, %v4320_v41  ;;  %v1267_v49 = vpop.f32.mrb[9].mxu0 }
 0x35b   :  { %v1290_v51 = vmul.f32 %v4320_v41, %v1267_v49  ;;  %v4900_v52 = vpop.f32.mrb[10].mxu0 }
 0x35c   :  { %v1300_v55 = vadd.f32 %v4321_v45, %v1292_v48  ;;  %v1293_v56 = vmul.f32 %v4900_v52, %v4320_v41  ;;  %v1270_v58 = vpop.f32.mrb[11].mxu0 }
 0x35d   :  { %v1298_v59 = vadd.f32 %v4321_v45, %v1290_v51  ;;  %v1291_v24 = vmul.f32 %v4320_v41, %v1270_v58 }
 0x35e   :  { %v1304_v61 = vadd.f32 %v1300_v55, %v852_v53  ;;  %v1301_v25 = vadd.f32 %v4321_v45, %v1293_v56 }
 0x35f   :  { %v1302_v1 = vadd.f32 %v1298_v59, %v850_v22  ;;  %v1299_v2 = vadd.f32 %v4321_v45, %v1291_v24  ;;  %v1367_v45 = vld [vmem:[#allocation2 + $0x8] sm:$0x1] }
 0x360   :  { %v5842_v26 = vmax.f32 %v1304_v61, 0.0  ;;  %v1305_v3 = vadd.f32 %v1301_v25, %v853_v60 }
 0x361   :  { %v5844_v4 = vmax.f32 %v1302_v1, 0.0  ;;  %v1303_v27 = vadd.f32 %v1299_v2, %v851_v62 }
 0x362   :  { %v4599_v5 = vpack.c.bf16 %v5842_v26, %v5842_v26  ;;  %v5848_v6 = vmax.f32 %v1305_v3, 0.0 }
 0x363   :  { %v4597_v7 = vpack.c.bf16 %v5844_v4, %v5844_v4  ;;  %v5852_v8 = vmax.f32 %v1303_v27, 0.0 }
 0x364   :  { %v1342_v9 = vshrl.u32 %v4599_v5, 16  ;;  %v4600_v10 = vpack.c.bf16 %v5848_v6, %v5848_v6  ;;  %v1345_v15 = vshll.u32 %v4599_v5, 16 }
 0x365   :  { %v1325_v23 = vshrl.u32 %v4597_v7, 16  ;;  %v4598_v13 = vpack.c.bf16 %v5852_v8, %v5852_v8  ;;  %v1328_v18 = vshll.u32 %v4597_v7, 16 }
 0x366   :  { %v1344_v14 = vrot.slane %v1342_v9, 7  ;;  %v1350_v16 = vshrl.u32 %v4600_v10, 16  ;;  %v1353_v28 = vshll.u32 %v4600_v10, 16 }
 0x367   :  { %v1327_v17 = vrot.slane %v1325_v23, 7  ;;  %v1333_v19 = vshrl.u32 %v4598_v13, 16  ;;  %v1336_v33 = vshll.u32 %v4598_v13, 16 }
 0x368   :  { %v1347_v12 = vor.u32 %v1345_v15, %v1344_v14  ;;  %v1352_v21 = vrot.slane %v1350_v16, 7  ;;  %v1348_v31 = vrot.slane %v1344_v14, 4 }
 0x369   :  { %v1330_v30 = vor.u32 %v1328_v18, %v1327_v17  ;;  %v1335_v32 = vrot.slane %v1333_v19, 7  ;;  %v1331_v20 = vrot.slane %v1327_v17, 4 }
 0x36a   :  { %v1371_v34 = vsel %vm5730_vm2, %v1347_v12, %v1370_v29  ;;  %v1355_v35 = vor.u32 %v1353_v28, %v1352_v21  ;;  %v1357_v36 = vrot.slane %v1352_v21, 4 }
 0x36b   :  { %1372 = vst [vmem:[#allocation2 + $0xc] sm:$0xf] %v1371_v34  ;;  %v1364_v37 = vsel %vm5730_vm2, %v1330_v30, %v5756_v11  ;;  %v1338_v41 = vor.u32 %v1336_v33, %v1335_v32  ;;  %v1340_v42 = vrot.slane %v1335_v32, 4 }
 0x36c   :  { %1365 = vst [vmem:[#allocation2] sm:$0xf] %v1364_v37  ;;  %v1356_v43 = vsel %vm5580_vm8, %v1348_v31, %v1355_v35  ;;  %v1375_v44 = vsel %vm5735_vm4, %v1357_v36, %v1374_v39  ;;  %v5234_v31 = vld [vmem:[%s6476_s6 + $0x8] sm:$0xff]   ;;  %v5235_v35 = vld [vmem:[%s6476_s6 + $0x10] sm:$0xff]  }
 0x36d   :  { %1373 = vst.msk [vmem:[#allocation2 + $0x10] sm:$0xf] %vm908_vm0, %v1356_v43  ;;  %1376 = vst [vmem:[#allocation2 + $0x14] sm:$0x1] %v1375_v44  ;;  %v1339_v46 = vsel %vm5580_vm8, %v1331_v20, %v1338_v41  ;;  %v1368_v11 = vsel %vm5735_vm4, %v1340_v42, %v1367_v45  ;;  %v5236_v20 = vld [vmem:[%s6476_s6 + $0x18] sm:$0xff]   ;;  %v5239_v45 = vld [vmem:[%s6476_s6 + $0x48] sm:$0xff]  }
 0x36e   :  { %1366 = vst.msk [vmem:[#allocation2 + $0x4] sm:$0xf] %vm908_vm0, %v1339_v46  ;;  %1369 = vst [vmem:[#allocation2 + $0x8] sm:$0x1] %v1368_v11  ;;  %v5240_v11 = vld [vmem:[%s6476_s6 + $0x50] sm:$0xff]  }
 0x372   :  { %v5873_v47 = vld [vmem:[#allocation2 + $0xc] sm:$0xf] }
 0x373   :  { %v5875_v48 = vld [vmem:[#allocation2] sm:$0xf]  ;;  %v1416_v49 = vshrl.u32 %v5873_v47, 16  ;;  %v1419_v50 = vshll.u32 %v5873_v47, 16 }
 0x374   :  { %v1392_v51 = vshrl.u32 %v5875_v48, 16  ;;  %v1395_v52 = vshll.u32 %v5875_v48, 16  ;;  %v5881_v53 = vld [vmem:[#allocation2 + $0x10] sm:$0xf]  ;;  %v5883_v25 = vld [vmem:[#allocation2 + $0x14] sm:$0x1] }
 0x375   :  { %v1378_v55 = vld [vmem:[#allocation2 + $0x4] sm:$0xf]  ;;  %v1379_v56 = vld [vmem:[#allocation2 + $0x8] sm:$0x1]  ;;  %v1418_v58 = vrot.slane %v1416_v49, 4  ;;  %v1421_v22 = vrot.slane %v1419_v50, 5  ;;  %v4343_v43 = vcombine.low %v5873_v47, %v5881_v53 }
 0x376   :  { %v1394_v59 = vrot.slane %v1392_v51, 4  ;;  %v1397_v24 = vrot.slane %v1395_v52, 5  ;;  %v1401_v60 = vshll.u32 %v1378_v55, 16  ;;  %v1405_v61 = vshrl.u32 %v1378_v55, 16  ;;  %v5241_v50 = vld [vmem:[%s6476_s6 + $0x58] sm:$0xff]  }
 0x377   :  { %v1422_v62 = vor.u32 %v1421_v22, %v1418_v58  ;;  %v1425_v1 = vshll.u32 %v5881_v53, 16  ;;  %v1429_v2 = vshrl.u32 %v5881_v53, 16  ;;  %v1411_v7 = vshll.u32 %v1379_v56, 16  ;;  %v5242_v22 = vld [vmem:[%s6477_s7 + $0x20] sm:$0xff]  }
 0x378   :  { %v1398_v3 = vor.u32 %v1397_v24, %v1394_v59  ;;  %v1403_v27 = vrot.slane %v1401_v60, 5  ;;  %v1407_v5 = vrot.slane %v1405_v61, 4  ;;  %v1435_v23 = vshll.u32 %v5883_v25, 16  ;;  %v5243_v59 = vld [vmem:[%s6477_s7 + $0x28] sm:$0xff]   ;;  %4937 = vmatprep.subr.bf16.mxu0 %v5242_v22  ;;  %v5245_v24 = vld [vmem:[%s6477_s7 + $0x38] sm:$0xff]   ;;  %v5954_v60 = vld [vmem:[%s6477_s7] sm:$0xff]  }
 0x379   :  { %v1427_v9 = vrot.slane %v1425_v1, 5  ;;  %v1431_v10 = vrot.slane %v1429_v2, 4  ;;  %v1423_v15 = vrot.slane %v1422_v62, 4  ;;  %v1413_v18 = vrot.slane %v1411_v7, 5  ;;  %4938 = vmatpush3.bf16.msra.mxu0 %v5242_v22  ;;  %v4368_v61 = vld [vmem:[#allocation6 + $0x7] ss:$0 sm:$0xff] }
 0x37a   :  { %v1399_v13 = vrot.slane %v1398_v3, 4  ;;  %v1408_v14 = vor.u32 %v1407_v5, %v1403_v27  ;;  %v1437_v12 = vrot.slane %v1435_v23, 5  ;;  %v4342_v34 = vcombine.low %v5875_v48, %v1378_v55  ;;  %4939 = vmatprep.subr.bf16.mxu0 %v5243_v59 }
 0x37b   :  { %v1432_v16 = vor.u32 %v1431_v10, %v1427_v9  ;;  %v1428_v30 = vsel %vm5628_vm12, %v1423_v15, %v1427_v9  ;;  %v1626_v36 = vrot.slane %v1378_v55, 5  ;;  %v1629_v39 = vrot.slane %v1379_v56, 5 }
 0x37c   :  { %v1409_v17 = vrot.slane %v1408_v14, 4  ;;  %v1404_v21 = vsel %vm5628_vm12, %v1399_v13, %v1403_v27  ;;  %v4350_v41 = vrot.slane %v5875_v48, 9  ;;  %v1633_v49 = vrot.slane %v5881_v53, 5 }
 0x37d   :  { %v1433_v19 = vrot.slane %v1432_v16, 4  ;;  %v1628_v37 = vrot.slane %v1626_v36, 4  ;;  %v1636_v52 = vrot.slane %v5883_v25, 5  ;;  %v4351_v55 = vrot.slane %v5873_v47, 9  ;;  %v5244_v47 = vld [vmem:[%s6477_s7 + $0x30] sm:$0xff]   ;;  %4940 = vmatpush3.bf16.msra.mxu0 %v5243_v59 }
 0x37e   :  { %v1414_v28 = vsel %vm5628_vm12, %v1409_v17, %v1413_v18  ;;  %v1627_v44 = vsel %vm5666_vm15, %v4350_v41, %v1626_v36  ;;  %v1635_v51 = vrot.slane %v1633_v49, 4  ;;  %4941 = vmatprep.subr.bf16.mxu0 %v5244_v47  ;;  %v4369_v25 = vld [vmem:[#allocation6 + $0x8] ss:$0 sm:$0xff] }
 0x37f   :  { %v4334_v29 = vcombine.low %v1404_v21, %v1414_v28  ;;  %v1438_v32 = vsel %vm5628_vm12, %v1433_v19, %v1437_v12  ;;  %v1630_v42 = vsel %vm5666_vm15, %v1628_v37, %v1629_v39  ;;  %v1634_v53 = vsel %vm5666_vm15, %v4351_v55, %v1633_v49  ;;  %v1816_v39 = vld [vmem:[#allocation2 + $0xc] sm:$0xf] }
 0x380   :  { %v4335_v33 = vcombine.low %v1428_v30, %v1438_v32  ;;  %v4360_v46 = vcombine.low %v1627_v44, %v1630_v42  ;;  %v1637_v56 = vsel %vm5666_vm15, %v1635_v51, %v1636_v52  ;;  %v1820_v51 = vld [vmem:[#allocation2 + $0x14] sm:$0x1] }
 0x381   :  { %4909 = vmatprep.mubr.msk.bf16.mxu1 %vm1027_vm6, %v4334_v29  ;;  %v4361_v58 = vcombine.low %v1634_v53, %v1637_v56  ;;  %4942 = vmatpush3.bf16.msra.mxu0 %v5244_v47 }
 0x382   :  { %4910 = vmatmul.mubr.msk.bf16.vlgmr.msra.gmra.mrb[4].mxu1 %vm1027_vm6, %v4335_v33  ;;  %4943 = vmatprep.subr.bf16.mxu0 %v5245_v24 }
 0x383   :  { %4914 = vmatpush3.bf16.msra.mxu1 %v5835_v38  ;;  %4921 = vmatprep.mubr.msk.bf16.mxu1 %vm1027_vm6, %v4342_v34  ;;  %v5238_v38 = vld [vmem:[%s6476_s6 + $0x40] sm:$0xff]  }
 0x384   :  { %4915 = vmatprep.subr.bf16.mxu1 %v5234_v31 }
 0x385   :  { %4944 = vmatpush3.bf16.msra.mxu0 %v5245_v24 }
 0x386   :  { %4949 = vmatprep.subr.bf16.mxu0 %v5954_v60 }
 0x387   :  { %4916 = vmatpush3.bf16.msra.mxu1 %v5234_v31 }
 0x388   :  { %4917 = vmatprep.subr.bf16.mxu1 %v5235_v35 }
 0x38b   :  { %4918 = vmatpush3.bf16.msra.mxu1 %v5235_v35 }
 0x38c   :  { %4919 = vmatprep.subr.bf16.mxu1 %v5236_v20 }
 0x38f   :  { %4920 = vmatpush3.bf16.msra.mxu1 %v5236_v20 }
 0x390   :  { %4925 = vmatprep.subr.bf16.mxu1 %v5238_v38 }
 0x392   :  { %4922 = vmatmul.mubr.msk.bf16.vlgmr.msra.gmra.mrb[4].mxu1 %vm1027_vm6, %v4343_v43 }
 0x393   :  { %4926 = vmatpush3.bf16.msra.mxu1 %v5238_v38  ;;  %4933 = vmatprep.mubr.msk.bf16.mxu1 %vm1027_vm6, %v4360_v46 }
 0x394   :  { %4927 = vmatprep.subr.bf16.mxu1 %v5239_v45 }
 0x397   :  { %4928 = vmatpush3.bf16.msra.mxu1 %v5239_v45 }
 0x398   :  { %4929 = vmatprep.subr.bf16.mxu1 %v5240_v11 }
 0x39b   :  { %4930 = vmatpush3.bf16.msra.mxu1 %v5240_v11 }
 0x39c   :  { %4931 = vmatprep.subr.bf16.mxu1 %v5241_v50 }
 0x39f   :  { %4932 = vmatpush3.bf16.msra.mxu1 %v5241_v50 }
 0x3a2   :  { %4934 = vmatmul.mubr.msk.bf16.vlgmr.msra.gmra.mrb[4].mxu1 %vm1027_vm6, %v4361_v58  ;;  %v1813_v58 = vld [vmem:[#allocation2 + $0x8] sm:$0x1] }
 0x475   :  { %v4935_v62 = vpop.f32.mrb[4].mxu1 }
 0x476   :  { %v1742_v1 = vmul.f32 %v4935_v62, %v4368_v61  ;;  %v1717_v2 = vpop.f32.mrb[5].mxu1 }
 0x477   :  { %v1740_v3 = vmul.f32 %v4368_v61, %v1717_v2  ;;  %v4936_v27 = vpop.f32.mrb[6].mxu1 }
 0x478   :  { %v1750_v5 = vadd.f32 %v4369_v25, %v1742_v1  ;;  %v1743_v7 = vmul.f32 %v4936_v27, %v4368_v61  ;;  %v1720_v9 = vpop.f32.mrb[7].mxu1 }
 0x479   :  { %v1748_v10 = vadd.f32 %v4369_v25, %v1740_v3  ;;  %v1741_v23 = vmul.f32 %v4368_v61, %v1720_v9 }
 0x47a   :  { %v1754_v13 = vmax.f32 %v1750_v5, 0.0  ;;  %v1751_v14 = vadd.f32 %v4369_v25, %v1743_v7 }
 0x47b   :  { %v1752_v15 = vmax.f32 %v1748_v10, 0.0  ;;  %v1749_v16 = vadd.f32 %v4369_v25, %v1741_v23 }
 0x47c   :  { %v4603_v17 = vpack.c.bf16 %v1754_v13, %v1754_v13  ;;  %v1755_v18 = vmax.f32 %v1751_v14, 0.0 }
 0x47d   :  { %v4601_v19 = vpack.c.bf16 %v1752_v15, %v1752_v15  ;;  %v1753_v12 = vmax.f32 %v1749_v16, 0.0 }
 0x47e   :  { %v1788_v21 = vshrl.u32 %v4603_v17, 16  ;;  %v4604_v28 = vpack.c.bf16 %v1755_v18, %v1755_v18  ;;  %v1791_v33 = vshll.u32 %v4603_v17, 16 }
 0x47f   :  { %v1771_v29 = vshrl.u32 %v4601_v19, 16  ;;  %v4602_v30 = vpack.c.bf16 %v1753_v12, %v1753_v12  ;;  %v1774_v35 = vshll.u32 %v4601_v19, 16 }
 0x480   :  { %v1790_v32 = vrot.slane %v1788_v21, 7  ;;  %v1796_v31 = vshrl.u32 %v4604_v28, 16  ;;  %v1799_v38 = vshll.u32 %v4604_v28, 16 }
 0x481   :  { %v1773_v34 = vrot.slane %v1771_v29, 7  ;;  %v1779_v36 = vshrl.u32 %v4602_v30, 16  ;;  %v1782_v43 = vshll.u32 %v4602_v30, 16 }
 0x482   :  { %v1793_v20 = vor.u32 %v1791_v33, %v1790_v32  ;;  %v1798_v37 = vrot.slane %v1796_v31, 7  ;;  %v1794_v44 = vrot.slane %v1790_v32, 4 }
 0x483   :  { %v1776_v41 = vor.u32 %v1774_v35, %v1773_v34  ;;  %v1781_v42 = vrot.slane %v1779_v36, 7  ;;  %v1777_v49 = vrot.slane %v1773_v34, 4 }
 0x484   :  { %v1817_v45 = vsel %vm5730_vm2, %v1793_v20, %v1816_v39  ;;  %v1801_v46 = vor.u32 %v1799_v38, %v1798_v37  ;;  %v1803_v11 = vrot.slane %v1798_v37, 4 }
 0x485   :  { %1818 = vst [vmem:[#allocation2 + $0xc] sm:$0xf] %v1817_v45  ;;  %v1810_v50 = vsel %vm5730_vm2, %v1776_v41, %v5875_v48  ;;  %v1784_v52 = vor.u32 %v1782_v43, %v1781_v42  ;;  %v1786_v55 = vrot.slane %v1781_v42, 4 }
 0x486   :  { %1811 = vst [vmem:[#allocation2] sm:$0xf] %v1810_v50  ;;  %v1802_v56 = vsel %vm5580_vm8, %v1794_v44, %v1801_v46  ;;  %v1821_v53 = vsel %vm5735_vm4, %v1803_v11, %v1820_v51  ;;  %v5248_v44 = vld [vmem:[%s6477_s7 + $0x8] sm:$0xff]   ;;  %v5249_v46 = vld [vmem:[%s6477_s7 + $0x10] sm:$0xff]  }
 0x487   :  { %1819 = vst.msk [vmem:[#allocation2 + $0x10] sm:$0xf] %vm908_vm0, %v1802_v56  ;;  %1822 = vst [vmem:[#allocation2 + $0x14] sm:$0x1] %v1821_v53  ;;  %v1785_v22 = vsel %vm5580_vm8, %v1777_v49, %v1784_v52  ;;  %v1814_v48 = vsel %vm5735_vm4, %v1786_v55, %v1813_v58  ;;  %v5250_v49 = vld [vmem:[%s6477_s7 + $0x18] sm:$0xff]   ;;  %v5253_v58 = vld [vmem:[%s6477_s7 + $0x48] sm:$0xff]  }
 0x488   :  { %1812 = vst.msk [vmem:[#allocation2 + $0x4] sm:$0xf] %vm908_vm0, %v1785_v22  ;;  %1815 = vst [vmem:[#allocation2 + $0x8] sm:$0x1] %v1814_v48  ;;  %v5254_v48 = vld [vmem:[%s6477_s7 + $0x50] sm:$0xff]  }
 0x48c   :  { %v5972_v59 = vld [vmem:[#allocation2 + $0xc] sm:$0xf] }
 0x48d   :  { %v5974_v47 = vld [vmem:[#allocation2] sm:$0xf]  ;;  %v1862_v24 = vshrl.u32 %v5972_v59, 16  ;;  %v1865_v61 = vshll.u32 %v5972_v59, 16 }
 0x48e   :  { %v1838_v25 = vshrl.u32 %v5974_v47, 16  ;;  %v1841_v62 = vshll.u32 %v5974_v47, 16  ;;  %v5980_v1 = vld [vmem:[#allocation2 + $0x10] sm:$0xf]  ;;  %v5982_v13 = vld [vmem:[#allocation2 + $0x14] sm:$0x1] }
 0x48f   :  { %v1824_v2 = vld [vmem:[#allocation2 + $0x4] sm:$0xf]  ;;  %v1825_v3 = vld [vmem:[#allocation2 + $0x8] sm:$0x1]  ;;  %v1864_v27 = vrot.slane %v1862_v24, 4  ;;  %v1867_v5 = vrot.slane %v1865_v61, 5  ;;  %v4391_v56 = vcombine.low %v5972_v59, %v5980_v1 }
 0x490   :  { %v1840_v7 = vrot.slane %v1838_v25, 4  ;;  %v1843_v9 = vrot.slane %v1841_v62, 5  ;;  %v1847_v10 = vshll.u32 %v1824_v2, 16  ;;  %v1851_v23 = vshrl.u32 %v1824_v2, 16  ;;  %v5255_v61 = vld [vmem:[%s6477_s7 + $0x58] sm:$0xff]  }
 0x491   :  { %v1868_v14 = vor.u32 %v1867_v5, %v1864_v27  ;;  %v1871_v15 = vshll.u32 %v5980_v1, 16  ;;  %v1875_v16 = vshrl.u32 %v5980_v1, 16  ;;  %v1857_v12 = vshll.u32 %v1825_v3, 16 }
 0x492   :  { %v1844_v17 = vor.u32 %v1843_v9, %v1840_v7  ;;  %v1849_v18 = vrot.slane %v1847_v10, 5  ;;  %v1853_v19 = vrot.slane %v1851_v23, 4  ;;  %v1881_v29 = vshll.u32 %v5982_v13, 16  ;;  %v5257_v7 = vld [vmem:[%s6480_s10 + $0x8] sm:$0xff]   ;;  %v5259_v9 = vld [vmem:[%s6480_s10 + $0x18] sm:$0xff]   ;;  %v5260_v10 = vld [vmem:[%s6478_s8 + $0x20] sm:$0xff]  }
 0x493   :  { %v1873_v21 = vrot.slane %v1871_v15, 5  ;;  %v1877_v28 = vrot.slane %v1875_v16, 4  ;;  %v1869_v33 = vrot.slane %v1868_v14, 4  ;;  %v1859_v35 = vrot.slane %v1857_v12, 5  ;;  %v5261_v23 = vld [vmem:[%s6478_s8 + $0x28] sm:$0xff]   ;;  %4973 = vmatprep.subr.bf16.mxu1 %v5260_v10  ;;  %v5263_v14 = vld [vmem:[%s6478_s8 + $0x38] sm:$0xff]  }
 0x494   :  { %v1845_v30 = vrot.slane %v1844_v17, 4  ;;  %v1854_v32 = vor.u32 %v1853_v19, %v1849_v18  ;;  %v1883_v20 = vrot.slane %v1881_v29, 5  ;;  %v4390_v45 = vcombine.low %v5974_v47, %v1824_v2  ;;  %4974 = vmatpush3.bf16.msra.mxu1 %v5260_v10  ;;  %v6065_v15 = vld [vmem:[%s6478_s8] sm:$0xff]   ;;  %v4416_v16 = vld [vmem:[#allocation6 + $0x9] ss:$0 sm:$0xff] }
 0x495   :  { %v1878_v31 = vor.u32 %v1877_v28, %v1873_v21  ;;  %v1874_v41 = vsel %vm5628_vm12, %v1869_v33, %v1873_v21  ;;  %v2072_v11 = vrot.slane %v1824_v2, 5  ;;  %v2075_v51 = vrot.slane %v1825_v3, 5  ;;  %v5256_v2 = vld [vmem:[%s6480_s10] sm:$0xff]   ;;  %4975 = vmatprep.subr.bf16.mxu1 %v5261_v23  ;;  %v4417_v17 = vld [vmem:[#allocation6 + $0xa] ss:$0 sm:$0xff] }
 0x496   :  { %v1855_v34 = vrot.slane %v1854_v32, 4  ;;  %v1850_v37 = vsel %vm5628_vm12, %v1845_v30, %v1849_v18  ;;  %v4398_v52 = vrot.slane %v5974_v47, 9  ;;  %v2079_v24 = vrot.slane %v5980_v1, 5 }
 0x497   :  { %v1879_v36 = vrot.slane %v1878_v31, 4  ;;  %v2074_v50 = vrot.slane %v2072_v11, 4  ;;  %v2082_v62 = vrot.slane %v5982_v13, 5  ;;  %v4399_v3 = vrot.slane %v5972_v59, 9  ;;  %v5258_v59 = vld [vmem:[%s6480_s10 + $0x10] sm:$0xff]  }
 0x498   :  { %v1860_v38 = vsel %vm5628_vm12, %v1855_v34, %v1859_v35  ;;  %v2073_v53 = vsel %vm5666_vm15, %v4398_v52, %v2072_v11  ;;  %v2081_v25 = vrot.slane %v2079_v24, 4  ;;  %v5262_v13 = vld [vmem:[%s6478_s8 + $0x30] sm:$0xff]   ;;  %4976 = vmatpush3.bf16.msra.mxu1 %v5261_v23  ;;  %v2263_v23 = vld [vmem:[#allocation2 + $0x8] sm:$0x1] }
 0x499   :  { %v4382_v39 = vcombine.low %v1850_v37, %v1860_v38  ;;  %v1884_v42 = vsel %vm5628_vm12, %v1879_v36, %v1883_v20  ;;  %v2076_v55 = vsel %vm5666_vm15, %v2074_v50, %v2075_v51  ;;  %v2080_v27 = vsel %vm5666_vm15, %v4399_v3, %v2079_v24  ;;  %4977 = vmatprep.subr.bf16.mxu1 %v5262_v13 }
 0x49a   :  { %v4383_v43 = vcombine.low %v1874_v41, %v1884_v42  ;;  %v4408_v22 = vcombine.low %v2073_v53, %v2076_v55  ;;  %v2083_v1 = vsel %vm5666_vm15, %v2081_v25, %v2082_v62 }
 0x49b   :  { %4945 = vmatprep.mubr.msk.bf16.mxu0 %vm1027_vm6, %v4382_v39  ;;  %v4409_v5 = vcombine.low %v2080_v27, %v2083_v1 }
 0x49c   :  { %4946 = vmatmul.mubr.msk.bf16.vlgmr.msra.gmra.mrb[12].mxu0 %vm1027_vm6, %v4383_v43  ;;  %4978 = vmatpush3.bf16.msra.mxu1 %v5262_v13 }
 0x49d   :  { %4950 = vmatpush3.bf16.msra.mxu0 %v5954_v60  ;;  %4957 = vmatprep.mubr.msk.bf16.mxu0 %vm1027_vm6, %v4390_v45  ;;  %v5252_v60 = vld [vmem:[%s6477_s7 + $0x40] sm:$0xff]  }
 0x49e   :  { %4951 = vmatprep.subr.bf16.mxu0 %v5248_v44  ;;  %4979 = vmatprep.subr.bf16.mxu1 %v5263_v14 }
 0x4a0   :  { %4980 = vmatpush3.bf16.msra.mxu1 %v5263_v14 }
 0x4a1   :  { %4952 = vmatpush3.bf16.msra.mxu0 %v5248_v44  ;;  %4985 = vmatprep.subr.bf16.mxu1 %v6065_v15 }
 0x4a2   :  { %4953 = vmatprep.subr.bf16.mxu0 %v5249_v46 }
 0x4a5   :  { %4954 = vmatpush3.bf16.msra.mxu0 %v5249_v46 }
 0x4a6   :  { %4955 = vmatprep.subr.bf16.mxu0 %v5250_v49 }
 0x4a9   :  { %4956 = vmatpush3.bf16.msra.mxu0 %v5250_v49 }
 0x4aa   :  { %4961 = vmatprep.subr.bf16.mxu0 %v5252_v60 }
 0x4ac   :  { %4958 = vmatmul.mubr.msk.bf16.vlgmr.msra.gmra.mrb[12].mxu0 %vm1027_vm6, %v4391_v56 }
 0x4ad   :  { %4962 = vmatpush3.bf16.msra.mxu0 %v5252_v60  ;;  %4969 = vmatprep.mubr.msk.bf16.mxu0 %vm1027_vm6, %v4408_v22  ;;  %v2266_v22 = vld [vmem:[#allocation2 + $0xc] sm:$0xf] }
 0x4ae   :  { %4963 = vmatprep.subr.bf16.mxu0 %v5253_v58 }
 0x4b1   :  { %4964 = vmatpush3.bf16.msra.mxu0 %v5253_v58 }
 0x4b2   :  { %4965 = vmatprep.subr.bf16.mxu0 %v5254_v48 }
 0x4b5   :  { %4966 = vmatpush3.bf16.msra.mxu0 %v5254_v48 }
 0x4b6   :  { %4967 = vmatprep.subr.bf16.mxu0 %v5255_v61 }
 0x4b9   :  { %4968 = vmatpush3.bf16.msra.mxu0 %v5255_v61 }
 0x4ba   :  { %5009 = vmatprep.subr.bf16.mxu0 %v5256_v2 }
 0x4bc   :  { %4970 = vmatmul.mubr.msk.bf16.vlgmr.msra.gmra.mrb[12].mxu0 %vm1027_vm6, %v4409_v5  ;;  %v2270_v5 = vld [vmem:[#allocation2 + $0x14] sm:$0x1] }
 0x4bd   :  { %5010 = vmatpush3.bf16.msra.mxu0 %v5256_v2 }
 0x4be   :  { %5011 = vmatprep.subr.bf16.mxu0 %v5257_v7 }
 0x4c1   :  { %5012 = vmatpush3.bf16.msra.mxu0 %v5257_v7 }
 0x4c2   :  { %5013 = vmatprep.subr.bf16.mxu0 %v5258_v59 }
 0x4c5   :  { %5014 = vmatpush3.bf16.msra.mxu0 %v5258_v59 }
 0x4c6   :  { %5015 = vmatprep.subr.bf16.mxu0 %v5259_v9 }
 0x4c9   :  { %5016 = vmatpush3.bf16.msra.mxu0 %v5259_v9 }
 0x58f   :  { %v4971_v18 = vpop.f32.mrb[12].mxu0 }
 0x590   :  { %v2188_v19 = vmul.f32 %v4971_v18, %v4416_v16  ;;  %v2163_v12 = vpop.f32.mrb[13].mxu0 }
 0x591   :  { %v2186_v21 = vmul.f32 %v4416_v16, %v2163_v12  ;;  %v4972_v28 = vpop.f32.mrb[14].mxu0 }
 0x592   :  { %v2196_v29 = vadd.f32 %v4417_v17, %v2188_v19  ;;  %v2189_v30 = vmul.f32 %v4972_v28, %v4416_v16  ;;  %v2166_v32 = vpop.f32.mrb[15].mxu0 }
 0x593   :  { %v2194_v33 = vadd.f32 %v4417_v17, %v2186_v21  ;;  %v2187_v31 = vmul.f32 %v4416_v16, %v2166_v32 }
 0x594   :  { %v2200_v34 = vadd.f32 %v2196_v29, %v5842_v26  ;;  %v2197_v35 = vadd.f32 %v4417_v17, %v2189_v30 }
 0x595   :  { %v2198_v36 = vadd.f32 %v2194_v33, %v5844_v4  ;;  %v2195_v20 = vadd.f32 %v4417_v17, %v2187_v31 }
 0x596   :  { %v2204_v37 = vmax.f32 %v2200_v34, 0.0  ;;  %v2201_v38 = vadd.f32 %v2197_v35, %v5848_v6 }
 0x597   :  { %v2202_v39 = vmax.f32 %v2198_v36, 0.0  ;;  %v2199_v41 = vadd.f32 %v2195_v20, %v5852_v8 }
 0x598   :  { %v4607_v42 = vpack.c.bf16 %v2204_v37, %v2204_v37  ;;  %v2205_v43 = vmax.f32 %v2201_v38, 0.0 }
 0x599   :  { %v4605_v44 = vpack.c.bf16 %v2202_v39, %v2202_v39  ;;  %v2203_v45 = vmax.f32 %v2199_v41, 0.0 }
 0x59a   :  { %v2238_v46 = vshrl.u32 %v4607_v42, 16  ;;  %v2207_v11 = vpack.c.bf16 %v2205_v43, %v2204_v37  ;;  %v4608_v49 = vpack.c.bf16 %v2205_v43, %v2205_v43  ;;  %v2241_v52 = vshll.u32 %v4607_v42, 16 }
 0x59b   :  { %v2221_v50 = vshrl.u32 %v4605_v44, 16  ;;  %v2206_v60 = vpack.c.bf16 %v2203_v45, %v2202_v39  ;;  %v4606_v26 = vpack.c.bf16 %v2203_v45, %v2203_v45  ;;  %v2224_v56 = vshll.u32 %v4605_v44, 16 }
 0x59c   :  { %v2240_v51 = vrot.slane %v2238_v46, 7  ;;  %v2246_v4 = vshrl.u32 %v4608_v49, 16  ;;  %v2249_v58 = vshll.u32 %v4608_v49, 16 }
 0x59d   :  { %v2223_v55 = vrot.slane %v2221_v50, 7  ;;  %v2229_v53 = vshrl.u32 %v4606_v26, 16  ;;  %5017 = vmatprep.mubr.msk.bf16.mxu0 %vm1027_vm6, %v2206_v60  ;;  %v2232_v61 = vshll.u32 %v4606_v26, 16 }
 0x59e   :  { %v2243_v6 = vor.u32 %v2241_v52, %v2240_v51  ;;  %v2248_v8 = vrot.slane %v2246_v4, 7  ;;  %5018 = vmatmul.mubr.msk.bf16.vlgmr.msra.gmra.mrb[16].mxu0 %vm1027_vm6, %v2207_v11  ;;  %v2244_v25 = vrot.slane %v2240_v51, 4 }
 0x59f   :  { %v2226_v48 = vor.u32 %v2224_v56, %v2223_v55  ;;  %v2231_v24 = vrot.slane %v2229_v53, 7  ;;  %v2227_v1 = vrot.slane %v2223_v55, 4 }
 0x5a0   :  { %v2267_v62 = vsel %vm5730_vm2, %v2243_v6, %v2266_v22  ;;  %v2251_v2 = vor.u32 %v2249_v58, %v2248_v8  ;;  %v2253_v3 = vrot.slane %v2248_v8, 4  ;;  %v5266_v8 = vld [vmem:[%s6478_s8 + $0x8] sm:$0xff]   ;;  %v5267_v22 = vld [vmem:[%s6478_s8 + $0x10] sm:$0xff]  }
 0x5a1   :  { %2268 = vst [vmem:[#allocation2 + $0xc] sm:$0xf] %v2267_v62  ;;  %v2260_v27 = vsel %vm5730_vm2, %v2226_v48, %v5974_v47  ;;  %v2234_v7 = vor.u32 %v2232_v61, %v2231_v24  ;;  %v2236_v59 = vrot.slane %v2231_v24, 4  ;;  %v5268_v24 = vld [vmem:[%s6478_s8 + $0x18] sm:$0xff]  }
 0x5a2   :  { %2261 = vst [vmem:[#allocation2] sm:$0xf] %v2260_v27  ;;  %v2252_v9 = vsel %vm5580_vm8, %v2244_v25, %v2251_v2  ;;  %v2271_v10 = vsel %vm5735_vm4, %v2253_v3, %v2270_v5  ;;  %v5271_v27 = vld [vmem:[%s6478_s8 + $0x48] sm:$0xff]  }
 0x5a3   :  { %2269 = vst.msk [vmem:[#allocation2 + $0x10] sm:$0xf] %vm908_vm0, %v2252_v9  ;;  %2272 = vst [vmem:[#allocation2 + $0x14] sm:$0x1] %v2271_v10  ;;  %v2235_v13 = vsel %vm5580_vm8, %v2227_v1, %v2234_v7  ;;  %v2264_v57 = vsel %vm5735_vm4, %v2236_v59, %v2263_v23  ;;  %v5272_v7 = vld [vmem:[%s6478_s8 + $0x50] sm:$0xff]   ;;  %v5273_v9 = vld [vmem:[%s6478_s8 + $0x58] sm:$0xff]  }
 0x5a4   :  { %2262 = vst.msk [vmem:[#allocation2 + $0x4] sm:$0xf] %vm908_vm0, %v2235_v13  ;;  %2265 = vst [vmem:[#allocation2 + $0x8] sm:$0x1] %v2264_v57 }
 0x5a8   :  { %v6089_v47 = vld [vmem:[#allocation2 + $0xc] sm:$0xf] }
 0x5a9   :  { %v6091_v14 = vld [vmem:[#allocation2] sm:$0xf]  ;;  %v2312_v16 = vshrl.u32 %v6089_v47, 16  ;;  %v2315_v17 = vshll.u32 %v6089_v47, 16  ;;  %v4447_v13 = vrot.slane %v6089_v47, 9 }
 0x5aa   :  { %v2288_v18 = vshrl.u32 %v6091_v14, 16  ;;  %v2291_v19 = vshll.u32 %v6091_v14, 16  ;;  %v6097_v12 = vld [vmem:[#allocation2 + $0x10] sm:$0xf]  ;;  %v6099_v34 = vld [vmem:[#allocation2 + $0x14] sm:$0x1] }
 0x5ab   :  { %v2274_v21 = vld [vmem:[#allocation2 + $0x4] sm:$0xf]  ;;  %v2275_v0 = vld [vmem:[#allocation2 + $0x8] sm:$0x1]  ;;  %v2314_v28 = vrot.slane %v2312_v16, 4  ;;  %v2317_v29 = vrot.slane %v2315_v17, 5  ;;  %v4439_v3 = vcombine.low %v6089_v47, %v6097_v12 }
 0x5ac   :  { %v2290_v30 = vrot.slane %v2288_v18, 4  ;;  %v2293_v32 = vrot.slane %v2291_v19, 5  ;;  %v2297_v33 = vshll.u32 %v2274_v21, 16  ;;  %v2301_v31 = vshrl.u32 %v2274_v21, 16  ;;  %v5274_v18 = vld [vmem:[%s6479_s9 + $0x10] sm:$0xff]   ;;  %v5275_v19 = vld [vmem:[%s6479_s9 + $0x18] sm:$0xff]  }
 0x5ad   :  { %v2318_v35 = vor.u32 %v2317_v29, %v2314_v28  ;;  %v2321_v36 = vshll.u32 %v6097_v12, 16  ;;  %v2325_v20 = vshrl.u32 %v6097_v12, 16  ;;  %v2307_v41 = vshll.u32 %v2275_v0, 16  ;;  %5021 = vmatprep.subr.bf16.mxu0 %v5274_v18  ;;  %v6164_v47 = vld [vmem:[%s6479_s9] sm:$0xff]   ;;  %v4464_v29 = vld [vmem:[#allocation6 + $0xb] ss:$0 sm:$0xff] }
 0x5ae   :  { %v2294_v37 = vor.u32 %v2293_v32, %v2290_v30  ;;  %v2299_v38 = vrot.slane %v2297_v33, 5  ;;  %v2303_v39 = vrot.slane %v2301_v31, 4  ;;  %v2331_v44 = vshll.u32 %v6099_v34, 16  ;;  %5022 = vmatpush3.bf16.msra.mxu0 %v5274_v18  ;;  %v4465_v30 = vld [vmem:[#allocation6 + $0xc] ss:$0 sm:$0xff] }
 0x5af   :  { %v2323_v42 = vrot.slane %v2321_v36, 5  ;;  %v2327_v43 = vrot.slane %v2325_v20, 4  ;;  %v2319_v11 = vrot.slane %v2318_v35, 4  ;;  %v2309_v60 = vrot.slane %v2307_v41, 5  ;;  %5023 = vmatprep.subr.bf16.mxu0 %v5275_v19 }
 0x5b0   :  { %v2295_v45 = vrot.slane %v2294_v37, 4  ;;  %v2304_v46 = vor.u32 %v2303_v39, %v2299_v38  ;;  %v2333_v51 = vrot.slane %v2331_v44, 5  ;;  %v4438_v58 = vcombine.low %v6091_v14, %v2274_v21 }
 0x5b1   :  { %v2328_v49 = vor.u32 %v2327_v43, %v2323_v42  ;;  %v2324_v56 = vsel %vm5628_vm12, %v2319_v11, %v2323_v42  ;;  %v2522_v48 = vrot.slane %v2274_v21, 5  ;;  %v2525_v25 = vrot.slane %v2275_v0, 5 }
 0x5b2   :  { %v2305_v50 = vrot.slane %v2304_v46, 4  ;;  %v2300_v52 = vsel %vm5628_vm12, %v2295_v45, %v2299_v38  ;;  %v4446_v62 = vrot.slane %v6091_v14, 9  ;;  %v2529_v59 = vrot.slane %v6097_v12, 5  ;;  %5024 = vmatpush3.bf16.msra.mxu0 %v5275_v19 }
 0x5b3   :  { %v2329_v26 = vrot.slane %v2328_v49, 4  ;;  %v2524_v61 = vrot.slane %v2522_v48, 4  ;;  %v2532_v23 = vrot.slane %v6099_v34, 5  ;;  %5029 = vmatprep.subr.bf16.mxu0 %v6164_v47 }
 0x5b4   :  { %v2310_v4 = vsel %vm5628_vm12, %v2305_v50, %v2309_v60  ;;  %v2523_v1 = vsel %vm5666_vm15, %v4446_v62, %v2522_v48  ;;  %v2531_v10 = vrot.slane %v2529_v59, 4  ;;  %v2530_v16 = vsel %vm5666_vm15, %v4447_v13, %v2529_v59  ;;  %v2826_v59 = vld [vmem:[#allocation2 + $0x14] sm:$0x1] }
 0x5b5   :  { %v4430_v55 = vcombine.low %v2300_v52, %v2310_v4  ;;  %v2334_v53 = vsel %vm5628_vm12, %v2329_v26, %v2333_v51  ;;  %v2526_v2 = vsel %vm5666_vm15, %v2524_v61, %v2525_v25 }
 0x5b6   :  { %v4431_v6 = vcombine.low %v2324_v56, %v2334_v53  ;;  %v4456_v5 = vcombine.low %v2523_v1, %v2526_v2  ;;  %v2533_v57 = vsel %vm5666_vm15, %v2531_v10, %v2532_v23 }
 0x5b7   :  { %4981 = vmatprep.mubr.msk.bf16.mxu1 %vm1027_vm6, %v4430_v55  ;;  %v4457_v17 = vcombine.low %v2530_v16, %v2533_v57  ;;  %v2819_v57 = vld [vmem:[#allocation2 + $0x8] sm:$0x1] }
 0x5b8   :  { %4982 = vmatmul.mubr.msk.bf16.vlgmr.msra.gmra.mrb[8].mxu1 %vm1027_vm6, %v4431_v6 }
 0x5b9   :  { %4986 = vmatpush3.bf16.msra.mxu1 %v6065_v15  ;;  %4993 = vmatprep.mubr.msk.bf16.mxu1 %vm1027_vm6, %v4438_v58  ;;  %v5270_v15 = vld [vmem:[%s6478_s8 + $0x40] sm:$0xff]  }
 0x5ba   :  { %4987 = vmatprep.subr.bf16.mxu1 %v5266_v8 }
 0x5bd   :  { %4988 = vmatpush3.bf16.msra.mxu1 %v5266_v8 }
 0x5be   :  { %4989 = vmatprep.subr.bf16.mxu1 %v5267_v22 }
 0x5c1   :  { %4990 = vmatpush3.bf16.msra.mxu1 %v5267_v22 }
 0x5c2   :  { %4991 = vmatprep.subr.bf16.mxu1 %v5268_v24 }
 0x5c5   :  { %4992 = vmatpush3.bf16.msra.mxu1 %v5268_v24  ;;  %v2822_v24 = vld [vmem:[#allocation2 + $0xc] sm:$0xf] }
 0x5c6   :  { %4997 = vmatprep.subr.bf16.mxu1 %v5270_v15 }
 0x5c8   :  { %4994 = vmatmul.mubr.msk.bf16.vlgmr.msra.gmra.mrb[8].mxu1 %vm1027_vm6, %v4439_v3 }
 0x5c9   :  { %4998 = vmatpush3.bf16.msra.mxu1 %v5270_v15  ;;  %5005 = vmatprep.mubr.msk.bf16.mxu1 %vm1027_vm6, %v4456_v5 }
 0x5ca   :  { %4999 = vmatprep.subr.bf16.mxu1 %v5271_v27 }
 0x5cd   :  { %5000 = vmatpush3.bf16.msra.mxu1 %v5271_v27 }
 0x5ce   :  { %5001 = vmatprep.subr.bf16.mxu1 %v5272_v7 }
 0x5d1   :  { %5002 = vmatpush3.bf16.msra.mxu1 %v5272_v7 }
 0x5d2   :  { %5003 = vmatprep.subr.bf16.mxu1 %v5273_v9 }
 0x5d5   :  { %5004 = vmatpush3.bf16.msra.mxu1 %v5273_v9 }
 0x5d8   :  { %5006 = vmatmul.mubr.msk.bf16.vlgmr.msra.gmra.mrb[8].mxu1 %vm1027_vm6, %v4457_v17 }
 0x671   :  { %v6167_v12 = vpop.f32.mrb[16].mxu0 }
 0x672   :  { %v6169_v21 = vpop.f32.mrb[17].mxu0 }
 0x673   :  { %v6171_v0 = vpop.f32.mrb[18].mxu0 }
 0x674   :  { %v6173_v28 = vpop.f32.mrb[19].mxu0 }
 0x6ab   :  { %v5007_v32 = vpop.f32.mrb[8].mxu1 }
 0x6ac   :  { %v2638_v33 = vmul.f32 %v5007_v32, %v4464_v29  ;;  %v2613_v31 = vpop.f32.mrb[9].mxu1 }
 0x6ad   :  { %v2636_v34 = vmul.f32 %v4464_v29, %v2613_v31  ;;  %v5008_v35 = vpop.f32.mrb[10].mxu1 }
 0x6ae   :  { %v2646_v36 = vadd.f32 %v4465_v30, %v2638_v33  ;;  %v2639_v20 = vmul.f32 %v5008_v35, %v4464_v29  ;;  %v2616_v37 = vpop.f32.mrb[11].mxu1 }
 0x6af   :  { %v2644_v38 = vadd.f32 %v4465_v30, %v2636_v34  ;;  %v2637_v39 = vmul.f32 %v4464_v29, %v2616_v37 }
 0x6b0   :  { %v2650_v41 = vmax.f32 %v2646_v36, 0.0  ;;  %v2647_v42 = vadd.f32 %v4465_v30, %v2639_v20 }
 0x6b1   :  { %v2648_v43 = vmax.f32 %v2644_v38, 0.0  ;;  %v2645_v44 = vadd.f32 %v4465_v30, %v2637_v39 }
 0x6b2   :  { %v4611_v45 = vpack.c.bf16 %v2650_v41, %v2650_v41  ;;  %v2651_v46 = vmax.f32 %v2647_v42, 0.0 }
 0x6b3   :  { %v4609_v11 = vpack.c.bf16 %v2648_v43, %v2648_v43  ;;  %v2649_v49 = vmax.f32 %v2645_v44, 0.0 }
 0x6b4   :  { %v2789_v50 = vshrl.u32 %v4611_v45, 16  ;;  %v4612_v60 = vpack.c.bf16 %v2651_v46, %v2651_v46  ;;  %v2792_v4 = vshll.u32 %v4611_v45, 16 }
 0x6b5   :  { %v2772_v26 = vshrl.u32 %v4609_v11, 16  ;;  %v4610_v51 = vpack.c.bf16 %v2649_v49, %v2649_v49  ;;  %v2775_v6 = vshll.u32 %v4609_v11, 16 }
 0x6b6   :  { %v2791_v52 = vrot.slane %v2789_v50, 7  ;;  %v2797_v55 = vshrl.u32 %v4612_v60, 16  ;;  %v2800_v48 = vshll.u32 %v4612_v60, 16 }
 0x6b7   :  { %v2774_v53 = vrot.slane %v2772_v26, 7  ;;  %v2780_v8 = vshrl.u32 %v4610_v51, 16  ;;  %v2783_v62 = vshll.u32 %v4610_v51, 16 }
 0x6b8   :  { %v2794_v58 = vor.u32 %v2792_v4, %v2791_v52  ;;  %v2799_v22 = vrot.slane %v2797_v55, 7  ;;  %v2795_v2 = vrot.slane %v2791_v52, 4 }
 0x6b9   :  { %v2777_v61 = vor.u32 %v2775_v6, %v2774_v53  ;;  %v2782_v25 = vrot.slane %v2780_v8, 7  ;;  %v2778_v5 = vrot.slane %v2774_v53, 4 }
 0x6ba   :  { %v2823_v3 = vsel %vm6177_vm10, %v2794_v58, %v2822_v24  ;;  %v2802_v1 = vor.u32 %v2800_v48, %v2799_v22  ;;  %v2804_v27 = vrot.slane %v2799_v22, 4 }
 0x6bb   :  { %2824 = vst [vmem:[#allocation2 + $0xc] sm:$0xf] %v2823_v3  ;;  %v2813_v7 = vsel %vm6177_vm10, %v2777_v61, %v6091_v14  ;;  %v2785_v9 = vor.u32 %v2783_v62, %v2782_v25  ;;  %v2787_v10 = vrot.slane %v2782_v25, 4 }
 0x6bc   :  { %2814 = vst [vmem:[#allocation2] sm:$0xf] %v2813_v7  ;;  %v2803_v23 = vsel %vm5580_vm8, %v2795_v2, %v2802_v1  ;;  %v2827_v13 = vsel %vm6182_vm11, %v2804_v27, %v2826_v59  ;;  %v5278_v2 = vld [vmem:[%s6479_s9 + $0x8] sm:$0xff]   ;;  %v5279_v27 = vld [vmem:[%s6479_s9 + $0x20] sm:$0xff]  }
 0x6bd   :  { %2825 = vst.msk [vmem:[#allocation2 + $0x10] sm:$0xf] %vm2811_vm7, %v2803_v23  ;;  %2828 = vst [vmem:[#allocation2 + $0x14] sm:$0x1] %v2827_v13  ;;  %v2786_v16 = vsel %vm5580_vm8, %v2778_v5, %v2785_v9  ;;  %v2820_v14 = vsel %vm6182_vm11, %v2787_v10, %v2819_v57  ;;  %v5281_v23 = vld [vmem:[%s6479_s9 + $0x28] sm:$0xff]  }
 0x6be   :  { %2816 = vst.msk [vmem:[#allocation2 + $0x4] sm:$0xf] %vm2811_vm7, %v2786_v16  ;;  %2821 = vst [vmem:[#allocation2 + $0x8] sm:$0x1] %v2820_v14 }
 0x6c2   :  { %v6201_v17 = vld [vmem:[#allocation2 + $0xc] sm:$0xf] }
 0x6c3   :  { %v6203_v18 = vld [vmem:[#allocation2] sm:$0xf]  ;;  %v2864_v19 = vshrl.u32 %v6201_v17, 16  ;;  %v2867_v29 = vshll.u32 %v6201_v17, 16 }
 0x6c4   :  { %v2840_v30 = vshrl.u32 %v6203_v18, 16  ;;  %v2843_v32 = vshll.u32 %v6203_v18, 16  ;;  %v6209_v33 = vld [vmem:[#allocation2 + $0x10] sm:$0xf]  ;;  %v2834_v41 = vld [vmem:[#allocation2 + $0x14] sm:$0x1] }
 0x6c5   :  { %v2830_v31 = vld [vmem:[#allocation2 + $0x4] sm:$0xf]  ;;  %v2831_v34 = vld [vmem:[#allocation2 + $0x8] sm:$0x1]  ;;  %v2866_v35 = vrot.slane %v2864_v19, 4  ;;  %v2869_v36 = vrot.slane %v2867_v29, 5  ;;  %v4489_v10 = vcombine.low %v6201_v17, %v6209_v33 }
 0x6c6   :  { %v2842_v20 = vrot.slane %v2840_v30, 4  ;;  %v2845_v37 = vrot.slane %v2843_v32, 5  ;;  %v2849_v38 = vshll.u32 %v2830_v31, 16  ;;  %v2853_v39 = vshrl.u32 %v2830_v31, 16 }
 0x6c7   :  { %v2870_v42 = vor.u32 %v2869_v36, %v2866_v35  ;;  %v2873_v43 = vshll.u32 %v6209_v33, 16  ;;  %v2877_v44 = vshrl.u32 %v6209_v33, 16  ;;  %v2859_v49 = vshll.u32 %v2831_v34, 16  ;;  %v4506_v35 = vld [vmem:[#allocation6 + $0xd] ss:$0 sm:$0xff] }
 0x6c8   :  { %v2846_v45 = vor.u32 %v2845_v37, %v2842_v20  ;;  %v2851_v46 = vrot.slane %v2849_v38, 5  ;;  %v2855_v11 = vrot.slane %v2853_v39, 4  ;;  %v2883_v26 = vshll.u32 %v2834_v41, 16  ;;  %v4473_v20 = vld [vmem:[#allocation6 + $0x10] ss:$0 sm:$0xff] }
 0x6c9   :  { %v2875_v50 = vrot.slane %v2873_v43, 5  ;;  %v2879_v60 = vrot.slane %v2877_v44, 4  ;;  %v2871_v4 = vrot.slane %v2870_v42, 4  ;;  %v2861_v6 = vrot.slane %v2859_v49, 5  ;;  %v4507_v38 = vld [vmem:[#allocation6 + $0xe] ss:$0 sm:$0xff] }
 0x6ca   :  { %v2847_v51 = vrot.slane %v2846_v45, 4  ;;  %v2856_v52 = vor.u32 %v2855_v11, %v2851_v46  ;;  %v2885_v58 = vrot.slane %v2883_v26, 5  ;;  %v4488_v3 = vcombine.low %v6203_v18, %v2830_v31 }
 0x6cb   :  { %v2880_v55 = vor.u32 %v2879_v60, %v2875_v50  ;;  %v2876_v61 = vsel %vm5628_vm12, %v2871_v4, %v2875_v50  ;;  %v3047_v1 = vrot.slane %v2830_v31, 5  ;;  %v3050_v7 = vrot.slane %v2831_v34, 5  ;;  %v5283_v31 = vld [vmem:[%s6481_s11 + $0x18] sm:$0xff]   ;;  %v4472_v34 = vld [vmem:[#allocation6 + $0xf] ss:$0 sm:$0xff] }
 0x6cc   :  { %v2857_v53 = vrot.slane %v2856_v52, 4  ;;  %v2852_v22 = vsel %vm5628_vm12, %v2847_v51, %v2851_v46  ;;  %v4494_v59 = vrot.slane %v6203_v18, 9  ;;  %v3054_v57 = vrot.slane %v6209_v33, 5  ;;  %v5282_v33 = vld [vmem:[%s6481_s11 + $0x10] sm:$0xff]  }
 0x6cd   :  { %v2881_v8 = vrot.slane %v2880_v55, 4  ;;  %v3049_v5 = vrot.slane %v3047_v1, 4  ;;  %v3057_v14 = vrot.slane %v2834_v41, 5  ;;  %v4495_v19 = vrot.slane %v6201_v17, 9  ;;  %5045 = vmatprep.subr.bf16.mxu1 %v5282_v33  ;;  %v6260_v17 = vld [vmem:[%s6481_s11] sm:$0xff]  }
 0x6ce   :  { %v2862_v48 = vsel %vm5628_vm12, %v2857_v53, %v2861_v6  ;;  %v3056_v16 = vrot.slane %v3054_v57, 4  ;;  %5046 = vmatpush3.bf16.msra.mxu1 %v5282_v33  ;;  %v2746_v36 = vmul.f32 %v6167_v12, %v4472_v34  ;;  %v2744_v37 = vmul.f32 %v4472_v34, %v6169_v21 }
 0x6cf   :  { %v4482_v24 = vcombine.low %v2852_v22, %v2862_v48  ;;  %v2886_v25 = vsel %vm5628_vm12, %v2881_v8, %v2885_v58  ;;  %v3051_v9 = vsel %vm5666_vm15, %v3049_v5, %v3050_v7  ;;  %v3055_v30 = vsel %vm5666_vm15, %v4495_v19, %v3054_v57  ;;  %5047 = vmatprep.subr.bf16.mxu1 %v5283_v31 }
 0x6d0   :  { %v4483_v62 = vcombine.low %v2876_v61, %v2886_v25  ;;  %v3058_v29 = vsel %vm5666_vm15, %v3056_v16, %v3057_v14  ;;  %v2747_v41 = vmul.f32 %v6171_v0, %v4472_v34  ;;  %v2745_v44 = vmul.f32 %v4472_v34, %v6173_v28  ;;  %v3229_v34 = vld [vmem:[#allocation2 + $0x14] sm:$0x1] }
 0x6d1   :  { %5025 = vmatprep.mubr.msk.bf16.mxu0 %vm2910_vm3, %v4482_v24  ;;  %v4501_v32 = vcombine.low %v3055_v30, %v3058_v29  ;;  %v2755_v11 = vadd.f32 %v4473_v20, %v2746_v36  ;;  %v2753_v26 = vadd.f32 %v4473_v20, %v2744_v37 }
 0x6d2   :  { %5026 = vmatmul.mubr.msk.bf16.vlgmr.msra.gmra.mrb[20].mxu0 %vm2910_vm3, %v4483_v62  ;;  %5048 = vmatpush3.bf16.msra.mxu1 %v5283_v31  ;;  %v2756_v52 = vadd.f32 %v4473_v20, %v2747_v41  ;;  %v2754_v55 = vadd.f32 %v4473_v20, %v2745_v44 }
 0x6d3   :  { %5030 = vmatpush3.bf16.msra.mxu0 %v6164_v47  ;;  %5033 = vmatprep.mubr.msk.bf16.mxu0 %vm2910_vm3, %v4488_v3  ;;  %v3048_v47 = vsel %vm5666_vm15, %v4494_v59, %v3047_v1 }
 0x6d4   :  { %5031 = vmatprep.subr.bf16.mxu0 %v5278_v2  ;;  %v4500_v13 = vcombine.low %v3048_v47, %v3051_v9  ;;  %5053 = vmatprep.subr.bf16.mxu1 %v6260_v17 }
 0x6d7   :  { %5032 = vmatpush3.bf16.msra.mxu0 %v5278_v2 }
 0x6d8   :  { %5037 = vmatprep.subr.bf16.mxu0 %v5279_v27 }
 0x6de   :  { %5034 = vmatmul.mubr.msk.bf16.vlgmr.msra.gmra.mrb[20].mxu0 %vm2910_vm3, %v4489_v10 }
 0x6df   :  { %5038 = vmatpush3.bf16.msra.mxu0 %v5279_v27  ;;  %5041 = vmatprep.mubr.msk.bf16.mxu0 %vm2910_vm3, %v4500_v13  ;;  %v3225_v13 = vld [vmem:[#allocation2 + $0xc] sm:$0xf] }
 0x6e0   :  { %5039 = vmatprep.subr.bf16.mxu0 %v5281_v23 }
 0x6e3   :  { %5040 = vmatpush3.bf16.msra.mxu0 %v5281_v23 }
 0x6ea   :  { %5042 = vmatmul.mubr.msk.bf16.vlgmr.msra.gmra.mrb[20].mxu0 %vm2910_vm3, %v4501_v32 }
 0x7bd   :  { %v5043_v39 = vpop.f32.mrb[20].mxu0 }
 0x7be   :  { %v3147_v42 = vmul.f32 %v5043_v39, %v4506_v35  ;;  %v3122_v43 = vpop.f32.mrb[21].mxu0 }
 0x7bf   :  { %v3145_v45 = vmul.f32 %v4506_v35, %v3122_v43  ;;  %v5044_v46 = vpop.f32.mrb[22].mxu0 }
 0x7c0   :  { %v3155_v49 = vadd.f32 %v4507_v38, %v3147_v42  ;;  %v3148_v50 = vmul.f32 %v5044_v46, %v4506_v35  ;;  %v3125_v60 = vpop.f32.mrb[23].mxu0 }
 0x7c1   :  { %v3153_v51 = vadd.f32 %v4507_v38, %v3145_v45  ;;  %v3146_v12 = vmul.f32 %v4506_v35, %v3125_v60 }
 0x7c2   :  { %v3159_v4 = vadd.f32 %v3155_v49, %v2755_v11  ;;  %v3156_v21 = vadd.f32 %v4507_v38, %v3148_v50 }
 0x7c3   :  { %v3157_v53 = vadd.f32 %v3153_v51, %v2753_v26  ;;  %v3154_v6 = vadd.f32 %v4507_v38, %v3146_v12  ;;  %v3222_v38 = vld [vmem:[#allocation2 + $0x8] sm:$0x1] }
 0x7c4   :  { %v6267_v0 = vmax.f32 %v3159_v4, 0.0  ;;  %v3160_v8 = vadd.f32 %v3156_v21, %v2756_v52 }
 0x7c5   :  { %v6269_v58 = vmax.f32 %v3157_v53, 0.0  ;;  %v3158_v28 = vadd.f32 %v3154_v6, %v2754_v55 }
 0x7c6   :  { %v4615_v22 = vpack.c.bf16 %v6267_v0, %v6267_v0  ;;  %v6273_v48 = vmax.f32 %v3160_v8, 0.0 }
 0x7c7   :  { %v4613_v24 = vpack.c.bf16 %v6269_v58, %v6269_v58  ;;  %v6277_v61 = vmax.f32 %v3158_v28, 0.0 }
 0x7c8   :  { %v3197_v25 = vshrl.u32 %v4615_v22, 16  ;;  %v4616_v62 = vpack.c.bf16 %v6273_v48, %v6273_v48  ;;  %v3200_v27 = vshll.u32 %v4615_v22, 16 }
 0x7c9   :  { %v3180_v2 = vshrl.u32 %v4613_v24, 16  ;;  %v4614_v3 = vpack.c.bf16 %v6277_v61, %v6277_v61  ;;  %v3183_v59 = vshll.u32 %v4613_v24, 16 }
 0x7ca   :  { %v3199_v1 = vrot.slane %v3197_v25, 7  ;;  %v3205_v5 = vshrl.u32 %v4616_v62, 16  ;;  %v3208_v23 = vshll.u32 %v4616_v62, 16 }
 0x7cb   :  { %v3182_v7 = vrot.slane %v3180_v2, 7  ;;  %v3188_v9 = vshrl.u32 %v4614_v3, 16  ;;  %v3191_v14 = vshll.u32 %v4614_v3, 16 }
 0x7cc   :  { %v3202_v10 = vor.u32 %v3200_v27, %v3199_v1  ;;  %v3207_v47 = vrot.slane %v3205_v5, 7  ;;  %v3203_v19 = vrot.slane %v3199_v1, 4 }
 0x7cd   :  { %v3185_v57 = vor.u32 %v3183_v59, %v3182_v7  ;;  %v3190_v16 = vrot.slane %v3188_v9, 7  ;;  %v3186_v33 = vrot.slane %v3182_v7, 4 }
 0x7ce   :  { %v3226_v29 = vsel %vm6177_vm10, %v3202_v10, %v3225_v13  ;;  %v3210_v30 = vor.u32 %v3208_v23, %v3207_v47  ;;  %v3212_v32 = vrot.slane %v3207_v47, 4 }
 0x7cf   :  { %3227 = vst [vmem:[#allocation2 + $0xc] sm:$0xf] %v3226_v29  ;;  %v3219_v31 = vsel %vm6177_vm10, %v3185_v57, %v6203_v18  ;;  %v3193_v35 = vor.u32 %v3191_v14, %v3190_v16  ;;  %v3195_v36 = vrot.slane %v3190_v16, 4 }
 0x7d0   :  { %3220 = vst [vmem:[#allocation2] sm:$0xf] %v3219_v31  ;;  %v3211_v20 = vsel %vm5580_vm8, %v3203_v19, %v3210_v30  ;;  %v3230_v37 = vsel %vm6182_vm11, %v3212_v32, %v3229_v34  ;;  %v5286_v19 = vld [vmem:[%s6481_s11 + $0x8] sm:$0xff]   ;;  %v5287_v32 = vld [vmem:[%s6481_s11 + $0x20] sm:$0xff]  }
 0x7d1   :  { %3228 = vst.msk [vmem:[#allocation2 + $0x10] sm:$0xf] %vm2811_vm7, %v3211_v20  ;;  %3231 = vst [vmem:[#allocation2 + $0x14] sm:$0x1] %v3230_v37  ;;  %v3194_v39 = vsel %vm5580_vm8, %v3186_v33, %v3193_v35  ;;  %v3223_v18 = vsel %vm6182_vm11, %v3195_v36, %v3222_v38  ;;  %v5289_v20 = vld [vmem:[%s6481_s11 + $0x28] sm:$0xff]  }
 0x7d2   :  { %3221 = vst.msk [vmem:[#allocation2 + $0x4] sm:$0xf] %vm2811_vm7, %v3194_v39  ;;  %3224 = vst [vmem:[#allocation2 + $0x8] sm:$0x1] %v3223_v18 }
 0x7d6   :  { %v6298_v41 = vld [vmem:[#allocation2 + $0xc] sm:$0xf] }
 0x7d7   :  { %v6300_v42 = vld [vmem:[#allocation2] sm:$0xf]  ;;  %v3267_v43 = vshrl.u32 %v6298_v41, 16  ;;  %v3270_v44 = vshll.u32 %v6298_v41, 16 }
 0x7d8   :  { %v3243_v45 = vshrl.u32 %v6300_v42, 16  ;;  %v3246_v46 = vshll.u32 %v6300_v42, 16  ;;  %v6306_v11 = vld [vmem:[#allocation2 + $0x10] sm:$0xf]  ;;  %v3237_v21 = vld [vmem:[#allocation2 + $0x14] sm:$0x1] }
 0x7d9   :  { %v3233_v49 = vld [vmem:[#allocation2 + $0x4] sm:$0xf]  ;;  %v3234_v50 = vld [vmem:[#allocation2 + $0x8] sm:$0x1]  ;;  %v3269_v60 = vrot.slane %v3267_v43, 4  ;;  %v3272_v26 = vrot.slane %v3270_v44, 5  ;;  %v4523_v36 = vcombine.low %v6298_v41, %v6306_v11 }
 0x7da   :  { %v3245_v51 = vrot.slane %v3243_v45, 4  ;;  %v3248_v12 = vrot.slane %v3246_v46, 5  ;;  %v3252_v52 = vshll.u32 %v3233_v49, 16  ;;  %v3256_v4 = vshrl.u32 %v3233_v49, 16 }
 0x7db   :  { %v3273_v55 = vor.u32 %v3272_v26, %v3269_v60  ;;  %v3276_v53 = vshll.u32 %v6306_v11, 16  ;;  %v3280_v6 = vshrl.u32 %v6306_v11, 16  ;;  %v3262_v24 = vshll.u32 %v3234_v50, 16  ;;  %v4541_v60 = vld [vmem:[#allocation6 + $0x12] ss:$0 sm:$0xff] }
 0x7dc   :  { %v3249_v8 = vor.u32 %v3248_v12, %v3245_v51  ;;  %v3254_v28 = vrot.slane %v3252_v52, 5  ;;  %v3258_v22 = vrot.slane %v3256_v4, 4  ;;  %v3286_v2 = vshll.u32 %v3237_v21, 16 }
 0x7dd   :  { %v3278_v25 = vrot.slane %v3276_v53, 5  ;;  %v3282_v62 = vrot.slane %v3280_v6, 4  ;;  %v3274_v27 = vrot.slane %v3273_v55, 4  ;;  %v3264_v59 = vrot.slane %v3262_v24, 5 }
 0x7de   :  { %v3250_v3 = vrot.slane %v3249_v8, 4  ;;  %v3259_v1 = vor.u32 %v3258_v22, %v3254_v28  ;;  %v3288_v10 = vrot.slane %v3286_v2, 5  ;;  %v4522_v29 = vcombine.low %v6300_v42, %v3233_v49 }
 0x7df   :  { %v3283_v5 = vor.u32 %v3282_v62, %v3278_v25  ;;  %v3279_v57 = vsel %vm5628_vm12, %v3274_v27, %v3278_v25  ;;  %v3449_v30 = vrot.slane %v3233_v49, 5  ;;  %v3452_v31 = vrot.slane %v3234_v50, 5  ;;  %v5291_v49 = vld [vmem:[%s6482_s12 + $0x18] sm:$0xff]  }
 0x7e0   :  { %v3260_v7 = vrot.slane %v3259_v1, 4  ;;  %v3255_v47 = vsel %vm5628_vm12, %v3250_v3, %v3254_v28  ;;  %v4528_v34 = vrot.slane %v6300_v42, 9  ;;  %v3456_v38 = vrot.slane %v6306_v11, 5  ;;  %v5290_v11 = vld [vmem:[%s6482_s12 + $0x10] sm:$0xff]   ;;  %v4540_v50 = vld [vmem:[#allocation6 + $0x11] ss:$0 sm:$0xff] }
 0x7e1   :  { %v3284_v9 = vrot.slane %v3283_v5, 4  ;;  %v3451_v33 = vrot.slane %v3449_v30, 4  ;;  %v3459_v18 = vrot.slane %v3237_v21, 5  ;;  %v4529_v43 = vrot.slane %v6298_v41, 9  ;;  %5069 = vmatprep.subr.bf16.mxu0 %v5290_v11  ;;  %v6357_v41 = vld [vmem:[%s6482_s12] sm:$0xff]  }
 0x7e2   :  { %v3265_v23 = vsel %vm5628_vm12, %v3260_v7, %v3264_v59  ;;  %v3458_v39 = vrot.slane %v3456_v38, 4  ;;  %5070 = vmatpush3.bf16.msra.mxu0 %v5290_v11 }
 0x7e3   :  { %v4516_v13 = vcombine.low %v3255_v47, %v3265_v23  ;;  %v3289_v16 = vsel %vm5628_vm12, %v3284_v9, %v3288_v10  ;;  %v3453_v35 = vsel %vm5666_vm15, %v3451_v33, %v3452_v31  ;;  %v3457_v45 = vsel %vm5666_vm15, %v4529_v43, %v3456_v38  ;;  %5071 = vmatprep.subr.bf16.mxu0 %v5291_v49 }
 0x7e4   :  { %v4517_v14 = vcombine.low %v3279_v57, %v3289_v16  ;;  %v3460_v44 = vsel %vm5666_vm15, %v3458_v39, %v3459_v18 }
 0x7e5   :  { %5049 = vmatprep.mubr.msk.bf16.mxu1 %vm2910_vm3, %v4516_v13  ;;  %v4535_v46 = vcombine.low %v3457_v45, %v3460_v44  ;;  %v3620_v44 = vld [vmem:[#allocation2 + $0x8] sm:$0x1] }
 0x7e6   :  { %5050 = vmatmul.mubr.msk.bf16.vlgmr.msra.gmra.mrb[12].mxu1 %vm2910_vm3, %v4517_v14  ;;  %5072 = vmatpush3.bf16.msra.mxu0 %v5291_v49 }
 0x7e7   :  { %5054 = vmatpush3.bf16.msra.mxu1 %v6260_v17  ;;  %5057 = vmatprep.mubr.msk.bf16.mxu1 %vm2910_vm3, %v4522_v29  ;;  %v3450_v17 = vsel %vm5666_vm15, %v4528_v34, %v3449_v30  ;;  %v3623_v29 = vld [vmem:[#allocation2 + $0xc] sm:$0xf] }
 0x7e8   :  { %5055 = vmatprep.subr.bf16.mxu1 %v5286_v19  ;;  %v4534_v37 = vcombine.low %v3450_v17, %v3453_v35  ;;  %5077 = vmatprep.subr.bf16.mxu0 %v6357_v41 }
 0x7eb   :  { %5056 = vmatpush3.bf16.msra.mxu1 %v5286_v19 }
 0x7ec   :  { %5061 = vmatprep.subr.bf16.mxu1 %v5287_v32 }
 0x7f2   :  { %5058 = vmatmul.mubr.msk.bf16.vlgmr.msra.gmra.mrb[12].mxu1 %vm2910_vm3, %v4523_v36 }
 0x7f3   :  { %5062 = vmatpush3.bf16.msra.mxu1 %v5287_v32  ;;  %5065 = vmatprep.mubr.msk.bf16.mxu1 %vm2910_vm3, %v4534_v37  ;;  %v3627_v37 = vld [vmem:[#allocation2 + $0x14] sm:$0x1] }
 0x7f4   :  { %5063 = vmatprep.subr.bf16.mxu1 %v5289_v20 }
 0x7f7   :  { %5064 = vmatpush3.bf16.msra.mxu1 %v5289_v20 }
 0x7fe   :  { %5066 = vmatmul.mubr.msk.bf16.vlgmr.msra.gmra.mrb[12].mxu1 %vm2910_vm3, %v4535_v46 }
 0x8d1   :  { %v5067_v26 = vpop.f32.mrb[12].mxu1 }
 0x8d2   :  { %v3549_v51 = vmul.f32 %v5067_v26, %v4540_v50  ;;  %v3524_v12 = vpop.f32.mrb[13].mxu1 }
 0x8d3   :  { %v3547_v52 = vmul.f32 %v4540_v50, %v3524_v12  ;;  %v5068_v4 = vpop.f32.mrb[14].mxu1 }
 0x8d4   :  { %v3557_v21 = vadd.f32 %v4541_v60, %v3549_v51  ;;  %v3550_v55 = vmul.f32 %v5068_v4, %v4540_v50  ;;  %v3527_v53 = vpop.f32.mrb[15].mxu1 }
 0x8d5   :  { %v3555_v6 = vadd.f32 %v4541_v60, %v3547_v52  ;;  %v3548_v8 = vmul.f32 %v4540_v50, %v3527_v53 }
 0x8d6   :  { %v3561_v28 = vmax.f32 %v3557_v21, 0.0  ;;  %v3558_v22 = vadd.f32 %v4541_v60, %v3550_v55 }
 0x8d7   :  { %v3559_v24 = vmax.f32 %v3555_v6, 0.0  ;;  %v3556_v25 = vadd.f32 %v4541_v60, %v3548_v8 }
 0x8d8   :  { %v4619_v62 = vpack.c.bf16 %v3561_v28, %v3561_v28  ;;  %v3562_v2 = vmax.f32 %v3558_v22, 0.0 }
 0x8d9   :  { %v4617_v3 = vpack.c.bf16 %v3559_v24, %v3559_v24  ;;  %v3560_v1 = vmax.f32 %v3556_v25, 0.0 }
 0x8da   :  { %v3595_v27 = vshrl.u32 %v4619_v62, 16  ;;  %v4620_v5 = vpack.c.bf16 %v3562_v2, %v3562_v2  ;;  %v3598_v10 = vshll.u32 %v4619_v62, 16 }
 0x8db   :  { %v3578_v7 = vshrl.u32 %v4617_v3, 16  ;;  %v4618_v59 = vpack.c.bf16 %v3560_v1, %v3560_v1  ;;  %v3581_v13 = vshll.u32 %v4617_v3, 16 }
 0x8dc   :  { %v3597_v9 = vrot.slane %v3595_v27, 7  ;;  %v3603_v47 = vshrl.u32 %v4620_v5, 16  ;;  %v3606_v19 = vshll.u32 %v4620_v5, 16 }
 0x8dd   :  { %v3580_v23 = vrot.slane %v3578_v7, 7  ;;  %v3586_v57 = vshrl.u32 %v4618_v59, 16  ;;  %v3589_v33 = vshll.u32 %v4618_v59, 16 }
 0x8de   :  { %v3600_v16 = vor.u32 %v3598_v10, %v3597_v9  ;;  %v3605_v14 = vrot.slane %v3603_v47, 7  ;;  %v3601_v31 = vrot.slane %v3597_v9, 4 }
 0x8df   :  { %v3583_v30 = vor.u32 %v3581_v13, %v3580_v23  ;;  %v3588_v32 = vrot.slane %v3586_v57, 7  ;;  %v3584_v17 = vrot.slane %v3580_v23, 4 }
 0x8e0   :  { %v3624_v34 = vsel %vm6177_vm10, %v3600_v16, %v3623_v29  ;;  %v3608_v35 = vor.u32 %v3606_v19, %v3605_v14  ;;  %v3610_v36 = vrot.slane %v3605_v14, 4 }
 0x8e1   :  { %3625 = vst [vmem:[#allocation2 + $0xc] sm:$0xf] %v3624_v34  ;;  %v3617_v20 = vsel %vm6177_vm10, %v3583_v30, %v6300_v42  ;;  %v3591_v38 = vor.u32 %v3589_v33, %v3588_v32  ;;  %v3593_v39 = vrot.slane %v3588_v32, 4  ;;  %v5294_v30 = vld [vmem:[%s6482_s12 + $0x8] sm:$0xff]  }
 0x8e2   :  { %3618 = vst [vmem:[#allocation2] sm:$0xf] %v3617_v20  ;;  %v3609_v18 = vsel %vm5580_vm8, %v3601_v31, %v3608_v35  ;;  %v3628_v43 = vsel %vm6182_vm11, %v3610_v36, %v3627_v37  ;;  %v5297_v20 = vld [vmem:[%s6482_s12 + $0x28] sm:$0xff]  }
 0x8e3   :  { %3626 = vst.msk [vmem:[#allocation2 + $0x10] sm:$0xf] %vm2811_vm7, %v3609_v18  ;;  %3629 = vst [vmem:[#allocation2 + $0x14] sm:$0x1] %v3628_v43  ;;  %v3592_v45 = vsel %vm5580_vm8, %v3584_v17, %v3591_v38  ;;  %v3621_v56 = vsel %vm6182_vm11, %v3593_v39, %v3620_v44  ;;  %vm4169_vm8 = vcmask 1041409  }
 0x8e4   :  { %3619 = vst.msk [vmem:[#allocation2 + $0x4] sm:$0xf] %vm2811_vm7, %v3592_v45  ;;  %3622 = vst [vmem:[#allocation2 + $0x8] sm:$0x1] %v3621_v56 }
 0x8e8   :  { %v6375_v42 = vld [vmem:[#allocation2 + $0xc] sm:$0xf] }
 0x8e9   :  { %v3630_v46 = vld [vmem:[#allocation2] sm:$0xf]  ;;  %v3665_v11 = vshrl.u32 %v6375_v42, 16  ;;  %v3668_v49 = vshll.u32 %v6375_v42, 16  ;;  %v4563_v43 = vrot.slane %v6375_v42, 9 }
 0x8ea   :  { %v3641_v50 = vshrl.u32 %v3630_v46, 16  ;;  %v3644_v60 = vshll.u32 %v3630_v46, 16  ;;  %v6379_v26 = vld [vmem:[#allocation2 + $0x10] sm:$0xf]  ;;  %v3635_v53 = vld [vmem:[#allocation2 + $0x14] sm:$0x1] }
 0x8eb   :  { %v3631_v51 = vld [vmem:[#allocation2 + $0x4] sm:$0xf]  ;;  %v3632_v54 = vld [vmem:[#allocation2 + $0x8] sm:$0x1]  ;;  %v3667_v12 = vrot.slane %v3665_v11, 4  ;;  %v3670_v52 = vrot.slane %v3668_v49, 5  ;;  %v4557_v17 = vcombine.low %v6375_v42, %v6379_v26 }
 0x8ec   :  { %v3643_v15 = vrot.slane %v3641_v50, 4  ;;  %v3646_v4 = vrot.slane %v3644_v60, 5  ;;  %v3650_v21 = vshll.u32 %v3631_v51, 16  ;;  %v3654_v55 = vshrl.u32 %v3631_v51, 16  ;;  %v5299_v11 = vld [vmem:[%s6483_s13 + $0x8] sm:$0xff]  }
 0x8ed   :  { %v3671_v6 = vor.u32 %v3670_v52, %v3667_v12  ;;  %v3674_v8 = vshll.u32 %v6379_v26, 16  ;;  %v3678_v28 = vshrl.u32 %v6379_v26, 16  ;;  %v3660_v62 = vshll.u32 %v3632_v54, 16  ;;  %v4574_v42 = vld [vmem:[#allocation6 + $0x13] ss:$0 sm:$0xff] }
 0x8ee   :  { %v3647_v22 = vor.u32 %v3646_v4, %v3643_v15  ;;  %v3652_v24 = vrot.slane %v3650_v21, 5  ;;  %v3656_v25 = vrot.slane %v3654_v55, 4  ;;  %v3684_v1 = vshll.u32 %v3635_v53, 16  ;;  %v4575_v49 = vld [vmem:[#allocation6 + $0x14] ss:$0 sm:$0xff] }
 0x8ef   :  { %v3676_v2 = vrot.slane %v3674_v8, 5  ;;  %v3680_v3 = vrot.slane %v3678_v28, 4  ;;  %v3672_v7 = vrot.slane %v3671_v6, 4  ;;  %v3662_v10 = vrot.slane %v3660_v62, 5 }
 0x8f0   :  { %v3648_v27 = vrot.slane %v3647_v22, 4  ;;  %v3657_v5 = vor.u32 %v3656_v25, %v3652_v24  ;;  %v3686_v23 = vrot.slane %v3684_v1, 5  ;;  %v4556_v32 = vcombine.low %v3630_v46, %v3631_v51 }
 0x8f1   :  { %v3681_v59 = vor.u32 %v3680_v3, %v3676_v2  ;;  %v3677_v14 = vsel %vm5628_vm12, %v3672_v7, %v3676_v2  ;;  %v3847_v33 = vrot.slane %v3631_v51, 5  ;;  %v3850_v34 = vrot.slane %v3632_v54, 5 }
 0x8f2   :  { %v3658_v9 = vrot.slane %v3657_v5, 4  ;;  %v3653_v13 = vsel %vm5628_vm12, %v3648_v27, %v3652_v24  ;;  %v4562_v35 = vrot.slane %v3630_v46, 9  ;;  %v3854_v38 = vrot.slane %v6379_v26, 5  ;;  %v5298_v46 = vld [vmem:[%s6483_s13] sm:$0xff]  }
 0x8f3   :  { %v3682_v47 = vrot.slane %v3681_v59, 4  ;;  %v3849_v31 = vrot.slane %v3847_v33, 4  ;;  %v3857_v18 = vrot.slane %v3635_v53, 5  ;;  %5093 = vmatprep.subr.bf16.mxu1 %v5298_v46 }
 0x8f4   :  { %v3663_v57 = vsel %vm5628_vm12, %v3658_v9, %v3662_v10  ;;  %v3856_v39 = vrot.slane %v3854_v38, 4  ;;  %v3855_v45 = vsel %vm5666_vm15, %v4563_v43, %v3854_v38  ;;  %5094 = vmatpush3.bf16.msra.mxu1 %v5298_v46 }
 0x8f5   :  { %v4550_v16 = vcombine.low %v3653_v13, %v3663_v57  ;;  %v3687_v19 = vsel %vm5628_vm12, %v3682_v47, %v3686_v23  ;;  %v3851_v36 = vsel %vm5666_vm15, %v3849_v31, %v3850_v34  ;;  %5095 = vmatprep.subr.bf16.mxu1 %v5299_v11  ;;  %vm4172_vm12 = vcmask 254976  }
 0x8f6   :  { %v4551_v29 = vcombine.low %v3677_v14, %v3687_v19  ;;  %v3858_v44 = vsel %vm5666_vm15, %v3856_v39, %v3857_v18  ;;  %v4581_v14 = vld [vmem:[#allocation6 + $0x16] ss:$0 sm:$0xff] }
 0x8f7   :  { %5073 = vmatprep.mubr.msk.bf16.mxu0 %vm2910_vm3, %v4550_v16  ;;  %v4569_v56 = vcombine.low %v3855_v45, %v3858_v44 }
 0x8f8   :  { %5074 = vmatmul.mubr.msk.bf16.vlgmr.msra.gmra.mrb[24].mxu0 %vm2910_vm3, %v4551_v29  ;;  %5096 = vmatpush3.bf16.msra.mxu1 %v5299_v11 }
 0x8f9   :  { %5078 = vmatpush3.bf16.msra.mxu0 %v6357_v41  ;;  %5081 = vmatprep.mubr.msk.bf16.mxu0 %vm2910_vm3, %v4556_v32  ;;  %v3848_v41 = vsel %vm5666_vm15, %v4562_v35, %v3847_v33 }
 0x8fa   :  { %5079 = vmatprep.subr.bf16.mxu0 %v5294_v30  ;;  %v4568_v37 = vcombine.low %v3848_v41, %v3851_v36 }
 0x8fd   :  { %5080 = vmatpush3.bf16.msra.mxu0 %v5294_v30 }
 0x8fe   :  { %5085 = vmatprep.subr.bf16.mxu0 %v5295_v40 }
 0x904   :  { %5082 = vmatmul.mubr.msk.bf16.vlgmr.msra.gmra.mrb[24].mxu0 %vm2910_vm3, %v4557_v17 }
 0x905   :  { %5086 = vmatpush3.bf16.msra.mxu0 %v5295_v40  ;;  %5089 = vmatprep.mubr.msk.bf16.mxu0 %vm2910_vm3, %v4568_v37 }
 0x906   :  { %5087 = vmatprep.subr.bf16.mxu0 %v5297_v20 }
 0x909   :  { %5088 = vmatpush3.bf16.msra.mxu0 %v5297_v20 }
 0x910   :  { %5090 = vmatmul.mubr.msk.bf16.vlgmr.msra.gmra.mrb[24].mxu0 %vm2910_vm3, %v4569_v56 }
 0x9e3   :  { %v5091_v50 = vpop.f32.mrb[24].mxu0 }
 0x9e4   :  { %v3947_v63 = vmul.f32 %v5091_v50, %v4574_v42  ;;  %v3922_v60 = vpop.f32.mrb[25].mxu0 }
 0x9e5   :  { %v3945_v26 = vmul.f32 %v4574_v42, %v3922_v60  ;;  %v5092_v51 = vpop.f32.mrb[26].mxu0 }
 0x9e6   :  { %v3955_v54 = vadd.f32 %v4575_v49, %v3947_v63  ;;  %v3948_v12 = vmul.f32 %v5092_v51, %v4574_v42  ;;  %v3925_v52 = vpop.f32.mrb[27].mxu0 }
 0x9e7   :  { %v3953_v15 = vadd.f32 %v4575_v49, %v3945_v26  ;;  %v3946_v4 = vmul.f32 %v4574_v42, %v3925_v52 }
 0x9e8   :  { %v3956_v21 = vadd.f32 %v4575_v49, %v3948_v12  ;;  %v6429_v6 = vadd.f32 %v3955_v54, %v6267_v0 }
 0x9e9   :  { %v6426_v55 = vadd.f32 %v3953_v15, %v6269_v58  ;;  %v3954_v53 = vadd.f32 %v4575_v49, %v3946_v4 }
 0x9ea   :  { %v6432_v8 = vadd.f32 %v3956_v21, %v6273_v48  ;;  %v3963_v62 = vmax.f32 %v6429_v6, 0.0  ;;  %v5300_v48 = vld [vmem:[%s6484_s14] sm:$0xff]   ;;  %s5396_s14 = smov [#allocation8]  }
 0x9eb   :  { %v6435_v28 = vadd.f32 %v3954_v53, %v6277_v61  ;;  %v3961_v24 = vmax.f32 %v6426_v55, 0.0  ;;  %5101 = vmatprep.subr.bf16.mxu1 %v5300_v48  ;;  %v4576_v61 = vld [vmem:[#allocation6 + $0x15] ss:$0 sm:$0xff]  ;;  %s4180_s24 = sshll.u32 %s5396_s14, 4  ;;  %s4181_s24 = int_to_ptr.vmem [resolvable:$true] %s4180_s24 }
 0x9ec   :  { %v3964_v22 = vmax.f32 %v6432_v8, 0.0  ;;  %s5361_s25 = scalar_lea.vmem %s4181_s24, 32  ;;  %p5366_p3 = scmp.lt.s32.totalorder %s4181_s24, %s4181_s24 }
 0x9ed   :  { %v3962_v25 = vmax.f32 %v6435_v28, 0.0  ;;  %p5362_p2 = scmp.ne.s32.totalorder %s4181_s24, %s5361_s25  ;;  %p5367_p4 = scmp.lt.s32.totalorder %s5361_s25, %s5361_s25 }
 0x9ee   :  { %v3966_v0 = vpack.c.bf16 %v3964_v22, %v3963_v62 }
 0x9ef   :  { %v3965_v58 = vpack.c.bf16 %v3962_v25, %v3961_v24  ;;  %p5368_p5 = por %p5367_p4, %p5366_p3 }
 0x9f1   :  { %5097 = vmatprep.mubr.msk.bf16.mxu1 %vm2910_vm3, %v3965_v58  ;;  %p5369_p6 = pnand %p5368_p5, %p5362_p2 }
 0x9f2   :  { %5098 = vmatmul.mubr.msk.bf16.vlgmr.msra.gmra.mrb[16].mxu1 %vm2910_vm3, %v3966_v0 }
 0x9f3   :  { %5102 = vmatpush3.bf16.msra.mxu1 %v5300_v48 }
 0xac5   :  { %v5099_v2 = vpop.f32.mrb[16].mxu1 }
 0xac6   :  { %v4037_v3 = vadd.f32 %v5099_v2, %v4576_v61  ;;  %v4028_v1 = vpop.f32.mrb[17].mxu1 }
 0xac7   :  { %v4029_v27 = vadd.f32 %v4576_v61, %v4028_v1  ;;  %v5100_v5 = vpop.f32.mrb[18].mxu1 }
 0xac8   :  { %v4040_v7 = vadd.f32 %v5100_v5, %v4576_v61  ;;  %v4031_v59 = vpop.f32.mrb[19].mxu1  ;;  %v4045_v10 = vmax.f32 %v4037_v3, 0.0 }
 0xac9   :  { %v4032_v9 = vadd.f32 %v4576_v61, %v4031_v59  ;;  %v4043_v23 = vmax.f32 %v4029_v27, 0.0 }
 0xaca   :  { %v4046_v47 = vmax.f32 %v4040_v7, 0.0 }
 0xacb   :  { %v4044_v13 = vmax.f32 %v4032_v9, 0.0 }
 0xacc   :  { %v4048_v57 = vpack.c.bf16 %v4046_v47, %v4045_v10 }
 0xacd   :  { %v4047_v16 = vpack.c.bf16 %v4044_v13, %v4043_v23 }
 0xacf   :  { %5103 = vmatprep.mubr.msk.bf16.mxu1 %vm4062_vm5, %v4047_v16 }
 0xad0   :  { %5104 = vmatmul.mubr.msk.bf16.vlgmr.msra.gmra.mrb[20].mxu1 %vm4062_vm5, %v4048_v57 }
 0xba3   :  { %v5105_v19 = vpop.f32.mrb[20].mxu1 }
 0xba4   :  { %v4112_v29 = vadd.f32 %v5105_v19, %v4581_v14  ;;  %v4103_v30 = vpop.f32.mrb[21].mxu1 }
 0xba5   :  { %v4104_v32 = vadd.f32 %v4581_v14, %v4103_v30  ;;  %v5106_v33 = vpop.f32.mrb[22].mxu1 }
 0xba6   :  { %v4587_v40 = vmul.f32 -1.442695, %v4112_v29  ;;  %v4115_v31 = vadd.f32 %v5106_v33, %v4581_v14  ;;  %v4106_v34 = vpop.f32.mrb[23].mxu1 }
 0xba7   :  { %v4585_v35 = vmul.f32 -1.442695, %v4104_v32  ;;  %v4107_v36 = vadd.f32 %v4581_v14, %v4106_v34 }
 0xba8   :  { %5301 = vpow2.f32 %v4587_v40  ;;  %v4588_v17 = vmul.f32 -1.442695, %v4115_v31 }
 0xba9   :  { %5303 = vpow2.f32 %v4585_v35  ;;  %v4586_v41 = vmul.f32 -1.442695, %v4107_v36 }
 0xbaa   :  { %5305 = vpow2.f32 %v4588_v17 }
 0xbab   :  { %5307 = vpow2.f32 %v4586_v41 }
 0xbb2   :  { %v5302_v20 = vpop.eup %5301 }
 0xbb3   :  { %v5304_v37 = vpop.eup %5303  ;;  %v4132_v38 = vadd.f32 1.0, %v5302_v20 }
 0xbb4   :  { %v5306_v39 = vpop.eup %5305  ;;  %v4130_v18 = vadd.f32 1.0, %v5304_v37 }
 0xbb5   :  { %v5308_v43 = vpop.eup %5307  ;;  %5309 = vrcp.f32 %v4132_v38  ;;  %v4133_v44 = vadd.f32 1.0, %v5306_v39 }
 0xbb6   :  { %5311 = vrcp.f32 %v4130_v18  ;;  %v4131_v45 = vadd.f32 1.0, %v5308_v43 }
 0xbb7   :  { %5313 = vrcp.f32 %v4133_v44 }
 0xbb8   :  { %5315 = vrcp.f32 %v4131_v45 }
 0xbbf   :  { %v5310_v56 = vpop.eup %5309 }
 0xbc0   :  { %v5312_v46 = vpop.eup %5311  ;;  %v4144_v11 = vmul.f32 %v5310_v56, %v3963_v62 }
 0xbc1   :  { %v5314_v42 = vpop.eup %5313  ;;  %v4142_v49 = vmul.f32 %v5312_v46, %v3961_v24 }
 0xbc2   :  { %v5316_v50 = vpop.eup %5315  ;;  %v4145_v63 = vmul.f32 %v5314_v42, %v3964_v22  ;;  %v4155_v26 = vsel %vm2910_vm3, %v4144_v11, 0.0 }
 0xbc3   :  { %v4143_v60 = vmul.f32 %v5316_v50, %v3962_v25  ;;  %v4146_v54 = vsel %vm2910_vm3, %v4142_v49, 0.0 }
 0xbc4   :  { %v4156_v51 = vsel %vm2910_vm3, %v4145_v63, 0.0 }
 0xbc5   :  { %v4147_v12 = vsel %vm2910_vm3, %v4143_v60, 0.0  ;;  %v4157_v52 = vadd.f32 %v4156_v51, %v4155_v26 }
 0xbc6   :  { %v4148_v15 = vadd.f32 %v4147_v12, %v4146_v54 }
 0xbc7   :  { %v4158_v4 = vrot.slane %v4157_v52, 4 }
 0xbc8   :  { %v4149_v21 = vrot.slane %v4148_v15, 4 }
 0xbc9   :  { %v4159_v55 = vadd.f32 %v4158_v4, %v4157_v52 }
 0xbca   :  { %v4150_v53 = vadd.f32 %v4149_v21, %v4148_v15 }
 0xbcb   :  { %v4160_v6 = vrot.slane %v4159_v55, 2 }
 0xbcc   :  { %v4151_v8 = vrot.slane %v4150_v53, 2 }
 0xbcd   :  { %v4161_v22 = vadd.f32 %v4160_v6, %v4159_v55 }
 0xbce   :  { %v4152_v24 = vadd.f32 %v4151_v8, %v4150_v53 }
 0xbcf   :  { %v4162_v28 = vrot.slane %v4161_v22, 1 }
 0xbd0   :  { %v4153_v25 = vrot.slane %v4152_v24, 1 }
 0xbd1   :  { %v4163_v62 = vadd.f32 %v4162_v28, %v4161_v22 }
 0xbd2   :  { %v4154_v58 = vadd.f32 %v4153_v25, %v4152_v24 }
 0xbd3   :  { %v4166_v0 = vmul.f32 0.0625, %v4163_v62 }
 0xbd4   :  { %v4165_v48 = vmul.f32 0.0625, %v4154_v58 }
 0xbd6   :  { %v4170_v61 = vsel %vm4169_vm8, %v4166_v0, %v4165_v48 }
 0xbd7   :  { %4173 = vst.msk [vmem:[#allocation8] sm:$0x3] %vm4172_vm12, %v4170_v61 }
 0xbd8   :  { %5372 = shalt.err (!%p5369_p6)
}
 0xbd9   :  { %s5373_s5 = scalar_lea.hbm %s6485_s15, 32 }
 0xbda   :  { %p5374_p7 = scmp.ne.s32.totalorder %s6485_s15, %s5373_s5  ;;  %p5377_p8 = scmp.lt.u32.totalorder %s5373_s5, %s6485_s15 }
 0xbdc   :  { %p5379_p9 = pnand %p5377_p8, %p5374_p7 }
 0xbde   :  { %5382 = shalt.err (!%p5379_p9)
}
 0xbdf   :  { %4183 = dma.vmem_to_hbm [thread:$0]  %s4181_s24, 32, %s6485_s15, [#allocation5]  }
 0xbe0   :  { %5387 = dma.done.wait [#allocation5], 32  }
 0xbe1   :  { %5388 = vsyncadd [#allocation5], 4294967264 }
 0xbe2   :  { %4187 = vsyncpa [#allocation4], 1 }
 0xbe3   :  { %4188 = vsyncpa [#allocation7], 1 }
 0xbe4   :  { %4189 = vsyncpa [#allocation5], 1 }

</bundles_post_ra>
